<compile_context>
chip_gen: v6e
topology: v6e:2x2x1
jax: 0.10.0
libtpu: 0.0.40
codegen_flags: <defaults>
</compile_context>

<pallas_src>
import functools

import jax
import jax.numpy as jnp
from jax import lax
from jax.experimental import pallas as pl
from jax.experimental.pallas import tpu as pltpu


_LANE = 128
_VMEM_LIMIT = 32 * 1024 * 1024        # raised scoped-VMEM limit (safe on v5e/v6e/v7x)
_TILE_BUDGET = 18 * 1024 * 1024       # per-grid-step working-set target (incl. 2x buffers)


def _round_up(x, m):
    return (x + m - 1) // m * m


# ----------------------------------------------------------------------------
# Pallas kernel: 3x3 conv on a flattened, reflection-padded halo row tile.
# ----------------------------------------------------------------------------
def _conv3x3_kernel(x_ref, w_ref, b_ref, o_ref, *, m_out, w_pad, relu):
    # x_ref: (M_in, Cin) bf16 flattened (TILE_H+2, W+2, Cin) halo slab (+2 rows)
    # w_ref: (9*Cin, Cout) bf16   b_ref: (1, Cout) f32   o_ref: (M_out, Cout)
    taps = []
    for dy in range(3):
        for dx in range(3):
            s = dy * w_pad + dx
            taps.append(x_ref[s:s + m_out, :])           # contiguous row slice
    patches = jnp.concatenate(taps, axis=1)              # (M_out, 9*Cin) im2col
    acc = jnp.dot(patches, w_ref[...],
                  preferred_element_type=jnp.float32)    # single MXU matmul
    acc = acc + b_ref[...]
    if relu:
        acc = jnp.maximum(acc, 0.0)
    o_ref[...] = acc.astype(o_ref.dtype)


def _choose_tile_h(H, W, cin, cout, budget=_TILE_BUDGET):
    """Largest divisor of H whose per-grid-step working set fits the budget."""
    wp = W + 2
    w_bytes = 2 * 9 * cin * cout * 2                     # (double-buffered) bf16 weights
    best = 1
    for th in range(1, H + 1):
        if H % th:
            continue
        m_in = _round_up((th + 2) * wp + 2, 8)
        m_out = th * wp
        est = (w_bytes
               + 2 * m_in * cin * 2                      # double-buffered bf16 input tiles
               + 2 * m_out * cout * 2                    # double-buffered output tiles
               + 2 * m_out * 9 * cin * 2                 # im2col slices + concat result
               + m_out * cout * 4)                       # f32 accumulator
        if est <= budget:
            best = th
    return best


def reflect_conv3x3(x, w, b, relu, out_dtype=None):
    """ReflectionPad2d((1,1,1,1)) -> Conv2d(Cin,Cout,3) [-> ReLU]  (NHWC)."""
    x = x.astype(jnp.bfloat16)
    N, H, W, Cin = x.shape
    Cout = w.shape[-1]
    out_dtype = out_dtype or x.dtype

    # Lane-dense stores for the tiny final layer: pad Cout (3) up to one lane.
    cp = _LANE if Cout < 64 else Cout
    if cp != Cout:
        w = jnp.pad(w, ((0, 0), (0, 0), (0, 0), (0, cp - Cout)))
        b = jnp.pad(b, ((0, cp - Cout),))

    th = _choose_tile_h(H, W, Cin, cp)
    T = H // th
    wp = W + 2
    m_out = th * wp
    m_in = _round_up((th + 2) * wp + 2, 8)

    # Halo row tiles (reflection pad + 2-row halo per tile), flattened to 2-D.
    # One XLA gather pass; the trailing scratch rows keep every conv tap a
    # contiguous in-bounds row slice inside the kernel.
    xp = jnp.pad(x, ((0, 0), (1, 1), (1, 1), (0, 0)), mode="reflect")
    tiles = jnp.stack([xp[:, t * th:t * th + th + 2] for t in range(T)], axis=1)
    tiles = tiles.reshape(N, T, (th + 2) * wp, Cin)
    tiles = jnp.pad(tiles, ((0, 0), (0, 0), (0, m_in - (th + 2) * wp), (0, 0)))

    w9 = w.astype(jnp.bfloat16).reshape(9 * Cin, cp)
    b2 = b.astype(jnp.float32).reshape(1, cp)

    kern = functools.partial(_conv3x3_kernel, m_out=m_out, w_pad=wp, relu=relu)
    out = pl.pallas_call(
        kern,
        out_shape=jax.ShapeDtypeStruct((N, T, m_out, cp), out_dtype),
        grid_spec=pltpu.PrefetchScalarGridSpec(
            num_scalar_prefetch=0,
            grid=(N, T),
            in_specs=[
                pl.BlockSpec((None, None, m_in, Cin), lambda n, t: (n, t, 0, 0)),
                pl.BlockSpec((9 * Cin, cp), lambda n, t: (0, 0)),   # resident weight
                pl.BlockSpec((1, cp), lambda n, t: (0, 0)),         # resident bias
            ],
            out_specs=pl.BlockSpec((None, None, m_out, cp),
                                   lambda n, t: (n, t, 0, 0)),
        ),
        compiler_params=pltpu.CompilerParams(
            dimension_semantics=("parallel", "parallel"),
            vmem_limit_bytes=_VMEM_LIMIT),
    )(tiles, w9, b2)

    # Back to NHWC; drop the 2 garbage columns and any channel padding.
    y = out.reshape(N, T, th, wp, cp)[:, :, :, :W, :].reshape(N, H, W, cp)
    if cp != Cout:
        y = y[..., :Cout]
    return y


def upsample_nearest_2x(x):
    """nn.UpsamplingNearest2d(scale_factor=2) on NHWC."""
    # TODO(synk): fuse the duplication into the following conv's halo gather /
    # index_map so the 2x feature map is never materialized on its own.
    return jnp.repeat(jnp.repeat(x, 2, axis=1), 2, axis=2)


# ----------------------------------------------------------------------------
# Decoder configuration (mirrors feature_invertor_conv5_1 layer structure)
# ----------------------------------------------------------------------------
# ("conv", Cin, Cout, relu) == ReflectionPad + Conv2d(Cin,Cout,3) (+ReLU)
_FULL_DECODER = [
    ("conv", 512, 512, True), ("up",),
    ("conv", 512, 512, True), ("conv", 512, 512, True),
    ("conv", 512, 512, True), ("conv", 512, 256, True), ("up",),
    ("conv", 256, 256, True), ("conv", 256, 256, True),
    ("conv", 256, 256, True), ("conv", 256, 128, True), ("up",),
    ("conv", 128, 128, True), ("conv", 128, 64, True), ("up",),
    ("conv", 64, 64, True), ("conv", 64, 3, False),
]
# trailing layer-groups kept for each depth (matches the PyTorch child slicing
# [-2:], [-9:], [-16:], [-29:])
_DEPTH_TO_SLICE = {1: 1, 2: 4, 3: 7, 4: 12}


def decoder_layers(depth):
    return _FULL_DECODER[-_DEPTH_TO_SLICE[depth]:]


def init_decoder_params(depth, key):
    """Deterministic synthetic weights (no checkpoint load)."""
    params = []
    for layer in decoder_layers(depth):
        if layer[0] == "conv":
            _, cin, cout, _ = layer
            key, kw, kb = jax.random.split(key, 3)
            w = 0.05 * jax.random.normal(kw, (3, 3, cin, cout), jnp.float32)
            b = 0.01 * jax.random.normal(kb, (cout,), jnp.float32)
            params.append((w, b))
        else:
            params.append(None)
    return params


def decoder_forward(x_nchw, params, depth):
    """Matches Decoder(depth).forward on NCHW input; returns NCHW output."""
    x = jnp.transpose(x_nchw, (0, 2, 3, 1)).astype(jnp.bfloat16)   # NCHW -> NHWC
    layers = decoder_layers(depth)
    for idx, (layer, p) in enumerate(zip(layers, params)):
        if layer[0] == "conv":
            _, _, _, relu = layer
            w, b = p
            is_last = idx == len(layers) - 1
            x = reflect_conv3x3(
                x, w, b, relu,
                out_dtype=jnp.float32 if is_last else jnp.bfloat16)
        else:
            x = upsample_nearest_2x(x)
    return jnp.transpose(x, (0, 3, 1, 2))                          # NHWC -> NCHW


# ----------------------------------------------------------------------------
# Pure-JAX reference (lax.conv, same bf16 operand quantization) for checking
# ----------------------------------------------------------------------------
def _ref_forward_nhwc(x_nhwc, depth, params):
    x = x_nhwc.astype(jnp.bfloat16)
    layers = decoder_layers(depth)
    for idx, (layer, p) in enumerate(zip(layers, params)):
        if layer[0] == "conv":
            _, _, _, relu = layer
            w, b = p
            xp = jnp.pad(x.astype(jnp.float32),
                         ((0, 0), (1, 1), (1, 1), (0, 0)), mode="reflect")
            y = lax.conv_general_dilated(
                xp, w.astype(jnp.bfloat16).astype(jnp.float32),
                window_strides=(1, 1), padding="VALID",
                dimension_numbers=("NHWC", "HWIO", "NHWC"),
                precision=lax.Precision.HIGHEST)
            y = y + b.astype(jnp.float32)
            if relu:
                y = jnp.maximum(y, 0.0)
            x = y if idx == len(layers) - 1 else y.astype(jnp.bfloat16)
        else:
            x = upsample_nearest_2x(x)
    return x


if __name__ == "__main__":
    depth = 2   # Decoder(2): conv128->64+ReLU, up2x, conv64->64+ReLU, conv64->3
    key = jax.random.PRNGKey(0)
    kx, kp = jax.random.split(key)

    # PyTorch-convention NCHW input for depth=2: (batch, 128, 8, 8)
    x_nchw = jax.random.normal(kx, (2, 128, 8, 8), jnp.float32)
    params = init_decoder_params(depth, kp)

    fwd = jax.jit(functools.partial(decoder_forward, depth=depth))
    out = jax.block_until_ready(fwd(x_nchw, params))
    assert out.shape == (2, 3, 16, 16), out.shape

    # numerics vs the pure-JAX reference using the same bf16 operands
    ref = _ref_forward_nhwc(jnp.transpose(x_nchw, (0, 2, 3, 1)), depth, params)
    ref = jnp.transpose(ref, (0, 3, 1, 2))
    max_err = float(jnp.max(jnp.abs(out.astype(jnp.float32) -
                                    ref.astype(jnp.float32))))
    assert jnp.allclose(out.astype(jnp.float32), ref.astype(jnp.float32),
                        rtol=2e-2, atol=2e-2), max_err

    print("KERNEL_OK")
</pallas_src>

<mosaic_0001>
module attributes {stable_mosaic.version = 11 : i64} {
  func.func @_conv3x3_kernel(%arg0: i32, %arg1: i32, %arg2: memref<1x1x104x128xbf16, #tpu.memory_space<vmem>>, %arg3: memref<1152x64xbf16, #tpu.memory_space<vmem>>, %arg4: memref<1x64xf32, #tpu.memory_space<vmem>>, %arg5: memref<1x1x80x64xbf16, #tpu.memory_space<vmem>>) attributes {dimension_semantics = [#tpu.dimension_semantics<parallel>, #tpu.dimension_semantics<parallel>], iteration_bounds = array<i64: 2, 1>, scalar_prefetch = 0 : i64, scratch_operands = 0 : i64, tpu.core_type = #tpu.core_type<tc>, window_params = [{transform_indices = @transform_0, window_bounds = array<i64: 1, 1, 104, 128>}, {pipeline_mode = #tpu.pipeline_mode<synchronous>, transform_indices = @transform_1, window_bounds = array<i64: 1152, 64>}, {pipeline_mode = #tpu.pipeline_mode<synchronous>, transform_indices = @transform_2, window_bounds = array<i64: 1, 64>}, {transform_indices = @transform_3, window_bounds = array<i64: 1, 1, 80, 64>}]} {
    %c0 = arith.constant 0 : index
    %c0_0 = arith.constant 0 : index
    %c0_1 = arith.constant 0 : index
    %c0_2 = arith.constant 0 : index
    %0 = vector.load %arg2[%c0, %c0_0, %c0_1, %c0_2] : memref<1x1x104x128xbf16, #tpu.memory_space<vmem>>, vector<1x1x80x128xbf16>
    %1 = vector.shape_cast %0 : vector<1x1x80x128xbf16> to vector<80x128xbf16>
    %c0_3 = arith.constant 0 : index
    %c0_4 = arith.constant 0 : index
    %c1 = arith.constant 1 : index
    %c0_5 = arith.constant 0 : index
    %2 = vector.load %arg2[%c0_3, %c0_4, %c1, %c0_5] : memref<1x1x104x128xbf16, #tpu.memory_space<vmem>>, vector<1x1x80x128xbf16>
    %3 = vector.shape_cast %2 : vector<1x1x80x128xbf16> to vector<80x128xbf16>
    %c0_6 = arith.constant 0 : index
    %c0_7 = arith.constant 0 : index
    %c2 = arith.constant 2 : index
    %c0_8 = arith.constant 0 : index
    %4 = vector.load %arg2[%c0_6, %c0_7, %c2, %c0_8] : memref<1x1x104x128xbf16, #tpu.memory_space<vmem>>, vector<1x1x80x128xbf16>
    %5 = vector.shape_cast %4 : vector<1x1x80x128xbf16> to vector<80x128xbf16>
    %c0_9 = arith.constant 0 : index
    %c0_10 = arith.constant 0 : index
    %c10 = arith.constant 10 : index
    %c0_11 = arith.constant 0 : index
    %6 = vector.load %arg2[%c0_9, %c0_10, %c10, %c0_11] : memref<1x1x104x128xbf16, #tpu.memory_space<vmem>>, vector<1x1x80x128xbf16>
    %7 = vector.shape_cast %6 : vector<1x1x80x128xbf16> to vector<80x128xbf16>
    %c0_12 = arith.constant 0 : index
    %c0_13 = arith.constant 0 : index
    %c11 = arith.constant 11 : index
    %c0_14 = arith.constant 0 : index
    %8 = vector.load %arg2[%c0_12, %c0_13, %c11, %c0_14] : memref<1x1x104x128xbf16, #tpu.memory_space<vmem>>, vector<1x1x80x128xbf16>
    %9 = vector.shape_cast %8 : vector<1x1x80x128xbf16> to vector<80x128xbf16>
    %c0_15 = arith.constant 0 : index
    %c0_16 = arith.constant 0 : index
    %c12 = arith.constant 12 : index
    %c0_17 = arith.constant 0 : index
    %10 = vector.load %arg2[%c0_15, %c0_16, %c12, %c0_17] : memref<1x1x104x128xbf16, #tpu.memory_space<vmem>>, vector<1x1x80x128xbf16>
    %11 = vector.shape_cast %10 : vector<1x1x80x128xbf16> to vector<80x128xbf16>
    %c0_18 = arith.constant 0 : index
    %c0_19 = arith.constant 0 : index
    %c20 = arith.constant 20 : index
    %c0_20 = arith.constant 0 : index
    %12 = vector.load %arg2[%c0_18, %c0_19, %c20, %c0_20] : memref<1x1x104x128xbf16, #tpu.memory_space<vmem>>, vector<1x1x80x128xbf16>
    %13 = vector.shape_cast %12 : vector<1x1x80x128xbf16> to vector<80x128xbf16>
    %c0_21 = arith.constant 0 : index
    %c0_22 = arith.constant 0 : index
    %c21 = arith.constant 21 : index
    %c0_23 = arith.constant 0 : index
    %14 = vector.load %arg2[%c0_21, %c0_22, %c21, %c0_23] : memref<1x1x104x128xbf16, #tpu.memory_space<vmem>>, vector<1x1x80x128xbf16>
    %15 = vector.shape_cast %14 : vector<1x1x80x128xbf16> to vector<80x128xbf16>
    %c0_24 = arith.constant 0 : index
    %c0_25 = arith.constant 0 : index
    %c22 = arith.constant 22 : index
    %c0_26 = arith.constant 0 : index
    %16 = vector.load %arg2[%c0_24, %c0_25, %c22, %c0_26] : memref<1x1x104x128xbf16, #tpu.memory_space<vmem>>, vector<1x1x80x128xbf16>
    %17 = vector.shape_cast %16 : vector<1x1x80x128xbf16> to vector<80x128xbf16>
    %18 = tpu.concatenate %1, %3, %5, %7, %9, %11, %13, %15, %17 in 1 : vector<80x128xbf16>, vector<80x128xbf16>, vector<80x128xbf16>, vector<80x128xbf16>, vector<80x128xbf16>, vector<80x128xbf16>, vector<80x128xbf16>, vector<80x128xbf16>, vector<80x128xbf16> -> vector<80x1152xbf16>
    %c0_27 = arith.constant 0 : index
    %c0_28 = arith.constant 0 : index
    %19 = vector.load %arg3[%c0_27, %c0_28] : memref<1152x64xbf16, #tpu.memory_space<vmem>>, vector<1152x64xbf16>
    %cst = arith.constant dense<0.000000e+00> : vector<80x64xf32>
    %20 = tpu.matmul %18, %19, %cst {dimension_numbers = #tpu.dot_dimension_numbers<[1], [0], [0], [1], [0, 0, 1, 1], [], []>} : vector<80x1152xbf16>, vector<1152x64xbf16>, vector<80x64xf32> -> vector<80x64xf32>
    %c0_29 = arith.constant 0 : index
    %c0_30 = arith.constant 0 : index
    %21 = vector.load %arg4[%c0_29, %c0_30] : memref<1x64xf32, #tpu.memory_space<vmem>>, vector<1x64xf32>
    %22 = vector.broadcast %21 : vector<1x64xf32> to vector<80x64xf32>
    %23 = arith.addf %20, %22 : vector<80x64xf32>
    %cst_31 = arith.constant 0.000000e+00 : f32
    %24 = vector.broadcast %cst_31 : f32 to vector<80x64xf32>
    %25 = arith.maximumf %23, %24 : vector<80x64xf32>
    %26 = arith.truncf %25 : vector<80x64xf32> to vector<80x64xbf16>
    %c0_32 = arith.constant 0 : index
    %c0_33 = arith.constant 0 : index
    %c0_34 = arith.constant 0 : index
    %c0_35 = arith.constant 0 : index
    %27 = vector.load %arg5[%c0_32, %c0_33, %c0_34, %c0_35] : memref<1x1x80x64xbf16, #tpu.memory_space<vmem>>, vector<1x1x80x64xbf16>
    %28 = vector.shape_cast %27 : vector<1x1x80x64xbf16> to vector<80x64xbf16>
    %29 = vector.shape_cast %26 : vector<80x64xbf16> to vector<1x1x80x64xbf16>
    tpu.vector_store %arg5[%c0_32, %c0_33, %c0_34, %c0_35], %29 {strides = array<i32>} : memref<1x1x80x64xbf16, #tpu.memory_space<vmem>>, vector<1x1x80x64xbf16>,
    return
  }
  func.func @transform_0(%arg0: i32, %arg1: i32) -> (i32, i32, i32, i32) {
    %c0_i32 = arith.constant 0 : i32
    %c0_i32_0 = arith.constant 0 : i32
    %c0_i32_1 = arith.constant 0 : i32
    return %arg0, %arg1, %c0_i32, %c0_i32_0 : i32, i32, i32, i32
  }
  func.func @transform_1(%arg0: i32, %arg1: i32) -> (i32, i32) {
    %c0_i32 = arith.constant 0 : i32
    %c0_i32_0 = arith.constant 0 : i32
    %c0_i32_1 = arith.constant 0 : i32
    return %c0_i32, %c0_i32_0 : i32, i32
  }
  func.func @transform_2(%arg0: i32, %arg1: i32) -> (i32, i32) {
    %c0_i32 = arith.constant 0 : i32
    %c0_i32_0 = arith.constant 0 : i32
    %c0_i32_1 = arith.constant 0 : i32
    return %c0_i32, %c0_i32_0 : i32, i32
  }
  func.func @transform_3(%arg0: i32, %arg1: i32) -> (i32, i32, i32, i32) {
    %c0_i32 = arith.constant 0 : i32
    %c0_i32_0 = arith.constant 0 : i32
    %c0_i32_1 = arith.constant 0 : i32
    return %arg0, %arg1, %c0_i32, %c0_i32_0 : i32, i32, i32, i32
  }
}

module attributes {stable_mosaic.version = 11 : i64} {
  func.func @_conv3x3_kernel(%arg0: i32, %arg1: i32, %arg2: memref<1x1x328x64xbf16, #tpu.memory_space<vmem>>, %arg3: memref<576x64xbf16, #tpu.memory_space<vmem>>, %arg4: memref<1x64xf32, #tpu.memory_space<vmem>>, %arg5: memref<1x1x288x64xbf16, #tpu.memory_space<vmem>>) attributes {dimension_semantics = [#tpu.dimension_semantics<parallel>, #tpu.dimension_semantics<parallel>], iteration_bounds = array<i64: 2, 1>, scalar_prefetch = 0 : i64, scratch_operands = 0 : i64, tpu.core_type = #tpu.core_type<tc>, window_params = [{transform_indices = @transform_0, window_bounds = array<i64: 1, 1, 328, 64>}, {pipeline_mode = #tpu.pipeline_mode<synchronous>, transform_indices = @transform_1, window_bounds = array<i64: 576, 64>}, {pipeline_mode = #tpu.pipeline_mode<synchronous>, transform_indices = @transform_2, window_bounds = array<i64: 1, 64>}, {transform_indices = @transform_3, window_bounds = array<i64: 1, 1, 288, 64>}]} {
    %c0 = arith.constant 0 : index
    %c0_0 = arith.constant 0 : index
    %c0_1 = arith.constant 0 : index
    %c0_2 = arith.constant 0 : index
    %0 = vector.load %arg2[%c0, %c0_0, %c0_1, %c0_2] : memref<1x1x328x64xbf16, #tpu.memory_space<vmem>>, vector<1x1x288x64xbf16>
    %1 = vector.shape_cast %0 : vector<1x1x288x64xbf16> to vector<288x64xbf16>
    %c0_3 = arith.constant 0 : index
    %c0_4 = arith.constant 0 : index
    %c1 = arith.constant 1 : index
    %c0_5 = arith.constant 0 : index
    %2 = vector.load %arg2[%c0_3, %c0_4, %c1, %c0_5] : memref<1x1x328x64xbf16, #tpu.memory_space<vmem>>, vector<1x1x288x64xbf16>
    %3 = vector.shape_cast %2 : vector<1x1x288x64xbf16> to vector<288x64xbf16>
    %c0_6 = arith.constant 0 : index
    %c0_7 = arith.constant 0 : index
    %c2 = arith.constant 2 : index
    %c0_8 = arith.constant 0 : index
    %4 = vector.load %arg2[%c0_6, %c0_7, %c2, %c0_8] : memref<1x1x328x64xbf16, #tpu.memory_space<vmem>>, vector<1x1x288x64xbf16>
    %5 = vector.shape_cast %4 : vector<1x1x288x64xbf16> to vector<288x64xbf16>
    %c0_9 = arith.constant 0 : index
    %c0_10 = arith.constant 0 : index
    %c18 = arith.constant 18 : index
    %c0_11 = arith.constant 0 : index
    %6 = vector.load %arg2[%c0_9, %c0_10, %c18, %c0_11] : memref<1x1x328x64xbf16, #tpu.memory_space<vmem>>, vector<1x1x288x64xbf16>
    %7 = vector.shape_cast %6 : vector<1x1x288x64xbf16> to vector<288x64xbf16>
    %c0_12 = arith.constant 0 : index
    %c0_13 = arith.constant 0 : index
    %c19 = arith.constant 19 : index
    %c0_14 = arith.constant 0 : index
    %8 = vector.load %arg2[%c0_12, %c0_13, %c19, %c0_14] : memref<1x1x328x64xbf16, #tpu.memory_space<vmem>>, vector<1x1x288x64xbf16>
    %9 = vector.shape_cast %8 : vector<1x1x288x64xbf16> to vector<288x64xbf16>
    %c0_15 = arith.constant 0 : index
    %c0_16 = arith.constant 0 : index
    %c20 = arith.constant 20 : index
    %c0_17 = arith.constant 0 : index
    %10 = vector.load %arg2[%c0_15, %c0_16, %c20, %c0_17] : memref<1x1x328x64xbf16, #tpu.memory_space<vmem>>, vector<1x1x288x64xbf16>
    %11 = vector.shape_cast %10 : vector<1x1x288x64xbf16> to vector<288x64xbf16>
    %c0_18 = arith.constant 0 : index
    %c0_19 = arith.constant 0 : index
    %c36 = arith.constant 36 : index
    %c0_20 = arith.constant 0 : index
    %12 = vector.load %arg2[%c0_18, %c0_19, %c36, %c0_20] : memref<1x1x328x64xbf16, #tpu.memory_space<vmem>>, vector<1x1x288x64xbf16>
    %13 = vector.shape_cast %12 : vector<1x1x288x64xbf16> to vector<288x64xbf16>
    %c0_21 = arith.constant 0 : index
    %c0_22 = arith.constant 0 : index
    %c37 = arith.constant 37 : index
    %c0_23 = arith.constant 0 : index
    %14 = vector.load %arg2[%c0_21, %c0_22, %c37, %c0_23] : memref<1x1x328x64xbf16, #tpu.memory_space<vmem>>, vector<1x1x288x64xbf16>
    %15 = vector.shape_cast %14 : vector<1x1x288x64xbf16> to vector<288x64xbf16>
    %c0_24 = arith.constant 0 : index
    %c0_25 = arith.constant 0 : index
    %c38 = arith.constant 38 : index
    %c0_26 = arith.constant 0 : index
    %16 = vector.load %arg2[%c0_24, %c0_25, %c38, %c0_26] : memref<1x1x328x64xbf16, #tpu.memory_space<vmem>>, vector<1x1x288x64xbf16>
    %17 = vector.shape_cast %16 : vector<1x1x288x64xbf16> to vector<288x64xbf16>
    %18 = tpu.concatenate %1, %3, %5, %7, %9, %11, %13, %15, %17 in 1 : vector<288x64xbf16>, vector<288x64xbf16>, vector<288x64xbf16>, vector<288x64xbf16>, vector<288x64xbf16>, vector<288x64xbf16>, vector<288x64xbf16>, vector<288x64xbf16>, vector<288x64xbf16> -> vector<288x576xbf16>
    %c0_27 = arith.constant 0 : index
    %c0_28 = arith.constant 0 : index
    %19 = vector.load %arg3[%c0_27, %c0_28] : memref<576x64xbf16, #tpu.memory_space<vmem>>, vector<576x64xbf16>
    %cst = arith.constant dense<0.000000e+00> : vector<288x64xf32>
    %20 = tpu.matmul %18, %19, %cst {dimension_numbers = #tpu.dot_dimension_numbers<[1], [0], [0], [1], [0, 0, 1, 1], [], []>} : vector<288x576xbf16>, vector<576x64xbf16>, vector<288x64xf32> -> vector<288x64xf32>
    %c0_29 = arith.constant 0 : index
    %c0_30 = arith.constant 0 : index
    %21 = vector.load %arg4[%c0_29, %c0_30] : memref<1x64xf32, #tpu.memory_space<vmem>>, vector<1x64xf32>
    %22 = vector.broadcast %21 : vector<1x64xf32> to vector<288x64xf32>
    %23 = arith.addf %20, %22 : vector<288x64xf32>
    %cst_31 = arith.constant 0.000000e+00 : f32
    %24 = vector.broadcast %cst_31 : f32 to vector<288x64xf32>
    %25 = arith.maximumf %23, %24 : vector<288x64xf32>
    %26 = arith.truncf %25 : vector<288x64xf32> to vector<288x64xbf16>
    %c0_32 = arith.constant 0 : index
    %c0_33 = arith.constant 0 : index
    %c0_34 = arith.constant 0 : index
    %c0_35 = arith.constant 0 : index
    %27 = vector.load %arg5[%c0_32, %c0_33, %c0_34, %c0_35] : memref<1x1x288x64xbf16, #tpu.memory_space<vmem>>, vector<1x1x288x64xbf16>
    %28 = vector.shape_cast %27 : vector<1x1x288x64xbf16> to vector<288x64xbf16>
    %29 = vector.shape_cast %26 : vector<288x64xbf16> to vector<1x1x288x64xbf16>
    tpu.vector_store %arg5[%c0_32, %c0_33, %c0_34, %c0_35], %29 {strides = array<i32>} : memref<1x1x288x64xbf16, #tpu.memory_space<vmem>>, vector<1x1x288x64xbf16>,
    return
  }
  func.func @transform_0(%arg0: i32, %arg1: i32) -> (i32, i32, i32, i32) {
    %c0_i32 = arith.constant 0 : i32
    %c0_i32_0 = arith.constant 0 : i32
    %c0_i32_1 = arith.constant 0 : i32
    return %arg0, %arg1, %c0_i32, %c0_i32_0 : i32, i32, i32, i32
  }
  func.func @transform_1(%arg0: i32, %arg1: i32) -> (i32, i32) {
    %c0_i32 = arith.constant 0 : i32
    %c0_i32_0 = arith.constant 0 : i32
    %c0_i32_1 = arith.constant 0 : i32
    return %c0_i32, %c0_i32_0 : i32, i32
  }
  func.func @transform_2(%arg0: i32, %arg1: i32) -> (i32, i32) {
    %c0_i32 = arith.constant 0 : i32
    %c0_i32_0 = arith.constant 0 : i32
    %c0_i32_1 = arith.constant 0 : i32
    return %c0_i32, %c0_i32_0 : i32, i32
  }
  func.func @transform_3(%arg0: i32, %arg1: i32) -> (i32, i32, i32, i32) {
    %c0_i32 = arith.constant 0 : i32
    %c0_i32_0 = arith.constant 0 : i32
    %c0_i32_1 = arith.constant 0 : i32
    return %arg0, %arg1, %c0_i32, %c0_i32_0 : i32, i32, i32, i32
  }
}

module attributes {stable_mosaic.version = 11 : i64} {
  func.func @_conv3x3_kernel(%arg0: i32, %arg1: i32, %arg2: memref<1x1x328x64xbf16, #tpu.memory_space<vmem>>, %arg3: memref<576x128xbf16, #tpu.memory_space<vmem>>, %arg4: memref<1x128xf32, #tpu.memory_space<vmem>>, %arg5: memref<1x1x288x128xf32, #tpu.memory_space<vmem>>) attributes {dimension_semantics = [#tpu.dimension_semantics<parallel>, #tpu.dimension_semantics<parallel>], iteration_bounds = array<i64: 2, 1>, scalar_prefetch = 0 : i64, scratch_operands = 0 : i64, tpu.core_type = #tpu.core_type<tc>, window_params = [{transform_indices = @transform_0, window_bounds = array<i64: 1, 1, 328, 64>}, {pipeline_mode = #tpu.pipeline_mode<synchronous>, transform_indices = @transform_1, window_bounds = array<i64: 576, 128>}, {pipeline_mode = #tpu.pipeline_mode<synchronous>, transform_indices = @transform_2, window_bounds = array<i64: 1, 128>}, {transform_indices = @transform_3, window_bounds = array<i64: 1, 1, 288, 128>}]} {
    %c0 = arith.constant 0 : index
    %c0_0 = arith.constant 0 : index
    %c0_1 = arith.constant 0 : index
    %c0_2 = arith.constant 0 : index
    %0 = vector.load %arg2[%c0, %c0_0, %c0_1, %c0_2] : memref<1x1x328x64xbf16, #tpu.memory_space<vmem>>, vector<1x1x288x64xbf16>
    %1 = vector.shape_cast %0 : vector<1x1x288x64xbf16> to vector<288x64xbf16>
    %c0_3 = arith.constant 0 : index
    %c0_4 = arith.constant 0 : index
    %c1 = arith.constant 1 : index
    %c0_5 = arith.constant 0 : index
    %2 = vector.load %arg2[%c0_3, %c0_4, %c1, %c0_5] : memref<1x1x328x64xbf16, #tpu.memory_space<vmem>>, vector<1x1x288x64xbf16>
    %3 = vector.shape_cast %2 : vector<1x1x288x64xbf16> to vector<288x64xbf16>
    %c0_6 = arith.constant 0 : index
    %c0_7 = arith.constant 0 : index
    %c2 = arith.constant 2 : index
    %c0_8 = arith.constant 0 : index
    %4 = vector.load %arg2[%c0_6, %c0_7, %c2, %c0_8] : memref<1x1x328x64xbf16, #tpu.memory_space<vmem>>, vector<1x1x288x64xbf16>
    %5 = vector.shape_cast %4 : vector<1x1x288x64xbf16> to vector<288x64xbf16>
    %c0_9 = arith.constant 0 : index
    %c0_10 = arith.constant 0 : index
    %c18 = arith.constant 18 : index
    %c0_11 = arith.constant 0 : index
    %6 = vector.load %arg2[%c0_9, %c0_10, %c18, %c0_11] : memref<1x1x328x64xbf16, #tpu.memory_space<vmem>>, vector<1x1x288x64xbf16>
    %7 = vector.shape_cast %6 : vector<1x1x288x64xbf16> to vector<288x64xbf16>
    %c0_12 = arith.constant 0 : index
    %c0_13 = arith.constant 0 : index
    %c19 = arith.constant 19 : index
    %c0_14 = arith.constant 0 : index
    %8 = vector.load %arg2[%c0_12, %c0_13, %c19, %c0_14] : memref<1x1x328x64xbf16, #tpu.memory_space<vmem>>, vector<1x1x288x64xbf16>
    %9 = vector.shape_cast %8 : vector<1x1x288x64xbf16> to vector<288x64xbf16>
    %c0_15 = arith.constant 0 : index
    %c0_16 = arith.constant 0 : index
    %c20 = arith.constant 20 : index
    %c0_17 = arith.constant 0 : index
    %10 = vector.load %arg2[%c0_15, %c0_16, %c20, %c0_17] : memref<1x1x328x64xbf16, #tpu.memory_space<vmem>>, vector<1x1x288x64xbf16>
    %11 = vector.shape_cast %10 : vector<1x1x288x64xbf16> to vector<288x64xbf16>
    %c0_18 = arith.constant 0 : index
    %c0_19 = arith.constant 0 : index
    %c36 = arith.constant 36 : index
    %c0_20 = arith.constant 0 : index
    %12 = vector.load %arg2[%c0_18, %c0_19, %c36, %c0_20] : memref<1x1x328x64xbf16, #tpu.memory_space<vmem>>, vector<1x1x288x64xbf16>
    %13 = vector.shape_cast %12 : vector<1x1x288x64xbf16> to vector<288x64xbf16>
    %c0_21 = arith.constant 0 : index
    %c0_22 = arith.constant 0 : index
    %c37 = arith.constant 37 : index
    %c0_23 = arith.constant 0 : index
    %14 = vector.load %arg2[%c0_21, %c0_22, %c37, %c0_23] : memref<1x1x328x64xbf16, #tpu.memory_space<vmem>>, vector<1x1x288x64xbf16>
    %15 = vector.shape_cast %14 : vector<1x1x288x64xbf16> to vector<288x64xbf16>
    %c0_24 = arith.constant 0 : index
    %c0_25 = arith.constant 0 : index
    %c38 = arith.constant 38 : index
    %c0_26 = arith.constant 0 : index
    %16 = vector.load %arg2[%c0_24, %c0_25, %c38, %c0_26] : memref<1x1x328x64xbf16, #tpu.memory_space<vmem>>, vector<1x1x288x64xbf16>
    %17 = vector.shape_cast %16 : vector<1x1x288x64xbf16> to vector<288x64xbf16>
    %18 = tpu.concatenate %1, %3, %5, %7, %9, %11, %13, %15, %17 in 1 : vector<288x64xbf16>, vector<288x64xbf16>, vector<288x64xbf16>, vector<288x64xbf16>, vector<288x64xbf16>, vector<288x64xbf16>, vector<288x64xbf16>, vector<288x64xbf16>, vector<288x64xbf16> -> vector<288x576xbf16>
    %c0_27 = arith.constant 0 : index
    %c0_28 = arith.constant 0 : index
    %19 = vector.load %arg3[%c0_27, %c0_28] : memref<576x128xbf16, #tpu.memory_space<vmem>>, vector<576x128xbf16>
    %cst = arith.constant dense<0.000000e+00> : vector<288x128xf32>
    %20 = tpu.matmul %18, %19, %cst {dimension_numbers = #tpu.dot_dimension_numbers<[1], [0], [0], [1], [0, 0, 1, 1], [], []>} : vector<288x576xbf16>, vector<576x128xbf16>, vector<288x128xf32> -> vector<288x128xf32>
    %c0_29 = arith.constant 0 : index
    %c0_30 = arith.constant 0 : index
    %21 = vector.load %arg4[%c0_29, %c0_30] : memref<1x128xf32, #tpu.memory_space<vmem>>, vector<1x128xf32>
    %22 = vector.broadcast %21 : vector<1x128xf32> to vector<288x128xf32>
    %23 = arith.addf %20, %22 : vector<288x128xf32>
    %c0_31 = arith.constant 0 : index
    %c0_32 = arith.constant 0 : index
    %c0_33 = arith.constant 0 : index
    %c0_34 = arith.constant 0 : index
    %24 = vector.load %arg5[%c0_31, %c0_32, %c0_33, %c0_34] : memref<1x1x288x128xf32, #tpu.memory_space<vmem>>, vector<1x1x288x128xf32>
    %25 = vector.shape_cast %24 : vector<1x1x288x128xf32> to vector<288x128xf32>
    %26 = vector.shape_cast %23 : vector<288x128xf32> to vector<1x1x288x128xf32>
    tpu.vector_store %arg5[%c0_31, %c0_32, %c0_33, %c0_34], %26 {strides = array<i32>} : memref<1x1x288x128xf32, #tpu.memory_space<vmem>>, vector<1x1x288x128xf32>,
    return
  }
  func.func @transform_0(%arg0: i32, %arg1: i32) -> (i32, i32, i32, i32) {
    %c0_i32 = arith.constant 0 : i32
    %c0_i32_0 = arith.constant 0 : i32
    %c0_i32_1 = arith.constant 0 : i32
    return %arg0, %arg1, %c0_i32, %c0_i32_0 : i32, i32, i32, i32
  }
  func.func @transform_1(%arg0: i32, %arg1: i32) -> (i32, i32) {
    %c0_i32 = arith.constant 0 : i32
    %c0_i32_0 = arith.constant 0 : i32
    %c0_i32_1 = arith.constant 0 : i32
    return %c0_i32, %c0_i32_0 : i32, i32
  }
  func.func @transform_2(%arg0: i32, %arg1: i32) -> (i32, i32) {
    %c0_i32 = arith.constant 0 : i32
    %c0_i32_0 = arith.constant 0 : i32
    %c0_i32_1 = arith.constant 0 : i32
    return %c0_i32, %c0_i32_0 : i32, i32
  }
  func.func @transform_3(%arg0: i32, %arg1: i32) -> (i32, i32, i32, i32) {
    %c0_i32 = arith.constant 0 : i32
    %c0_i32_0 = arith.constant 0 : i32
    %c0_i32_1 = arith.constant 0 : i32
    return %arg0, %arg1, %c0_i32, %c0_i32_0 : i32, i32, i32, i32
  }
}

</mosaic_0001>

<bundles_post_ra>
// kernel: decoder_forward.3
= control target key start
LH: loop header
LB: loop body
LE: loop exit
PB: predicated region body
PF: predicated region fallthrough
CT: control target
= control target key end

     0   :  { %s2221_s12 = smov 0   ;;  %s2223_s13 = smov 0   ;;  %s2787_s0 = inlined_call_operand.vmem [shape: bf16[2,1,104,128], index: 0, kind: input, shape index: {}]   ;;  %s2788_s1 = inlined_call_operand.vmem [shape: bf16[1152,64], index: 1, kind: input, shape index: {}]   ;;  %s2789_s2 = inlined_call_operand.vmem [shape: f32[1,64], index: 2, kind: input, shape index: {}]   ;;  %s2790_s3 = inlined_call_operand.vmem [shape: bf16[2,1,80,64], index: 3, kind: output, shape index: {}]  }
   0x1   :  { %s2225_s14 = smov 0  }
   0x2 LB: > { %s25_s15 = sadd.s32 1, %s2193_s13  ;;  %p1682_p0 = scmp.ge.s32.totalorder %s2197_s14, 1  ;;  %s2197_s14 = sphi %s2225_s14, %s13_s14   ;;  %s2193_s13 = sphi %s2223_s13, %s2802_s13   ;;  %s2189_s12 = sphi %s2221_s12, %s2801_s12  }
   0x3   : > { %p27_p1 = scmp.ge.s32.totalorder %s25_s15, 2  ;;  %p157_p2 = scmp.lt.s32.totalorder %s2197_s14, 3 }
   0x5   : > { %s2804_s15 = smov (%p27_p1, %s25_s15), 0  ;;  %p158_p3 = pnand %p1682_p0, %p157_p2 }
   0x7   : > { %161 = sbr.rel (%p158_p3) target bundleno = 346 (0x15a), region = 32 }
   0xc   : > { %v2080_v0 = vld [vmem:[%s2788_s1 + $0x78] sm:$0xff]   ;;  %v2084_v4 = vld [vmem:[%s2788_s1 + $0x70] sm:$0xff]   ;;  %v2088_v8 = vld [vmem:[%s2788_s1 + $0x68] sm:$0xff]   ;;  %p189_p4 = scmp.lt.s32.totalorder %s2189_s12, 1  ;;  %vm324_vm0 = vcmask 1046528   ;;  %vm434_vm2 = vcmask 1045504  }
   0xd   : > { %v2081_v1 = vld [vmem:[%s2788_s1 + $0xf8] sm:$0xff]   ;;  %1803 = vmatprep.subr.bf16.mxu0 %v2080_v0  ;;  %v2085_v5 = vld [vmem:[%s2788_s1 + $0xf0] sm:$0xff]   ;;  %v2089_v9 = vld [vmem:[%s2788_s1 + $0xe8] sm:$0xff]   ;;  %vm271_vm1 = vsmask.f32 7424  ;;  %vm2200_vm5 = vmmov 0  }
   0xe   : > { %v2082_v2 = vld [vmem:[%s2788_s1 + $0x38] sm:$0xff]   ;;  %1849 = vmatprep.subr.bf16.mxu1 %v2081_v1  ;;  %v2086_v6 = vld [vmem:[%s2788_s1 + $0x30] sm:$0xff]   ;;  %v2090_v10 = vld [vmem:[%s2788_s1 + $0x28] sm:$0xff]   ;;  %s2806_s12 = smov (!%p189_p4, %s2189_s12), 1  ;;  %vm498_vm3 = vsmask.f32 5376 }
   0xf   : > { %v2083_v3 = vld [vmem:[%s2788_s1 + $0xb8] sm:$0xff]   ;;  %1804 = vmatpush3.bf16.msra.mxu0 %v2082_v2  ;;  %v2087_v7 = vld [vmem:[%s2788_s1 + $0xb0] sm:$0xff]   ;;  %v2091_v11 = vld [vmem:[%s2788_s1 + $0xa8] sm:$0xff]   ;;  %s2052_s22 = smul.u32 52, %s2806_s12  ;;  %vm372_vm4 = vsmask.f32 6400 }
  0x10   : > { %1850 = vmatpush3.bf16.msra.mxu1 %v2083_v3  ;;  %1805 = vmatprep.subr.bf16.mxu0 %v2084_v4  ;;  %v2092_v12 = vld [vmem:[%s2788_s1 + $0x60] sm:$0xff]   ;;  %v2096_v16 = vld [vmem:[%s2788_s1 + $0x58] sm:$0xff]   ;;  %v2100_v20 = vld [vmem:[%s2788_s1 + $0x50] sm:$0xff]   ;;  %vm560_vm6 = vcmask 1044480   ;;  %s2053_s30 = smul.u32 40, %s2806_s12  ;;  %vm1575_vm7 = vcmask 519168  }
  0x11   : > { %1851 = vmatprep.subr.bf16.mxu1 %v2085_v5  ;;  %v2093_v13 = vld [vmem:[%s2788_s1 + $0xe0] sm:$0xff]   ;;  %v2097_v17 = vld [vmem:[%s2788_s1 + $0xd8] sm:$0xff]   ;;  %v2101_v21 = vld [vmem:[%s2788_s1 + $0xd0] sm:$0xff]   ;;  %s2339_s6 = scalar_lea.vmem %s2787_s0, %s2052_s22 }
  0x12   : > { %v2094_v14 = vld [vmem:[%s2788_s1 + $0x20] sm:$0xff]   ;;  %v2098_v18 = vld [vmem:[%s2788_s1 + $0x18] sm:$0xff]   ;;  %v2102_v22 = vld [vmem:[%s2788_s1 + $0x10] sm:$0xff]   ;;  %s2743_s5 = scalar_lea.vmem %s2790_s3, %s2053_s30 }
  0x13   : > { %1806 = vmatpush3.bf16.msra.mxu0 %v2086_v6  ;;  %v2095_v15 = vld [vmem:[%s2788_s1 + $0xa0] sm:$0xff]   ;;  %v2099_v19 = vld [vmem:[%s2788_s1 + $0x98] sm:$0xff]   ;;  %v2103_v23 = vld [vmem:[%s2788_s1 + $0x90] sm:$0xff]  }
  0x14   : > { %1852 = vmatpush3.bf16.msra.mxu1 %v2087_v7  ;;  %1807 = vmatprep.subr.bf16.mxu0 %v2088_v8  ;;  %v2104_v24 = vld [vmem:[%s2788_s1 + $0x48] sm:$0xff]   ;;  %v2108_v28 = vld [vmem:[%s2788_s1 + $0x40] sm:$0xff]   ;;  %v212_v37 = vld [vmem:[%s2339_s6 + $0x10] sm:$0xf] }
  0x15   : > { %1853 = vmatprep.subr.bf16.mxu1 %v2089_v9  ;;  %v2105_v25 = vld [vmem:[%s2788_s1 + $0xc8] sm:$0xff]   ;;  %v2109_v29 = vld [vmem:[%s2788_s1 + $0xc0] sm:$0xff]   ;;  %v213_v39 = vld [vmem:[%s2339_s6 + $0x14] sm:$0xf] }
  0x16   : > { %v2106_v26 = vld [vmem:[%s2788_s1 + $0x8] sm:$0xff]   ;;  %v2110_v30 = vld [vmem:[%s2788_s1] sm:$0xff]   ;;  %v2362_v45 = vcombine.low %v212_v37, %v213_v39  ;;  %v2118_v51 = vld [vmem:[%s2788_s1 + $0x178] sm:$0xff]  }
  0x17   : > { %1808 = vmatpush3.bf16.msra.mxu0 %v2090_v10  ;;  %v2107_v27 = vld [vmem:[%s2788_s1 + $0x88] sm:$0xff]   ;;  %v2111_v31 = vld [vmem:[%s2788_s1 + $0x80] sm:$0xff]   ;;  %v2119_v58 = vld [vmem:[%s2788_s1 + $0x138] sm:$0xff]  }
  0x18   : > { %1854 = vmatpush3.bf16.msra.mxu1 %v2091_v11  ;;  %1809 = vmatprep.subr.bf16.mxu0 %v2092_v12  ;;  %v208_v32 = vld [vmem:[%s2339_s6] sm:$0xf]  ;;  %v209_v33 = vld [vmem:[%s2339_s6 + $0x4] sm:$0xf]  ;;  %v2350_v34 = vld [vmem:[%s2339_s6 + $0x8] sm:$0xf] }
  0x19   : > { %1855 = vmatprep.subr.bf16.mxu1 %v2093_v13  ;;  %v211_v35 = vld [vmem:[%s2339_s6 + $0xc] sm:$0xf]  ;;  %v1685_v36 = vcombine.low %v208_v32, %v209_v33  ;;  %v220_v40 = vld [vmem:[%s2339_s6 + $0x4] sm:$0xe]  ;;  %v219_v42 = vld [vmem:[%s2339_s6] sm:$0xe] }
  0x1a   : > { %v2355_v38 = vcombine.low %v2350_v34, %v211_v35  ;;  %v2359_v41 = vcombine.low %v211_v35, %v212_v37  ;;  %v2365_v46 = vcombine.low %v220_v40, %v2350_v34  ;;  %v1691_v49 = vcombine.low %v219_v42, %v209_v33  ;;  %v2120_v61 = vld [vmem:[%s2788_s1 + $0x170] sm:$0xff]   ;;  %v214_v63 = vld [vmem:[%s2339_s6 + $0x18] sm:$0xf]  ;;  %v2125_v10 = vld [vmem:[%s2788_s1 + $0x168] sm:$0xff]  }
  0x1b   : > { %1810 = vmatpush3.bf16.msra.mxu0 %v2094_v14  ;;  %v273_v43 = vshrl.u32 %v1685_v36, 16  ;;  %v275_v44 = vshll.u32 %v1685_v36, 16  ;;  %v288_v62 = vshll.u32 %v2362_v45, 16  ;;  %v2386_v2 = vcombine.low %v213_v39, %v214_v63  ;;  %v2123_v4 = vld [vmem:[%s2788_s1 + $0x1f8] sm:$0xff]   ;;  %v2121_v7 = vld [vmem:[%s2788_s1 + $0x130] sm:$0xff]   ;;  %v2138_v42 = vld [vmem:[%s2788_s1 + $0x1a0] sm:$0xff]  }
  0x1c   : > { %1856 = vmatpush3.bf16.msra.mxu1 %v2095_v15  ;;  %1811 = vmatprep.subr.bf16.mxu0 %v2096_v16  ;;  %v280_v47 = vshll.u32 %v2355_v38, 16  ;;  %v354_v48 = vrot.slane %v2359_v41, 1  ;;  %v326_v50 = vrot.slane %v2355_v38, 1  ;;  %v353_v53 = vrot.slane %v2365_v46, 1  ;;  %v2124_v6 = vld [vmem:[%s2788_s1 + $0x1b8] sm:$0xff]   ;;  %v2127_v12 = vld [vmem:[%s2788_s1 + $0x1f0] sm:$0xff]  }
  0x1d   : > { %1857 = vmatprep.subr.bf16.mxu1 %v2097_v17  ;;  %v277_v52 = vrot.slane %v275_v44, 1  ;;  %v325_v55 = vrot.slane %v1691_v49, 1  ;;  %v284_v59 = vshrl.u32 %v2355_v38, 16  ;;  %v328_v3 = vrot.slane %v2362_v45, 1  ;;  %v2126_v15 = vld [vmem:[%s2788_s1 + $0x128] sm:$0xff]   ;;  %v2128_v16 = vld [vmem:[%s2788_s1 + $0x1b0] sm:$0xff]  }
  0x1e   : > { %v282_v54 = vrot.slane %v280_v47, 1  ;;  %v355_v57 = vsel %vm324_vm0, %v353_v53, %v354_v48  ;;  %v290_v5 = vrot.slane %v288_v62, 1  ;;  %v356_v8 = vrot.slane %v2386_v2, 1  ;;  %v215_v17 = vld [vmem:[%s2339_s6 + $0x1c] sm:$0xf] }
  0x1f   : > { %1812 = vmatpush3.bf16.msra.mxu0 %v2098_v18  ;;  %v278_v56 = vor.u32 %v277_v52, %v273_v43  ;;  %1265 = vmatprep.mubr.bf16.mxu1 %v355_v57  ;;  %v327_v60 = vsel %vm324_vm0, %v325_v55, %v326_v50  ;;  %v292_v13 = vshrl.u32 %v2362_v45, 16  ;;  %v329_v14 = vsel %vm324_vm0, %v326_v50, %v328_v3  ;;  %v2135_v32 = vld [vmem:[%s2788_s1 + $0x158] sm:$0xff]   ;;  %v217_v43 = vld [vmem:[%s2339_s6 + $0x24] sm:$0xf]  ;;  %v221_v44 = vld [vmem:[%s2339_s6 + $0x28] sm:$0xf] }
  0x20   : > { %1858 = vmatpush3.bf16.msra.mxu1 %v2099_v19  ;;  %1813 = vmatprep.subr.bf16.mxu0 %v2100_v20  ;;  %v286_v1 = vor.u32 %v284_v59, %v282_v54  ;;  %v357_v11 = vsel %vm324_vm0, %v354_v48, %v356_v8  ;;  %v2416_v18 = vcombine.low %v214_v63, %v215_v17  ;;  %v216_v19 = vld [vmem:[%s2339_s6 + $0x20] sm:$0xf]  ;;  %v436_v37 = vrot.slane %v2359_v41, 2  ;;  %v2137_v39 = vld [vmem:[%s2788_s1 + $0x118] sm:$0xff]  }
  0x21   : > { %1859 = vmatprep.subr.bf16.mxu1 %v2101_v21  ;;  %v283_v0 = vsel %vm271_vm1, %v278_v56, %v282_v54  ;;  %v2419_v20 = vcombine.low %v215_v17, %v216_v19  ;;  %v374_v21 = vshrl.u32 %v2365_v46, 16  ;;  %v2460_v47 = vcombine.low %v216_v19, %v217_v43  ;;  %v2141_v49 = vld [vmem:[%s2788_s1 + $0x1d8] sm:$0xff]  }
  0x22   : > { %1192 = vmatprep.mubr.bf16.mxu0 %v283_v0  ;;  %v291_v9 = vsel %vm271_vm1, %v286_v1, %v290_v5  ;;  %v300_v40 = vshrl.u32 %v2416_v18, 16  ;;  %v2462_v48 = vcombine.low %v217_v43, %v221_v44  ;;  %v382_v52 = vshrl.u32 %v2359_v41, 16  ;;  %v2143_v57 = vld [vmem:[%s2788_s1 + $0x198] sm:$0xff]   ;;  %v2146_v0 = vld [vmem:[%s2788_s1 + $0x190] sm:$0xff]  }
  0x23   : > { %1814 = vmatpush3.bf16.msra.mxu0 %v2102_v22  ;;  %v377_v22 = vshll.u32 %v2365_v46, 16  ;;  %v2458_v46 = vrot.slane %v374_v21, 1  ;;  %v304_v54 = vshll.u32 %v2460_v47, 16  ;;  %v332_v56 = vrot.slane %v2460_v47, 1 }
  0x24   : > { %1860 = vmatpush3.bf16.msra.mxu1 %v2103_v23  ;;  %1815 = vmatprep.subr.bf16.mxu0 %v2104_v24  ;;  %v294_v23 = vor.u32 %v292_v13, %v290_v5  ;;  %v296_v24 = vshll.u32 %v2416_v18, 16  ;;  %v360_v55 = vrot.slane %v2462_v48, 1  ;;  %v308_v62 = vshrl.u32 %v2460_v47, 16  ;;  %v2149_v5 = vld [vmem:[%s2339_s6 + $0x2c] ss:$0 sps:$4 sm:$0x11]  }
  0x25   : > { %1861 = vmatprep.subr.bf16.mxu1 %v2105_v25  ;;  %v2131_v25 = vld [vmem:[%s2788_s1 + $0x160] sm:$0xff]   ;;  %v2467_v50 = vrot.slane %v377_v22, 2  ;;  %v385_v1 = vshll.u32 %v2359_v41, 16  ;;  %v2152_v13 = vld [vmem:[%s2788_s1 + $0x188] sm:$0xff]   ;;  %v2161_v41 = vld [vmem:[%s2788_s1 + $0x230] sm:$0xff]  }
  0x26   : > { %v2155_v22 = vld [vmem:[%s2788_s1 + $0x1c0] sm:$0xff]  }
  0x27   : > { %1816 = vmatpush3.bf16.msra.mxu0 %v2106_v26  ;;  %v330_v26 = vrot.slane %v2416_v18, 1  ;;  %v387_v19 = vrot.slane %v385_v1, 2 }
  0x28   : > { %1862 = vmatpush3.bf16.msra.mxu1 %v2107_v27  ;;  %1817 = vmatprep.subr.bf16.mxu0 %v2108_v28  ;;  %v2133_v27 = vld [vmem:[%s2788_s1 + $0x1e8] sm:$0xff]   ;;  %v358_v28 = vrot.slane %v2419_v20, 1 }
  0x29   : > { %1863 = vmatprep.subr.bf16.mxu1 %v2109_v29  ;;  %v2132_v29 = vld [vmem:[%s2788_s1 + $0x120] sm:$0xff]   ;;  %v333_v63 = vsel %vm324_vm0, %v330_v26, %v332_v56 }
  0x2a   : > { %v359_v33 = vsel %vm324_vm0, %v356_v8, %v358_v28  ;;  %v361_v59 = vsel %vm324_vm0, %v358_v28, %v360_v55  ;;  %v2529_v28 = vld [vmem:[%s2339_s6 + $0xc] sm:$0xf] }
  0x2b   : > { %1818 = vmatpush3.bf16.msra.mxu0 %v2110_v30  ;;  %v2134_v30 = vld [vmem:[%s2788_s1 + $0x1a8] sm:$0xff]  }
  0x2c   : > { %1864 = vmatpush3.bf16.msra.mxu1 %v2111_v31  ;;  %1895 = vmatprep.subr.bf16.mxu0 %v2118_v51  ;;  %v298_v31 = vrot.slane %v296_v24, 1  ;;  %v2142_v51 = vld [vmem:[%s2788_s1 + $0x150] sm:$0xff]   ;;  %v2156_v24 = vld [vmem:[%s2788_s1 + $0x180] sm:$0xff]  }
  0x2d   : > { %1941 = vmatprep.subr.bf16.mxu1 %v2123_v4  ;;  %v2148_v4 = vld [vmem:[%s2339_s6 + $0x28] ss:$0 sps:$4 sm:$0x11]  }
  0x2e   : > { %1193 = vmatmul.mubr.bf16.vlgmr.msra.gmra.mxu0 %v1685_v36  ;;  %v299_v35 = vsel %vm271_vm1, %v294_v23, %v298_v31  ;;  %v2136_v36 = vld [vmem:[%s2788_s1 + $0x1e0] sm:$0xff]   ;;  %v302_v53 = vor.u32 %v300_v40, %v298_v31  ;;  %v312_v8 = vshll.u32 %v2148_v4, 16  ;;  %v438_v23 = vrot.slane %v2386_v2, 2  ;;  %v2534_v31 = vld [vmem:[%s2339_s6 + $0x10] sm:$0xff]  }
  0x2f   : > { %1266 = vmatmul.mubr.bf16.vlgmr.msra.gmra.mxu1 %v327_v60  ;;  %1896 = vmatpush3.bf16.msra.mxu0 %v2119_v58  ;;  %v306_v58 = vrot.slane %v304_v54, 1  ;;  %v2144_v60 = vld [vmem:[%s2788_s1 + $0x110] sm:$0xff]   ;;  %v508_v40 = vshrl.u32 %v2534_v31, 16  ;;  %v480_v44 = vrot.slane %v2534_v31, 2 }
  0x30   : > { %1942 = vmatpush3.bf16.msra.mxu1 %v2124_v6  ;;  %1897 = vmatprep.subr.bf16.mxu0 %v2120_v61  ;;  %v2145_v61 = vld [vmem:[%s2788_s1 + $0x1d0] sm:$0xff]   ;;  %v2150_v6 = vld [vmem:[%s2788_s1 + $0x108] sm:$0xff]  }
  0x31   : > { %1200 = vmatprep.mubr.bf16.mxu0 %v291_v9  ;;  %1273 = vmatprep.mubr.bf16.mxu1 %v357_v11  ;;  %v334_v9 = vrot.slane %v2148_v4, 1  ;;  %v2151_v11 = vld [vmem:[%s2788_s1 + $0x1c8] sm:$0xff]   ;;  %v440_v4 = vrot.slane %v2419_v20, 2 }
  0x32   : > { %1943 = vmatprep.subr.bf16.mxu1 %v2127_v12  ;;  %v314_v12 = vrot.slane %v312_v8, 1 }
  0x33   : > { %1898 = vmatpush3.bf16.msra.mxu0 %v2121_v7  ;;  %v310_v7 = vor.u32 %v308_v62, %v306_v58  ;;  %v335_v21 = vsel %vm324_vm0, %v332_v56, %v334_v9  ;;  %v2559_v62 = vld [vmem:[%s2339_s6 + $0x20] sm:$0xff]   ;;  %v400_v9 = vshrl.u32 %v2419_v20, 16 }
  0x34   : > { %1944 = vmatpush3.bf16.msra.mxu1 %v2128_v16  ;;  %1899 = vmatprep.subr.bf16.mxu0 %v2125_v10  ;;  %v362_v10 = vrot.slane %v2149_v5, 1  ;;  %v384_v16 = vrot.slane %v382_v52, 1  ;;  %v526_v5 = vshrl.u32 %v2559_v62, 16 }
  0x35   : > { %1945 = vmatprep.subr.bf16.mxu1 %v2133_v27  ;;  %v315_v17 = vsel %vm271_vm1, %v310_v7, %v314_v12  ;;  %v225_v27 = vld [vmem:[%s2339_s6 + $0x8] sm:$0xc] }
  0x36   : > { %1201 = vmatmul.mubr.bf16.gmra.mxu0 %v2355_v38  ;;  %v331_v38 = vsel %vm324_vm0, %v328_v3, %v330_v26  ;;  %v2147_v3 = vld [vmem:[%s2788_s1 + $0x148] sm:$0xff]   ;;  %v224_v26 = vld [vmem:[%s2339_s6 + $0x4] sm:$0xc] }
  0x37   : > { %1274 = vmatmul.mubr.bf16.gmra.mxu1 %v329_v14  ;;  %1900 = vmatpush3.bf16.msra.mxu0 %v2126_v15  ;;  %v363_v14 = vsel %vm324_vm0, %v360_v55, %v362_v10  ;;  %v2153_v15 = vld [vmem:[%s2788_s1 + $0x140] sm:$0xff]   ;;  %v2160_v55 = vld [vmem:[%s2788_s1 + $0x238] sm:$0xff]   ;;  %v2571_v7 = vld [vmem:[%s2339_s6 + $0x28] sm:$0xff]   ;;  %v403_v10 = vshll.u32 %v2419_v20, 16 }
  0x38   : > { %1946 = vmatpush3.bf16.msra.mxu1 %v2134_v30  ;;  %1281 = vmatprep.mubr.bf16.mxu1 %v359_v33  ;;  %v1700_v30 = vcombine.low %v225_v27, %v2529_v28  ;;  %v394_v33 = vshll.u32 %v2386_v2, 16  ;;  %v486_v20 = vrot.slane %v2571_v7, 2 }
  0x39   : > { %1901 = vmatprep.subr.bf16.mxu0 %v2131_v25  ;;  %1208 = vmatprep.mubr.bf16.mxu0 %v299_v35  ;;  %v391_v25 = vshrl.u32 %v2386_v2, 16  ;;  %v380_v35 = vor.u32 %v2467_v50, %v2458_v46  ;;  %v412_v2 = vshll.u32 %v2462_v48, 16 }
  0x3a   : > { %1947 = vmatprep.subr.bf16.mxu1 %v2136_v36  ;;  %v388_v36 = vor.u32 %v387_v19, %v384_v16  ;;  %v479_v43 = vrot.slane %v1700_v30, 2  ;;  %v396_v56 = vrot.slane %v394_v33, 2  ;;  %v535_v16 = vshrl.u32 %v2571_v7, 16  ;;  %v2165_v33 = vld [vmem:[%s2788_s1 + $0x220] sm:$0xff]  }
  0x3b   : > { %1902 = vmatpush3.bf16.msra.mxu0 %v2132_v29  ;;  %v1699_v29 = vcombine.low %v224_v26, %v2350_v34  ;;  %v402_v19 = vrot.slane %v400_v9, 1 }
  0x3c   : > { %1903 = vmatprep.subr.bf16.mxu0 %v2135_v32  ;;  %1948 = vmatpush3.bf16.msra.mxu1 %v2138_v42  ;;  %v2199_v32 = vmov 0.0   ;;  %v511_v42 = vshll.u32 %v2534_v31, 16 }
  0x3d   : > { %1949 = vmatprep.subr.bf16.mxu1 %v2141_v49  ;;  %v435_v34 = vrot.slane %v1699_v29, 2  ;;  %v393_v49 = vrot.slane %v391_v25, 1  ;;  %v441_v25 = vsel %vm434_vm2, %v438_v23, %v440_v4  ;;  %v2597_v29 = vld [vmem:[%s2339_s6 + $0x30] ss:$0 sps:$4 sm:$0x77]  }
  0x3e   : > { %1209 = vmatmul.mubr.bf16.gmra.mxu0 %v2362_v45  ;;  %v307_v45 = vsel %vm271_vm1, %v302_v53, %v306_v58  ;;  %v513_v52 = vrot.slane %v511_v42, 3  ;;  %v2549_v53 = vld [vmem:[%s2339_s6 + $0x18] sm:$0xff]   ;;  %v389_v58 = vsel %vm372_vm4, %v380_v35, %v388_v36  ;;  %v409_v35 = vshrl.u32 %v2462_v48, 16 }
  0x3f   : > { %1282 = vmatmul.mubr.bf16.gmra.mxu1 %v331_v38  ;;  %1904 = vmatpush3.bf16.msra.mxu0 %v2137_v39  ;;  %v500_v38 = vshrl.u32 %v1700_v30, 16  ;;  %v503_v39 = vshll.u32 %v1700_v30, 16  ;;  %v437_v46 = vsel %vm434_vm2, %v435_v34, %v436_v37  ;;  %v482_v8 = vrot.slane %v2549_v53, 2  ;;  %v2166_v42 = vld [vmem:[%s2788_s1 + $0x218] sm:$0xff]  }
  0x40   : > { %1289 = vmatprep.mubr.bf16.mxu1 %v361_v59  ;;  %1905 = vmatprep.subr.bf16.mxu0 %v2142_v51  ;;  %v510_v51 = vrot.slane %v508_v40, 2  ;;  %v517_v59 = vshrl.u32 %v2549_v53, 16 }
  0x41   : > { %1950 = vmatpush3.bf16.msra.mxu1 %v2143_v57  ;;  %1216 = vmatprep.mubr.bf16.mxu0 %v307_v45  ;;  %v505_v50 = vrot.slane %v503_v39, 3  ;;  %v547_v39 = vshll.u32 %v2597_v29, 16 }
  0x42   : > { %1951 = vmatprep.subr.bf16.mxu1 %v2145_v61  ;;  %v514_v57 = vor.u32 %v513_v52, %v510_v51  ;;  %v481_v61 = vsel %vm434_vm2, %v479_v43, %v480_v44  ;;  %v411_v43 = vrot.slane %v409_v35, 1 }
  0x43   : > { %1906 = vmatpush3.bf16.msra.mxu0 %v2144_v60  ;;  %v520_v60 = vshll.u32 %v2549_v53, 16  ;;  %v549_v51 = vrot.slane %v547_v39, 3 }
  0x44   : > { %1907 = vmatprep.subr.bf16.mxu0 %v2147_v3  ;;  %v397_v3 = vor.u32 %v396_v56, %v393_v49  ;;  %v2169_v49 = vld [vmem:[%s2339_s6 + $0x2c] ss:$0 sps:$4 sm:$0x33]  }
  0x45   : > { %1952 = vmatpush3.bf16.msra.mxu1 %v2146_v0  ;;  %v519_v0 = vrot.slane %v517_v59, 2  ;;  %v522_v1 = vrot.slane %v520_v60, 3  ;;  %v421_v56 = vshll.u32 %v2169_v49, 16 }
  0x46   : > { %1217 = vmatmul.mubr.bf16.gmra.mxu0 %v2416_v18  ;;  %1953 = vmatprep.subr.bf16.mxu1 %v2151_v11  ;;  %v2154_v18 = vld [vmem:[%s2788_s1 + $0x100] sm:$0xff]   ;;  %v528_v11 = vrot.slane %v526_v5, 2 }
  0x47   : > { %1290 = vmatmul.mubr.bf16.gmra.mxu1 %v333_v63  ;;  %1908 = vmatpush3.bf16.msra.mxu0 %v2150_v6  ;;  %v439_v63 = vsel %vm434_vm2, %v436_v37, %v438_v23  ;;  %v529_v6 = vshll.u32 %v2559_v62, 16  ;;  %v523_v37 = vor.u32 %v522_v1, %v519_v0  ;;  %v484_v23 = vrot.slane %v2559_v62, 2  ;;  %v2171_v0 = vld [vmem:[%s2788_s1 + $0x208] sm:$0xff]   ;;  %v2172_v1 = vld [vmem:[%s2339_s6 + $0x30] ss:$0 sps:$4 sm:$0x33]  }
  0x48   : > { %1297 = vmatprep.mubr.bf16.mxu1 %v363_v14  ;;  %1224 = vmatprep.mubr.bf16.mxu0 %v315_v17  ;;  %v2163_v14 = vld [vmem:[%s2788_s1 + $0x228] sm:$0xff]   ;;  %v538_v17 = vshll.u32 %v2571_v7, 16  ;;  %v488_v5 = vrot.slane %v2172_v1, 2 }
  0x49   : > { %1954 = vmatpush3.bf16.msra.mxu1 %v2152_v13  ;;  %1909 = vmatprep.subr.bf16.mxu0 %v2153_v15  ;;  %v531_v12 = vrot.slane %v529_v6, 3  ;;  %v524_v13 = vsel %vm498_vm3, %v514_v57, %v523_v37  ;;  %v2173_v6 = vld [vmem:[%s2788_s1 + $0x200] sm:$0xff]  }
  0x4a   : > { %1955 = vmatprep.subr.bf16.mxu1 %v2155_v22  ;;  %v483_v22 = vsel %vm434_vm2, %v480_v44, %v482_v8  ;;  %v540_v27 = vrot.slane %v538_v17, 3  ;;  %v414_v44 = vrot.slane %v412_v2, 2  ;;  %v489_v9 = vsel %vm434_vm2, %v486_v20, %v488_v5 }
  0x4b   : > { %1910 = vmatpush3.bf16.msra.mxu0 %v2154_v18  ;;  %v532_v15 = vor.u32 %v531_v12, %v528_v11  ;;  %v398_v18 = vsel %vm372_vm4, %v388_v36, %v397_v3  ;;  %v442_v36 = vrot.slane %v2462_v48, 2  ;;  %v562_v11 = vrot.slane %v2534_v31, 3 }
  0x4c   : > { %2000 = vmatprep.subr.bf16.mxu0 %v2199_v32  ;;  %v415_v52 = vor.u32 %v414_v44, %v411_v43  ;;  %v566_v12 = vrot.slane %v2559_v62, 3  ;;  %v570_v31 = vrot.slane %v2597_v29, 3 }
  0x4d   : > { %1956 = vmatpush3.bf16.msra.mxu1 %v2156_v24  ;;  %v537_v24 = vrot.slane %v535_v16, 2  ;;  %v533_v26 = vsel %vm498_vm3, %v523_v37, %v532_v15  ;;  %v443_v48 = vsel %vm434_vm2, %v440_v4, %v442_v36 }
  0x4e   : > { %1225 = vmatmul.mubr.bf16.gmra.mxu0 %v2460_v47  ;;  %2036 = vmatprep.subr.bf16.mxu1 %v2199_v32  ;;  %v502_v47 = vrot.slane %v500_v38, 2  ;;  %v544_v38 = vshrl.u32 %v2597_v29, 16 }
  0x4f   : > { %1298 = vmatmul.mubr.bf16.gmra.mxu1 %v335_v21  ;;  %1338 = vmatprep.mubr.bf16.mxu0 %v437_v46  ;;  %v405_v21 = vrot.slane %v403_v10, 2  ;;  %v541_v34 = vor.u32 %v540_v27, %v537_v24  ;;  %v485_v46 = vsel %vm434_vm2, %v482_v8, %v484_v23 }
  0x50   : > { %v506_v54 = vor.u32 %v505_v50, %v502_v47  ;;  %v546_v50 = vrot.slane %v544_v38, 2 }
  0x51   : > { %v406_v30 = vor.u32 %v405_v21, %v402_v19  ;;  %v542_v47 = vsel %vm498_vm3, %v532_v15, %v541_v34  ;;  %v564_v15 = vrot.slane %v2549_v53, 3  ;;  %v2671_v21 = vld [vmem:[%s2789_s2] ss:$0 sm:$0xff] }
  0x52   : > { %v515_v45 = vsel %vm498_vm3, %v506_v54, %v514_v57  ;;  %v2168_v54 = vld [vmem:[%s2788_s1 + $0x210] sm:$0xff]   ;;  %v444_v57 = vrot.slane %v2169_v49, 2 }
  0x53   : > { %1411 = vmatprep.mubr.bf16.mxu1 %v515_v45  ;;  %v407_v40 = vsel %vm372_vm4, %v397_v3, %v406_v30  ;;  %v416_v59 = vsel %vm372_vm4, %v406_v30, %v415_v52  ;;  %v487_v45 = vsel %vm434_vm2, %v484_v23, %v486_v20  ;;  %v565_v62 = vsel %vm560_vm6, %v562_v11, %v564_v15 }
  0x54   : > { %v567_v16 = vsel %vm560_vm6, %v564_v15, %v566_v12 }
  0x56   : > { %1339 = vmatmul.mubr.bf16.vlgmr.msra.gmra.mxu0 %v389_v58  ;;  %v550_v58 = vor.u32 %v549_v51, %v546_v50 }
  0x57   : > { %1412 = vmatmul.mubr.bf16.vlgmr.msra.gmra.mxu1 %v481_v61  ;;  %2001 = vmatpush3.bf16.msra.mxu0 %v2160_v55  ;;  %v423_v61 = vrot.slane %v421_v56, 2 }
  0x58   : > { %2002 = vmatprep.subr.bf16.mxu0 %v2199_v32  ;;  %1346 = vmatprep.mubr.bf16.mxu0 %v439_v63  ;;  %v445_v63 = vsel %vm434_vm2, %v442_v36, %v444_v57  ;;  %v551_v3 = vsel %vm498_vm3, %v541_v34, %v550_v58 }
  0x59   : > { %2044 = vmatpush3.bf16.msra.mxu1 %v2160_v55  ;;  %1419 = vmatprep.mubr.bf16.mxu1 %v524_v13  ;;  %v418_v55 = vshrl.u32 %v2169_v49, 16 }
  0x5a   : > { %2037 = vmatprep.subr.bf16.mxu1 %v2199_v32 }
  0x5b   : > { %2003 = vmatpush3.bf16.msra.mxu0 %v2161_v41  ;;  %v420_v60 = vrot.slane %v418_v55, 1 }
  0x5c   : > { %2004 = vmatprep.subr.bf16.mxu0 %v2199_v32 }
  0x5d   : > { %2045 = vmatpush3.bf16.msra.mxu1 %v2161_v41  ;;  %v424_v4 = vor.u32 %v423_v61, %v420_v60  ;;  %v237_v41 = vld [vmem:[%s2339_s6 + $0x8] sm:$0x8] }
  0x5e   : > { %1347 = vmatmul.mubr.bf16.gmra.mxu0 %v398_v18  ;;  %2038 = vmatprep.subr.bf16.mxu1 %v2199_v32  ;;  %v1707_v8 = vcombine.low %v237_v41, %v2529_v28  ;;  %v568_v28 = vrot.slane %v2571_v7, 3 }
  0x5f   : > { %1420 = vmatmul.mubr.bf16.gmra.mxu1 %v483_v22  ;;  %2005 = vmatpush3.bf16.msra.mxu0 %v2163_v14  ;;  %v425_v37 = vsel %vm372_vm4, %v415_v52, %v424_v4 }
  0x60   : > { %1354 = vmatprep.mubr.bf16.mxu0 %v441_v25  ;;  %1427 = vmatprep.mubr.bf16.mxu1 %v533_v26  ;;  %v561_v10 = vrot.slane %v1707_v8, 3  ;;  %v571_v7 = vsel %vm560_vm6, %v568_v28, %v570_v31 }
  0x61   : > { %2006 = vmatprep.subr.bf16.mxu0 %v2199_v32  ;;  %2046 = vmatpush3.bf16.msra.mxu1 %v2163_v14  ;;  %v569_v14 = vsel %vm560_vm6, %v566_v12, %v568_v28 }
  0x62   : > { %2039 = vmatprep.subr.bf16.mxu1 %v2199_v32  ;;  %v563_v13 = vsel %vm560_vm6, %v561_v10, %v562_v11 }
  0x63   : > { %2007 = vmatpush3.bf16.msra.mxu0 %v2165_v33 }
  0x64   : > { %2008 = vmatprep.subr.bf16.mxu0 %v2199_v32 }
  0x65   : > { %2047 = vmatpush3.bf16.msra.mxu1 %v2165_v33 }
  0x66   : > { %1355 = vmatmul.mubr.bf16.gmra.mxu0 %v407_v40  ;;  %2040 = vmatprep.subr.bf16.mxu1 %v2199_v32 }
  0x67   : > { %1428 = vmatmul.mubr.bf16.gmra.mxu1 %v485_v46  ;;  %2009 = vmatpush3.bf16.msra.mxu0 %v2166_v42 }
  0x68   : > { %1362 = vmatprep.mubr.bf16.mxu0 %v443_v48  ;;  %1435 = vmatprep.mubr.bf16.mxu1 %v542_v47 }
  0x69   : > { %2048 = vmatpush3.bf16.msra.mxu1 %v2166_v42  ;;  %2010 = vmatprep.subr.bf16.mxu0 %v2199_v32 }
  0x6a   : > { %2041 = vmatprep.subr.bf16.mxu1 %v2199_v32 }
  0x6b   : > { %2011 = vmatpush3.bf16.msra.mxu0 %v2168_v54 }
  0x6c   : > { %2012 = vmatprep.subr.bf16.mxu0 %v2199_v32 }
  0x6d   : > { %2049 = vmatpush3.bf16.msra.mxu1 %v2168_v54 }
  0x6e   : > { %1363 = vmatmul.mubr.bf16.gmra.mxu0 %v416_v59  ;;  %2042 = vmatprep.subr.bf16.mxu1 %v2199_v32 }
  0x6f   : > { %1436 = vmatmul.mubr.bf16.gmra.mxu1 %v487_v45  ;;  %1370 = vmatprep.mubr.bf16.mxu0 %v445_v63 }
  0x70   : > { %1443 = vmatprep.mubr.bf16.mxu1 %v551_v3  ;;  %2013 = vmatpush3.bf16.msra.mxu0 %v2171_v0 }
  0x71   : > { %2050 = vmatpush3.bf16.msra.mxu1 %v2171_v0  ;;  %2014 = vmatprep.subr.bf16.mxu0 %v2199_v32 }
  0x72   : > { %2043 = vmatprep.subr.bf16.mxu1 %v2199_v32 }
  0x74   : > { %2015 = vmatpush3.bf16.msra.mxu0 %v2173_v6 }
  0x75   : > { %2051 = vmatpush3.bf16.msra.mxu1 %v2173_v6 }
  0x76   : > { %1371 = vmatmul.mubr.bf16.gmra.mxu0 %v425_v37 }
  0x77   : > { %1444 = vmatmul.mubr.bf16.gmra.mxu1 %v489_v9  ;;  %2016 = vmatprep.mubr.msk.bf16.mxu0 %vm2200_vm5, %v2199_v32 }
  0x78   : > { %2028 = vmatprep.mubr.msk.bf16.mxu1 %vm2200_vm5, %v2199_v32 }
  0x7e   : > { %2017 = vmatmul.mubr.bf16.vlgmr.msra.gmra.mxu0 %v563_v13 }
  0x7f   : > { %2029 = vmatmul.mubr.bf16.vlgmr.msra.gmra.mxu1 %v569_v14  ;;  %2020 = vmatprep.mubr.msk.bf16.mxu0 %vm2200_vm5, %v2199_v32 }
  0x80   : > { %2032 = vmatprep.mubr.msk.bf16.mxu1 %vm2200_vm5, %v2199_v32 }
  0x86   : > { %2021 = vmatmul.mubr.bf16.gmra.mxu0 %v565_v62 }
  0x87   : > { %2033 = vmatmul.mubr.bf16.gmra.mxu1 %v571_v7  ;;  %2024 = vmatprep.mubr.msk.bf16.mxu0 %vm2200_vm5, %v2199_v32 }
  0x8e   : > { %2025 = vmatmul.mubr.bf16.gmra.mxu0 %v567_v16 }
  0xee   : > { %v1819_v18 = vpop.f32.mrf.mxu0 }
  0xef   : > { %v1865_v17 = vpop.f32.mrf.mxu1 }
  0xf0   : > { %v1820_v22 = vpop.f32.mrf.mxu0 }
  0xf1   : > { %v1866_v53 = vpop.f32.mrf.mxu1  ;;  %v1821_v25 = vadd.f32 %v1820_v22, %v1819_v18 }
  0xf2   : > { %v1867_v19 = vadd.f32 %v1866_v53, %v1865_v17  ;;  %v1822_v26 = vpop.f32.mrf.mxu0 }
  0xf3   : > { %v1868_v24 = vpop.f32.mrf.mxu1  ;;  %v1195_v29 = vadd.f32 %v1821_v25, %v2671_v21 }
  0xf4   : > { %v1823_v30 = vpop.f32.mrf.mxu0 }
  0xf5   : > { %v1869_v27 = vpop.f32.mrf.mxu1  ;;  %v2674_v35 = vadd.f32 %v1867_v19, %v1195_v29  ;;  %v1824_v2 = vadd.f32 %v1823_v30, %v1822_v26 }
  0xf6   : > { %v1870_v32 = vadd.f32 %v1869_v27, %v1868_v24  ;;  %v1825_v23 = vpop.f32.mrf.mxu0 }
  0xf7   : > { %v1871_v33 = vpop.f32.mrf.mxu1  ;;  %v1198_v34 = vadd.f32 %v1824_v2, %v2671_v21 }
  0xf8   : > { %v1826_v39 = vpop.f32.mrf.mxu0 }
  0xf9   : > { %v1872_v36 = vpop.f32.mrf.mxu1  ;;  %v2677_v42 = vadd.f32 %v1870_v32, %v1198_v34  ;;  %v1827_v43 = vadd.f32 %v1826_v39, %v1825_v23 }
  0xfa   : > { %v1873_v38 = vadd.f32 %v1872_v36, %v1871_v33  ;;  %v1828_v44 = vpop.f32.mrf.mxu0 }
  0xfb   : > { %v1874_v40 = vpop.f32.mrf.mxu1  ;;  %v1203_v46 = vadd.f32 %v1827_v43, %v2671_v21 }
  0xfc   : > { %v1829_v47 = vpop.f32.mrf.mxu0 }
  0xfd   : > { %v1875_v49 = vpop.f32.mrf.mxu1  ;;  %v2680_v51 = vadd.f32 %v1873_v38, %v1203_v46  ;;  %v1830_v52 = vadd.f32 %v1829_v47, %v1828_v44 }
  0xfe   : > { %v1876_v48 = vadd.f32 %v1875_v49, %v1874_v40  ;;  %v1831_v54 = vpop.f32.mrf.mxu0 }
  0xff   : > { %v1877_v50 = vpop.f32.mrf.mxu1  ;;  %v1206_v56 = vadd.f32 %v1830_v52, %v2671_v21 }
 0x100   : > { %v1832_v57 = vpop.f32.mrf.mxu0 }
 0x101   : > { %v1878_v55 = vpop.f32.mrf.mxu1  ;;  %v2683_v59 = vadd.f32 %v1876_v48, %v1206_v56  ;;  %v1833_v60 = vadd.f32 %v1832_v57, %v1831_v54 }
 0x102   : > { %v1879_v20 = vadd.f32 %v1878_v55, %v1877_v50  ;;  %v1834_v61 = vpop.f32.mrf.mxu0 }
 0x103   : > { %v1880_v58 = vpop.f32.mrf.mxu1  ;;  %v1211_v63 = vadd.f32 %v1833_v60, %v2671_v21 }
 0x104   : > { %v1835_v1 = vpop.f32.mrf.mxu0 }
 0x105   : > { %v1881_v45 = vpop.f32.mrf.mxu1  ;;  %v2686_v4 = vadd.f32 %v1879_v20, %v1211_v63  ;;  %v1836_v5 = vadd.f32 %v1835_v1, %v1834_v61 }
 0x106   : > { %v1882_v0 = vadd.f32 %v1881_v45, %v1880_v58  ;;  %v1837_v6 = vpop.f32.mrf.mxu0 }
 0x107   : > { %v1883_v3 = vpop.f32.mrf.mxu1  ;;  %v1214_v37 = vadd.f32 %v1836_v5, %v2671_v21 }
 0x108   : > { %v1838_v8 = vpop.f32.mrf.mxu0 }
 0x109   : > { %v1884_v41 = vpop.f32.mrf.mxu1  ;;  %v2689_v10 = vadd.f32 %v1882_v0, %v1214_v37  ;;  %v1839_v52 = vadd.f32 %v1838_v8, %v1837_v6 }
 0x10a   : > { %v1840_v11 = vpop.f32.mrf.mxu0  ;;  %v1885_v60 = vadd.f32 %v1884_v41, %v1883_v3 }
 0x10b   : > { %v1886_v9 = vpop.f32.mrf.mxu1  ;;  %2791 = vst [vmem:[#allocation2_spill] sm:$0xff] %v2689_v10  ;;  %v1219_v58 = vadd.f32 %v1839_v52, %v2671_v21 }
 0x10c   : > { %v1841_v28 = vpop.f32.mrf.mxu0 }
 0x10d   : > { %v1887_v12 = vpop.f32.mrf.mxu1  ;;  %v1842_v20 = vadd.f32 %v1841_v28, %v1840_v11 }
 0x10e   : > { %v1843_v14 = vpop.f32.mrf.mxu0  ;;  %v1888_v37 = vadd.f32 %v1887_v12, %v1886_v9 }
 0x10f   : > { %v2691_v13 = vpop.f32.mrf.mxu1  ;;  %v1222_v5 = vadd.f32 %v1842_v20, %v2671_v21 }
 0x110   : > { %v1844_v31 = vpop.f32.mrf.mxu0 }
 0x111   : > { %v2693_v15 = vpop.f32.mrf.mxu1  ;;  %v1845_v10 = vadd.f32 %v1844_v31, %v1843_v14 }
 0x112   : > { %v1846_v7 = vpop.f32.mrf.mxu0  ;;  %v1891_v9 = vadd.f32 %v2693_v15, %v2691_v13 }
 0x113   : > { %v2695_v62 = vpop.f32.mrf.mxu1 }
 0x114   : > { %v1847_v17 = vpop.f32.mrf.mxu0 }
 0x115   : > { %v2697_v16 = vpop.f32.mrf.mxu1 }
 0x116   : > { %v1911_v18 = vpop.f32.mrf.mxu0 }
 0x117   : > { %v1957_v53 = vpop.f32.mrf.mxu1 }
 0x118   : > { %v1912_v19 = vpop.f32.mrf.mxu0 }
 0x119   : > { %v1958_v22 = vpop.f32.mrf.mxu1  ;;  %v1913_v45 = vadd.f32 %v1912_v19, %v1911_v18  ;;  %v1295_v18 = vadd.f32 %v1888_v37, %v1222_v5  ;;  %v1848_v19 = vadd.f32 %v1847_v17, %v1846_v7 }
 0x11a   : > { %v1914_v24 = vpop.f32.mrf.mxu0  ;;  %v1959_v11 = vadd.f32 %v1958_v22, %v1957_v53 }
 0x11b   : > { %v1960_v25 = vpop.f32.mrf.mxu1  ;;  %v1230_v7 = vadd.f32 %v1848_v19, %v2671_v21 }
 0x11c   : > { %v1915_v26 = vpop.f32.mrf.mxu0 }
 0x11d   : > { %v1961_v27 = vpop.f32.mrf.mxu1  ;;  %v1916_v6 = vadd.f32 %v1915_v26, %v1914_v24 }
 0x11e   : > { %v1917_v29 = vpop.f32.mrf.mxu0  ;;  %v1962_v14 = vadd.f32 %v1961_v27, %v1960_v25 }
 0x11f   : > { %v2699_v32 = vpop.f32.mrf.mxu1  ;;  %v1344_v12 = vadd.f32 %v1916_v6, %v2677_v42 }
 0x120   : > { %v1918_v30 = vpop.f32.mrf.mxu0 }
 0x121   : > { %v2701_v33 = vpop.f32.mrf.mxu1 }
 0x122   : > { %v2703_v2 = vpop.f32.mrf.mxu0 }
 0x123   : > { %v2705_v23 = vpop.f32.mrf.mxu1 }
 0x124   : > { %v1921_v36 = vpop.f32.mrf.mxu0 }
 0x125   : > { %v2707_v34 = vpop.f32.mrf.mxu1  ;;  %v1922_v15 = vadd.f32 %v1921_v36, %v2703_v2 }
 0x126   : > { %v2709_v38 = vpop.f32.mrf.mxu0 }
 0x127   : > { %v2711_v39 = vpop.f32.mrf.mxu1 }
 0x128   : > { %v2713_v40 = vpop.f32.mrf.mxu0 }
 0x129   : > { %v2715_v43 = vpop.f32.mrf.mxu1 }
 0x12a   : > { %v2717_v44 = vpop.f32.mrf.mxu0 }
 0x12b   : > { %2792 = vst [vmem:[#allocation3_spill] sm:$0xff] %v2717_v44  ;;  %v2719_v49 = vpop.f32.mrf.mxu1 }
 0x12c   : > { %2793 = vst [vmem:[#allocation4_spill] sm:$0xff] %v2719_v49  ;;  %v2721_v46 = vpop.f32.mrf.mxu0  ;;  %v1292_v49 = vadd.f32 %v1885_v60, %v1219_v58 }
 0x12d   : > { %2794 = vst [vmem:[#allocation5_spill] sm:$0xff] %v2721_v46  ;;  %v2723_v48 = vpop.f32.mrf.mxu1  ;;  %v1341_v46 = vadd.f32 %v1913_v45, %v2674_v35  ;;  %v1919_v35 = vadd.f32 %v1918_v30, %v1917_v29  ;;  %v1417_v29 = vadd.f32 %v1962_v14, %v1344_v12 }
 0x12e   : > { %2795 = vst [vmem:[#allocation6_spill] sm:$0xff] %v2723_v48  ;;  %v1929_v47 = vpop.f32.mrf.mxu0 }
 0x12f   : > { %v1975_v50 = vpop.f32.mrf.mxu1  ;;  %v1414_v26 = vadd.f32 %v1959_v11, %v1341_v46  ;;  %v1349_v30 = vadd.f32 %v1919_v35, %v2680_v51  ;;  %v1965_v46 = vadd.f32 %v2701_v33, %v2699_v32  ;;  %v1352_v32 = vadd.f32 %v1922_v15, %v2683_v59 }
 0x130   : > { %v1930_v54 = vpop.f32.mrf.mxu0  ;;  %v1968_v33 = vadd.f32 %v2707_v34, %v2705_v23 }
 0x131   : > { %v1976_v55 = vpop.f32.mrf.mxu1  ;;  %v1931_v0 = vadd.f32 %v1930_v54, %v1929_v47  ;;  %v1227_v54 = vadd.f32 %v1845_v10, %v2671_v21  ;;  %v1894_v10 = vadd.f32 %v2697_v16, %v2695_v62  ;;  %v1422_v5 = vadd.f32 %v1965_v46, %v1349_v30 }
 0x132   : > { %v1932_v56 = vpop.f32.mrf.mxu0  ;;  %v1977_v3 = vadd.f32 %v1976_v55, %v1975_v50  ;;  %v2796_v19 = vld [vmem:[#allocation3_spill] sm:$0xff] }
 0x133   : > { %v1978_v57 = vpop.f32.mrf.mxu1  ;;  %v1365_v52 = vadd.f32 %v1931_v0, %v1292_v49  ;;  %v1300_v42 = vadd.f32 %v1891_v9, %v1227_v54  ;;  %v1303_v36 = vadd.f32 %v1894_v10, %v1230_v7 }
 0x134   : > { %v1933_v61 = vpop.f32.mrf.mxu0 }
 0x135   : > { %v1979_v63 = vpop.f32.mrf.mxu1  ;;  %v1934_v28 = vadd.f32 %v1933_v61, %v1932_v56  ;;  %v1438_v55 = vadd.f32 %v1977_v3, %v1365_v52 }
 0x136   : > { %v1935_v1 = vpop.f32.mrf.mxu0  ;;  %v1980_v22 = vadd.f32 %v1979_v63, %v1978_v57  ;;  %v1925_v63 = vadd.f32 %v2713_v40, %v2709_v38  ;;  %v1425_v40 = vadd.f32 %v1968_v33, %v1352_v32 }
 0x137   : > { %v1981_v48 = vpop.f32.mrf.mxu1  ;;  %v1368_v53 = vadd.f32 %v1934_v28, %v1295_v18  ;;  %v1971_v18 = vadd.f32 %v2715_v43, %v2711_v39 }
 0x138   : > { %v1936_v8 = vpop.f32.mrf.mxu0 }
 0x139   : > { %v1982_v44 = vpop.f32.mrf.mxu1  ;;  %v1937_v49 = vadd.f32 %v1936_v8, %v1935_v1  ;;  %v1441_v21 = vadd.f32 %v1980_v22, %v1368_v53 }
 0x13a   : > { %v1938_v41 = vpop.f32.mrf.mxu0  ;;  %v1983_v58 = vadd.f32 %v1982_v44, %v1981_v48 }
 0x13b   : > { %v1984_v47 = vpop.f32.mrf.mxu1  ;;  %v1373_v57 = vadd.f32 %v1937_v49, %v1300_v42 }
 0x13c   : > { %v1939_v31 = vpop.f32.mrf.mxu0 }
 0x13d   : > { %v1985_v24 = vpop.f32.mrf.mxu1  ;;  %v1940_v62 = vadd.f32 %v1939_v31, %v1938_v41  ;;  %v1446_v23 = vadd.f32 %v1983_v58, %v1373_v57  ;;  %v1357_v41 = vadd.f32 %v1925_v63, %v2686_v4 }
 0x13e   : > { %v1486_v50 = vpop.f32.mrf.mxu0  ;;  %v1986_v6 = vadd.f32 %v1985_v24, %v1984_v47  ;;  %v2797_v47 = vld [vmem:[#allocation5_spill] sm:$0xff] }
 0x13f   : > { %v1487_v17 = vadd.f32 %v1486_v50, %v1414_v26  ;;  %v1510_v13 = vpop.f32.mrf.mxu1  ;;  %v1376_v37 = vadd.f32 %v1940_v62, %v1303_v36  ;;  %v1928_v54 = vadd.f32 %v2797_v47, %v2796_v19  ;;  %v2798_v26 = vld [vmem:[#allocation2_spill] sm:$0xff]  ;;  %v2799_v50 = vld [vmem:[#allocation4_spill] sm:$0xff] }
 0x140   : > { %v1511_v25 = vadd.f32 %v1510_v13, %v1438_v55  ;;  %v2018_v27 = vpop.f32.mrf.mxu0  ;;  %v2800_v55 = vld [vmem:[#allocation6_spill] sm:$0xff] }
 0x141   : > { %v1525_v56 = vmax.f32 %v1487_v17, 0.0  ;;  %v2030_v20 = vpop.f32.mrf.mxu1  ;;  %v1449_v35 = vadd.f32 %v1986_v6, %v1376_v37  ;;  %v1360_v49 = vadd.f32 %v1928_v54, %v2798_v26  ;;  %v1974_v7 = vadd.f32 %v2800_v55, %v2799_v50 }
 0x142   : > { %v1531_v16 = vmax.f32 %v1511_v25, 0.0  ;;  %v1489_v2 = vpop.f32.mrf.mxu0  ;;  %v1430_v17 = vadd.f32 %v1971_v18, %v1357_v41 }
 0x143   : > { %v1793_v51 = vpack.c.bf16 %v1525_v56, %v1525_v56  ;;  %v1490_v60 = vadd.f32 %v1489_v2, %v1417_v29  ;;  %v1513_v61 = vpop.f32.mrf.mxu1  ;;  %v1433_v56 = vadd.f32 %v1974_v7, %v1360_v49 }
 0x144   : > { %v1799_v44 = vpack.c.bf16 %v1531_v16, %v1531_v16  ;;  %v1514_v48 = vadd.f32 %v1513_v61, %v1441_v21  ;;  %v2019_v45 = vpop.f32.mrf.mxu0 }
 0x145   : > { %1576 = vst.msk [vmem:[%s2743_s5] sm:$0xf] %vm1575_vm7, %v1793_v51  ;;  %v1526_v0 = vmax.f32 %v1490_v60, 0.0  ;;  %v2031_v1 = vpop.f32.mrf.mxu1 }
 0x146   : > { %1582 = vst.msk [vmem:[%s2743_s5 + $0x18] sm:$0xf] %vm1575_vm7, %v1799_v44  ;;  %v1532_v59 = vmax.f32 %v1514_v48, 0.0  ;;  %v1494_v8 = vpop.f32.mrf.mxu0 }
 0x147   : > { %v1794_v34 = vpack.c.bf16 %v1526_v0, %v1526_v0  ;;  %v1495_v11 = vadd.f32 %v1494_v8, %v1422_v5  ;;  %v1518_v28 = vpop.f32.mrf.mxu1 }
 0x148   : > { %v1800_v52 = vpack.c.bf16 %v1532_v59, %v1532_v59  ;;  %v1519_v3 = vadd.f32 %v1518_v28, %v1446_v23  ;;  %v2022_v38 = vpop.f32.mrf.mxu0 }
 0x149   : > { %1577 = vst.msk [vmem:[%s2743_s5 + $0x4] sm:$0xf] %vm1575_vm7, %v1794_v34  ;;  %v1527_v9 = vmax.f32 %v1495_v11, 0.0  ;;  %v2034_v12 = vpop.f32.mrf.mxu1 }
 0x14a   : > { %1583 = vst.msk [vmem:[%s2743_s5 + $0x1c] sm:$0xf] %vm1575_vm7, %v1800_v52  ;;  %v1533_v14 = vmax.f32 %v1519_v3, 0.0  ;;  %v1497_v31 = vpop.f32.mrf.mxu0 }
 0x14b   : > { %v1795_v53 = vpack.c.bf16 %v1527_v9, %v1527_v9  ;;  %v1498_v22 = vadd.f32 %v1497_v31, %v1425_v40  ;;  %v1521_v4 = vpop.f32.mrf.mxu1 }
 0x14c   : > { %v1801_v24 = vpack.c.bf16 %v1533_v14, %v1533_v14  ;;  %v1522_v39 = vadd.f32 %v1521_v4, %v1449_v35  ;;  %v2023_v43 = vpop.f32.mrf.mxu0 }
 0x14d   : > { %1578 = vst.msk [vmem:[%s2743_s5 + $0x8] sm:$0xf] %vm1575_vm7, %v1795_v53  ;;  %v1528_v10 = vmax.f32 %v1498_v22, 0.0  ;;  %v2035_v13 = vpop.f32.mrf.mxu1 }
 0x14e   : > { %1584 = vst.msk [vmem:[%s2743_s5 + $0x20] sm:$0xf] %vm1575_vm7, %v1801_v24  ;;  %v1534_v42 = vmax.f32 %v1522_v39, 0.0  ;;  %v1502_v15 = vpop.f32.mrf.mxu0 }
 0x14f   : > { %v1796_v25 = vpack.c.bf16 %v1528_v10, %v1528_v10  ;;  %v1503_v27 = vadd.f32 %v1502_v15, %v1430_v17 }
 0x150   : > { %v1802_v29 = vpack.c.bf16 %v1534_v42, %v1534_v42  ;;  %v2026_v30 = vpop.f32.mrf.mxu0 }
 0x151   : > { %1579 = vst.msk [vmem:[%s2743_s5 + $0xc] sm:$0xf] %vm1575_vm7, %v1796_v25  ;;  %v1529_v46 = vmax.f32 %v1503_v27, 0.0 }
 0x152   : > { %1585 = vst.msk [vmem:[%s2743_s5 + $0x24] sm:$0xf] %vm1575_vm7, %v1802_v29  ;;  %v1505_v20 = vpop.f32.mrf.mxu0 }
 0x153   : > { %v1797_v21 = vpack.c.bf16 %v1529_v46, %v1529_v46  ;;  %v1506_v57 = vadd.f32 %v1505_v20, %v1433_v56 }
 0x154   : > { %v2027_v58 = vpop.f32.mrf.mxu0 }
 0x155   : > { %1580 = vst.msk [vmem:[%s2743_s5 + $0x10] sm:$0xf] %vm1575_vm7, %v1797_v21  ;;  %v1530_v62 = vmax.f32 %v1506_v57, 0.0 }
 0x157   : > { %v1798_v16 = vpack.c.bf16 %v1530_v62, %v1530_v62 }
 0x159   : > { %1581 = vst.msk [vmem:[%s2743_s5 + $0x14] sm:$0xf] %vm1575_vm7, %v1798_v16 }
 0x15a PF: > { %s13_s14 = sadd.s32 1, %s2197_s14   ;;  %s2801_s12 = smov %s2193_s13 }
 0x15b   : > { %p10_p5 = scmp.ge.s32.totalorder %s13_s14, 4   ;;  %s2802_s13 = smov %s2804_s15 }
 0x15d   :  { %12 = sbr.rel (!%p10_p5) target bundleno = 2 (0x2), region = 62 }

// kernel: decoder_forward.4
= control target key start
LH: loop header
LB: loop body
LE: loop exit
PB: predicated region body
PF: predicated region fallthrough
CT: control target
= control target key end

     0   :  { %s2841_s12 = smov 0   ;;  %s2843_s13 = smov 0   ;;  %s4166_s0 = inlined_call_operand.vmem [shape: bf16[2,1,328,64], index: 0, kind: input, shape index: {}]   ;;  %s4167_s1 = inlined_call_operand.vmem [shape: bf16[576,64], index: 1, kind: input, shape index: {}]   ;;  %s4168_s2 = inlined_call_operand.vmem [shape: f32[1,64], index: 2, kind: input, shape index: {}]   ;;  %s4169_s3 = inlined_call_operand.vmem [shape: bf16[2,1,288,64], index: 3, kind: output, shape index: {}]  }
   0x1   :  { %s2845_s14 = smov 0  }
   0x2 LB: > { %s25_s15 = sadd.s32 1, %s2813_s13  ;;  %p2453_p0 = scmp.ge.s32.totalorder %s2817_s14, 1  ;;  %s2817_s14 = sphi %s2845_s14, %s13_s14   ;;  %s2813_s13 = sphi %s2843_s13, %s4239_s13   ;;  %s2809_s12 = sphi %s2841_s12, %s4238_s12  }
   0x3   : > { %p27_p1 = scmp.ge.s32.totalorder %s25_s15, 2  ;;  %p157_p2 = scmp.lt.s32.totalorder %s2817_s14, 3 }
   0x5   : > { %s4241_s15 = smov (%p27_p1, %s25_s15), 0  ;;  %p158_p3 = pnand %p2453_p0, %p157_p2 }
   0x7   : > { %161 = sbr.rel (%p158_p3) target bundleno = 529 (0x211), region = 32 }
   0xc   : > { %p189_p4 = scmp.lt.s32.totalorder %s2809_s12, 1  ;;  %v2730_v0 = vld [vmem:[%s4167_s1 + $0x38] sm:$0xff]   ;;  %v2819_v1 = vmov 0   ;;  %v2731_v2 = vld [vmem:[%s4167_s1 + $0x30] sm:$0xff]   ;;  %v2734_v4 = vld [vmem:[%s4167_s1 + $0x28] sm:$0xff]   ;;  %vm539_vm0 = vcmask 1046528  }
   0xd   : > { %1609 = vmatprep.subr.bf16.mxu0 %v2819_v1  ;;  %1786 = vmatprep.subr.bf16.mxu1 %v2819_v1  ;;  %v2733_v3 = vld [vmem:[%s4167_s1 + $0xb8] sm:$0xff]   ;;  %v2735_v5 = vld [vmem:[%s4167_s1 + $0xb0] sm:$0xff]   ;;  %vm821_vm1 = vsmask.f32 5376  ;;  %s2820_s30 = smov 64   ;;  %vm727_vm3 = vcmask 1045504  }
   0xe   : > { %s4243_s12 = smov (!%p189_p4, %s2809_s12), 1  ;;  %1610 = vmatpush1.bf16.msra.mxu0 %v2730_v0  ;;  %1787 = vmatpush1.bf16.msra.mxu1 %v2733_v3  ;;  %vm351_vm2 = vsmask.f32 7424  ;;  %v2736_v57 = vld [vmem:[%s4167_s1 + $0x20] sm:$0xff]   ;;  %vm633_vm4 = vsmask.f32 6400 }
   0xf   : > { %s2689_s20 = smul.u32 164, %s4243_s12  ;;  %1611 = vmatprep.subr.bf16.mxu0 %v2819_v1  ;;  %1788 = vmatprep.subr.bf16.mxu1 %v2819_v1  ;;  %vm989_vm5 = vcmask 523264   ;;  %vm951_vm6 = vcmask 1044480   ;;  %vm2320_vm7 = vcmask 519168  }
  0x10   : > { %s2690_s29 = smul.u32 144, %s4243_s12 }
  0x11   : > { %s2880_s27 = scalar_lea.vmem %s4166_s0, %s2689_s20 }
  0x12   : > { %v212_v6 = vld [vmem:[%s2880_s27 + $0x10] sm:$0xf]  ;;  %v213_v7 = vld [vmem:[%s2880_s27 + $0x14] sm:$0xf]  ;;  %1612 = vmatpush1.bf16.msra.mxu0 %v2731_v2  ;;  %v2891_v9 = vld [vmem:[%s2880_s27 + $0x18] sm:$0xff]   ;;  %1789 = vmatpush1.bf16.msra.mxu1 %v2735_v5  ;;  %s4026_s6 = scalar_lea.vmem %s4169_s3, %s2690_s29 }
  0x13   : > { %v2888_v8 = vcombine.low %v212_v6, %v213_v7  ;;  %v211_v10 = vld [vmem:[%s2880_s27 + $0xc] sm:$0xf]  ;;  %1613 = vmatprep.subr.bf16.mxu0 %v2819_v1  ;;  %v246_v11 = vld [vmem:[%s2880_s27 + $0x8] sm:$0xe]  ;;  %v252_v13 = vld [vmem:[%s2880_s27 + $0x10] sm:$0xc]  ;;  %1790 = vmatprep.subr.bf16.mxu1 %v2819_v1 }
  0x14   : > { %v210_v12 = vld [vmem:[%s2880_s27 + $0x8] sm:$0xf]  ;;  %v545_v15 = vrot.slane %v2891_v9, 1  ;;  %v2902_v16 = vcombine.low %v246_v11, %v211_v10  ;;  %v208_v18 = vld [vmem:[%s2880_s27] sm:$0xf]  ;;  %v2909_v20 = vshll.u32 %v2891_v9, 16  ;;  %v2914_v22 = vcombine.low %v252_v13, %v213_v7 }
  0x15   : > { %v2899_v14 = vrot.slane %v2888_v8, 1  ;;  %v2904_v17 = vcombine.low %v210_v12, %v211_v10  ;;  %v209_v19 = vld [vmem:[%s2880_s27 + $0x4] sm:$0xf]  ;;  %v2912_v21 = vshrl.u32 %v2891_v9, 16  ;;  %v251_v24 = vld [vmem:[%s2880_s27 + $0x8] sm:$0xc] }
  0x16   : > { %v2916_v23 = vcombine.low %v208_v18, %v209_v19  ;;  %1614 = vmatpush1.bf16.msra.mxu0 %v2734_v4  ;;  %v588_v26 = vrot.slane %v2902_v16, 1  ;;  %v2480_v28 = vcombine.low %v251_v24, %v211_v10  ;;  %v2929_v29 = vld [vmem:[%s2880_s27 + $0x20] sm:$0xff]   ;;  %v823_v30 = vshrl.u32 %v2914_v22, 16  ;;  %v2953_v49 = vld [vmem:[%s2880_s27 + $0x28] sm:$0xff]   ;;  %v2980_v3 = vld [vmem:[%s2880_s27 + $0x30] sm:$0xff]  }
  0x17   : > { %v2924_v25 = vsel %vm539_vm0, %v2899_v14, %v545_v15  ;;  %v360_v27 = vshll.u32 %v2904_v17, 16  ;;  %1615 = vmatprep.subr.bf16.mxu0 %v2819_v1  ;;  %v826_v31 = vshll.u32 %v2914_v22, 16  ;;  %v830_v32 = vrot.slane %v2912_v21, 2  ;;  %v2738_v2 = vld [vmem:[%s4167_s1 + $0xa8] sm:$0xff]   ;;  %v2739_v4 = vld [vmem:[%s4167_s1 + $0x18] sm:$0xff]   ;;  %v2740_v11 = vld [vmem:[%s4167_s1 + $0xa0] sm:$0xff]  }
  0x18   : > { %596 = vrot.lane.b32.xlu1 %v2924_v25, %s2820_s30  ;;  %v831_v33 = vrot.slane %v2909_v20, 3  ;;  %v589_v34 = vsel %vm539_vm0, %v588_v26, %v2899_v14  ;;  %v353_v35 = vshrl.u32 %v2916_v23, 16  ;;  %v355_v36 = vshll.u32 %v2916_v23, 16  ;;  %1791 = vmatpush1.bf16.msra.mxu1 %v2738_v2  ;;  %v2741_v19 = vld [vmem:[%s4167_s1 + $0x10] sm:$0xff]   ;;  %v2753_v2 = vld [vmem:[%s4167_s1 + $0xf8] sm:$0xff]  }
  0x19   : > { %594 = vrot.lane.b32.xlu0 %v589_v34, %s2820_s30  ;;  %v825_v37 = vrot.slane %v823_v30, 2  ;;  %v828_v38 = vrot.slane %v826_v31, 3  ;;  %v362_v40 = vrot.slane %v360_v27, 1  ;;  %v728_v42 = vrot.slane %v2480_v28, 2  ;;  %1792 = vmatprep.subr.bf16.mxu1 %v2819_v1  ;;  %v2743_v30 = vld [vmem:[%s4167_s1 + $0x98] sm:$0xff]   ;;  %v2745_v34 = vld [vmem:[%s4167_s1 + $0x90] sm:$0xff]  }
  0x1a   : > { %v832_v39 = vor.u32 %v831_v33, %v830_v32  ;;  %v357_v41 = vrot.slane %v355_v36, 1  ;;  %v364_v43 = vshrl.u32 %v2904_v17, 16  ;;  %v368_v44 = vshll.u32 %v2888_v8, 16  ;;  %1616 = vmatpush1.bf16.msra.mxu0 %v2736_v57  ;;  %v3028_v31 = vld [vmem:[%s2880_s27 + $0x38] sm:$0xff]   ;;  %v2744_v33 = vld [vmem:[%s4167_s1 + $0x8] sm:$0xff]  }
  0x1b   : > { %v829_v45 = vor.u32 %v828_v38, %v825_v37  ;;  %v729_v46 = vrot.slane %v2888_v8, 2  ;;  %v2947_v47 = vshll.u32 %v2929_v29, 16  ;;  %v2950_v48 = vshrl.u32 %v2929_v29, 16  ;;  %1617 = vmatprep.subr.bf16.mxu0 %v2819_v1 }
  0x1c   : > { %v358_v50 = vor.u32 %v357_v41, %v353_v35  ;;  %v366_v51 = vor.u32 %v364_v43, %v362_v40  ;;  %v370_v52 = vrot.slane %v368_v44, 1  ;;  %v2968_v60 = vshll.u32 %v2953_v49, 16  ;;  %1793 = vmatpush1.bf16.msra.mxu1 %v2740_v11  ;;  %v2748_v41 = vld [vmem:[%s4167_s1 + $0x88] sm:$0xff]  }
  0x1d   : > { %v833_v53 = vsel %vm821_vm1, %v829_v45, %v832_v39  ;;  %v834_v54 = vrot.slane %v2950_v48, 2  ;;  %v835_v55 = vrot.slane %v2947_v47, 3  ;;  %v730_v58 = vsel %vm727_vm3, %v728_v42, %v729_v46  ;;  %1794 = vmatprep.subr.bf16.mxu1 %v2819_v1 }
  0x1e   : > { %912 = vrot.lane.b32.xlu1 %v833_v53, %s2820_s30  ;;  %v363_v56 = vsel %vm351_vm2, %v358_v50, %v362_v40  ;;  %v371_v61 = vsel %vm351_vm2, %v366_v51, %v370_v52  ;;  %v547_v62 = vrot.slane %v2929_v29, 1  ;;  %v372_v63 = vshrl.u32 %v2888_v8, 16  ;;  %1618 = vmatpush1.bf16.msra.mxu0 %v2739_v4  ;;  %v2746_v40 = vld [vmem:[%s4167_s1] sm:$0xff]  }
  0x1f   : > { %500 = vrot.lane.b32.xlu0 %v363_v56, %s2820_s30  ;;  %v836_v59 = vor.u32 %v835_v55, %v834_v54  ;;  %v2974_v0 = vshrl.u32 %v2953_v49, 16  ;;  %v2990_v6 = vrot.slane %v2891_v9, 2  ;;  %v839_v10 = vrot.slane %v2968_v60, 3  ;;  %1619 = vmatprep.subr.bf16.mxu0 %v2819_v1  ;;  %v3080_v54 = vld [vmem:[%s2880_s27 + $0x40] sm:$0xff]  }
  0x20   : > { %v3001_v12 = vsel %vm539_vm0, %v545_v15, %v547_v62  ;;  %v374_v13 = vor.u32 %v372_v63, %v370_v52  ;;  %v378_v18 = vrot.slane %v2909_v20, 1  ;;  %v3016_v24 = vshll.u32 %v2980_v3, 16  ;;  %1795 = vmatpush1.bf16.msra.mxu1 %v2743_v30  ;;  %v2749_v52 = vld [vmem:[%s4167_s1 + $0x78] sm:$0xff]   ;;  %v2750_v55 = vld [vmem:[%s4167_s1 + $0x80] sm:$0xff]   ;;  %v3132_v30 = vld [vmem:[%s2880_s27 + $0x48] sm:$0xff]  }
  0x21   : > { %v837_v5 = vsel %vm821_vm1, %v832_v39, %v836_v59  ;;  %v838_v7 = vrot.slane %v2974_v0, 2  ;;  %v732_v9 = vsel %vm727_vm3, %v729_v46, %v2990_v6  ;;  %v3019_v26 = vshrl.u32 %v2980_v3, 16  ;;  %1796 = vmatprep.subr.bf16.mxu1 %v2819_v1 }
  0x22   : > { %765 = vrot.lane.b32.xlu1 %v730_v58, %s2820_s30  ;;  %v379_v27 = vsel %vm351_vm2, %v374_v13, %v378_v18  ;;  %v549_v28 = vrot.slane %v2953_v49, 1  ;;  %1620 = vmatpush1.bf16.msra.mxu0 %v2741_v19  ;;  %v733_v32 = vrot.slane %v2929_v29, 2  ;;  %v843_v37 = vrot.slane %v3016_v24, 3  ;;  %v2755_v19 = vld [vmem:[%s4167_s1 + $0xf0] sm:$0xff]  }
  0x23   : > { %502 = vrot.lane.b32.xlu0 %v371_v61, %s2820_s30  ;;  %v840_v15 = vor.u32 %v839_v10, %v838_v7  ;;  %1621 = vmatprep.subr.bf16.mxu0 %v2819_v1  ;;  %v842_v36 = vrot.slane %v3019_v26, 2  ;;  %v382_v38 = vor.u32 %v2912_v21, %v378_v18  ;;  %v386_v39 = vrot.slane %v2947_v47, 1  ;;  %v2754_v18 = vld [vmem:[%s4167_s1 + $0x68] sm:$0xff]  }
  0x24   : > { %v3045_v29 = vsel %vm539_vm0, %v547_v62, %v549_v28  ;;  %1797 = vmatpush1.bf16.msra.mxu1 %v2745_v34  ;;  %v3061_v42 = vsel %vm727_vm3, %v2990_v6, %v733_v32  ;;  %v3064_v45 = vshll.u32 %v3028_v31, 16  ;;  %v3067_v46 = vshrl.u32 %v3028_v31, 16  ;;  %v2751_v62 = vld [vmem:[%s4167_s1 + $0x70] sm:$0xff]  }
  0x25   : > { %v841_v35 = vsel %vm821_vm1, %v836_v59, %v840_v15  ;;  %v844_v43 = vor.u32 %v843_v37, %v842_v36  ;;  %1798 = vmatprep.subr.bf16.mxu1 %v2819_v1  ;;  %v387_v50 = vsel %vm351_vm2, %v382_v38, %v386_v39  ;;  %v551_v51 = vrot.slane %v2980_v3, 1 }
  0x26   : > { %914 = vrot.lane.b32.xlu1 %v837_v5, %s2820_s30  ;;  %1622 = vmatpush1.bf16.msra.mxu0 %v2744_v33  ;;  %v735_v53 = vrot.slane %v2953_v49, 2  ;;  %v846_v57 = vrot.slane %v3067_v46, 2  ;;  %v847_v58 = vrot.slane %v3064_v45, 3  ;;  %v390_v49 = vor.u32 %v2950_v48, %v386_v39 }
  0x27   : > { %598 = vrot.lane.b32.xlu0 %v3001_v12, %s2820_s30  ;;  %1623 = vmatprep.subr.bf16.mxu0 %v2819_v1  ;;  %v845_v56 = vsel %vm821_vm1, %v840_v15, %v844_v43  ;;  %v3091_v59 = vsel %vm539_vm0, %v549_v28, %v551_v51  ;;  %v394_v61 = vrot.slane %v2968_v60, 1  ;;  %v3109_v7 = vshll.u32 %v3080_v54, 16 }
  0x28   : > { %1799 = vmatpush1.bf16.msra.mxu1 %v2748_v41  ;;  %v3106_v4 = vsel %vm727_vm3, %v733_v32, %v735_v53  ;;  %v848_v5 = vor.u32 %v847_v58, %v846_v57  ;;  %v3112_v10 = vshrl.u32 %v3080_v54, 16  ;;  %v553_v13 = vrot.slane %v3028_v31, 1 }
  0x29   : > { %1800 = vmatprep.subr.bf16.mxu1 %v2819_v1  ;;  %v395_v11 = vsel %vm351_vm2, %v390_v49, %v394_v61  ;;  %v737_v15 = vrot.slane %v2980_v3, 2  ;;  %v851_v28 = vrot.slane %v3109_v7, 3  ;;  %v398_v33 = vor.u32 %v2974_v0, %v394_v61  ;;  %v2756_v3 = vld [vmem:[%s4167_s1 + $0x60] sm:$0xff]   ;;  %v2761_v49 = vld [vmem:[%s4167_s1 + $0x50] sm:$0xff]   ;;  %v2763_v61 = vld [vmem:[%s4167_s1 + $0xd8] sm:$0xff]  }
  0x2a   : > { %767 = vrot.lane.b32.xlu1 %v732_v9, %s2820_s30  ;;  %1624 = vmatpush1.bf16.msra.mxu0 %v2746_v40  ;;  %v849_v9 = vsel %vm821_vm1, %v844_v43, %v848_v5  ;;  %v3136_v32 = vsel %vm539_vm0, %v551_v51, %v553_v13  ;;  %v402_v34 = vrot.slane %v3016_v24, 1  ;;  %v3154_v38 = vshll.u32 %v3132_v30, 16  ;;  %v2759_v43 = vld [vmem:[%s4167_s1 + $0x58] sm:$0xff]  }
  0x2b   : > { %504 = vrot.lane.b32.xlu0 %v379_v27, %s2820_s30  ;;  %1625 = vmatprep.subr.bf16.mxu0 %v2819_v1  ;;  %v850_v27 = vrot.slane %v3112_v10, 2  ;;  %v3151_v36 = vsel %vm727_vm3, %v735_v53, %v737_v15  ;;  %v3157_v39 = vshrl.u32 %v3132_v30, 16  ;;  %v555_v41 = vrot.slane %v3080_v54, 1  ;;  %v3174_v53 = vld [vmem:[%s2880_s27 + $0x50] sm:$0xff]  }
  0x2c   : > { %1801 = vmatpush1.bf16.msra.mxu1 %v2750_v55  ;;  %v403_v40 = vsel %vm351_vm2, %v398_v33, %v402_v34  ;;  %v642_v51 = vrot.slane %v372_v63, 1  ;;  %4193 = vst [vmem:[#allocation2_spill] sm:$0xff] %v3174_v53  ;;  %v2760_v55 = vld [vmem:[%s4167_s1 + $0xe0] sm:$0xff]   ;;  %v855_v63 = vrot.slane %v3154_v38, 3  ;;  %v410_v58 = vrot.slane %v3064_v45, 1  ;;  %v2765_v33 = vld [vmem:[%s4167_s1 + $0xd0] sm:$0xff]  }
  0x2d   : > { %1802 = vmatprep.subr.bf16.mxu1 %v2819_v1  ;;  %v852_v37 = vor.u32 %v851_v28, %v850_v27  ;;  %v3185_v57 = vsel %vm539_vm0, %v553_v13, %v555_v41  ;;  %v3208_v13 = vshrl.u32 %v3174_v53, 16  ;;  %v812_v27 = vrot.slane %v2914_v22, 2 }
  0x2e   : > { %916 = vrot.lane.b32.xlu1 %v841_v35, %s2820_s30  ;;  %1626 = vmatpush2.bf16.msra.mxu0 %v2749_v52  ;;  %v2758_v35 = vld [vmem:[%s4167_s1 + $0xe8] sm:$0xff]   ;;  %v739_v52 = vrot.slane %v3028_v31, 2  ;;  %v406_v31 = vor.u32 %v3019_v26, %v402_v34  ;;  %v741_v28 = vrot.slane %v3080_v54, 2 }
  0x2f   : > { %600 = vrot.lane.b32.xlu0 %v3045_v29, %s2820_s30  ;;  %1627 = vmatprep.subr.bf16.mxu0 %v2819_v1  ;;  %v3234_v22 = vsel %vm727_vm3, %v812_v27, %v2990_v6  ;;  %v3251_v6 = vld [vmem:[%s4167_s1 + $0x118] sm:$0xff]  }
  0x30   : > { %1803 = vmatpush2.bf16.msra.mxu1 %v2753_v2  ;;  %v3202_v2 = vsel %vm727_vm3, %v737_v15, %v739_v52  ;;  %v3217_v15 = vld [vmem:[%s2880_s27 + $0x58] sm:$0xff]  }
  0x31   : > { %1804 = vmatprep.subr.bf16.mxu1 %v2819_v1  ;;  %4194 = vst [vmem:[#allocation3_spill] sm:$0xff] %v3217_v15 }
  0x32   : > { %769 = vrot.lane.b32.xlu1 %v3061_v42, %s2820_s30  ;;  %1628 = vmatpush2.bf16.msra.mxu0 %v2751_v62 }
  0x33   : > { %506 = vrot.lane.b32.xlu0 %v387_v50, %s2820_s30  ;;  %1629 = vmatprep.subr.bf16.mxu0 %v2819_v1  ;;  %v643_v50 = vrot.slane %v368_v44, 2  ;;  %v853_v44 = vsel %vm821_vm1, %v848_v5, %v852_v37 }
  0x34   : > { %1805 = vmatpush2.bf16.msra.mxu1 %v2755_v19  ;;  %v557_v19 = vrot.slane %v3132_v30, 1 }
  0x35   : > { %1806 = vmatprep.subr.bf16.mxu1 %v2819_v1  ;;  %v3197_v62 = vor.u32 %v643_v50, %v642_v51  ;;  %v3245_v50 = vshll.u32 %v3217_v15, 16  ;;  %v638_v51 = vshll.u32 %v2902_v16, 16 }
  0x36   : > { %918 = vrot.lane.b32.xlu1 %v845_v56, %s2820_s30  ;;  %1630 = vmatpush2.bf16.msra.mxu0 %v2754_v18  ;;  %v854_v56 = vrot.slane %v3157_v39, 2  ;;  %v411_v18 = vsel %vm351_vm2, %v406_v31, %v410_v58  ;;  %v3237_v54 = vsel %vm539_vm0, %v555_v41, %v557_v19  ;;  %v635_v41 = vshrl.u32 %v2902_v16, 16 }
  0x37   : > { %602 = vrot.lane.b32.xlu0 %v3091_v59, %s2820_s30  ;;  %1631 = vmatprep.subr.bf16.mxu0 %v2819_v1  ;;  %v559_v16 = vrot.slane %v3174_v53, 1 }
  0x38   : > { %1807 = vmatpush2.bf16.msra.mxu1 %v2758_v35  ;;  %v856_v5 = vor.u32 %v855_v63, %v854_v56  ;;  %v2769_v56 = vld [vmem:[%s4167_s1 + $0xc8] sm:$0xff]   ;;  %v637_v31 = vrot.slane %v635_v41, 1  ;;  %v4171_v41 = vrot.slane %v3217_v15, 1 }
  0x39   : > { %1808 = vmatprep.subr.bf16.mxu1 %v2819_v1 }
  0x3a   : > { %771 = vrot.lane.b32.xlu1 %v3106_v4, %s2820_s30  ;;  %1632 = vmatpush2.bf16.msra.mxu0 %v2756_v3  ;;  %v857_v34 = vsel %vm821_vm1, %v852_v37, %v856_v5  ;;  %v858_v3 = vrot.slane %v3208_v13, 2  ;;  %v2766_v37 = vld [vmem:[%s4167_s1 + $0x40] sm:$0xff]  }
  0x3b   : > { %508 = vrot.lane.b32.xlu0 %v395_v11, %s2820_s30  ;;  %1633 = vmatprep.subr.bf16.mxu0 %v2819_v1  ;;  %v3205_v11 = vshll.u32 %v3174_v53, 16 }
  0x3c   : > { %1809 = vmatpush2.bf16.msra.mxu1 %v2760_v55  ;;  %v3257_v55 = vsel %vm727_vm3, %v739_v52, %v741_v28 }
  0x3d   : > { %1810 = vmatprep.subr.bf16.mxu1 %v2819_v1  ;;  %v859_v35 = vrot.slane %v3205_v11, 3 }
  0x3e   : > { %920 = vrot.lane.b32.xlu1 %v849_v9, %s2820_s30  ;;  %1634 = vmatpush2.bf16.msra.mxu0 %v2759_v43  ;;  %v2764_v9 = vld [vmem:[%s4167_s1 + $0x48] sm:$0xff]   ;;  %v418_v43 = vrot.slane %v3109_v7, 1 }
  0x3f   : > { %604 = vrot.lane.b32.xlu0 %v3136_v32, %s2820_s30  ;;  %1635 = vmatprep.subr.bf16.mxu0 %v2819_v1  ;;  %v860_v63 = vor.u32 %v859_v35, %v858_v3  ;;  %v426_v35 = vrot.slane %v3154_v38, 1 }
  0x40   : > { %1811 = vmatpush2.bf16.msra.mxu1 %v2763_v61  ;;  %v3272_v61 = vld [vmem:[%s2880_s27 + $0x60] sm:$0xff]  }
  0x41   : > { %1812 = vmatprep.subr.bf16.mxu1 %v2819_v1  ;;  %4195 = vst [vmem:[#allocation4_spill] sm:$0xff] %v3272_v61  ;;  %v861_v3 = vsel %vm821_vm1, %v856_v5, %v860_v63  ;;  %v3302_v5 = vshrl.u32 %v3272_v61, 16 }
  0x42   : > { %773 = vrot.lane.b32.xlu1 %v3151_v36, %s2820_s30  ;;  %1636 = vmatpush2.bf16.msra.mxu0 %v2761_v49  ;;  %v743_v49 = vrot.slane %v3132_v30, 2  ;;  %v2771_v30 = vld [vmem:[%s4167_s1 + $0xc0] sm:$0xff]  }
  0x43   : > { %510 = vrot.lane.b32.xlu0 %v403_v40, %s2820_s30  ;;  %1637 = vmatprep.subr.bf16.mxu0 %v2819_v1  ;;  %v414_v40 = vor.u32 %v3067_v46, %v410_v58  ;;  %v640_v58 = vrot.slane %v638_v51, 2  ;;  %v3299_v51 = vshll.u32 %v3272_v61, 16 }
  0x44   : > { %1813 = vmatpush2.bf16.msra.mxu1 %v2765_v33  ;;  %v863_v33 = vrot.slane %v3245_v50, 3 }
  0x45   : > { %1814 = vmatprep.subr.bf16.mxu1 %v2819_v1  ;;  %v419_v52 = vsel %vm351_vm2, %v414_v40, %v418_v43 }
  0x46   : > { %922 = vrot.lane.b32.xlu1 %v853_v44, %s2820_s30  ;;  %1638 = vmatpush2.bf16.msra.mxu0 %v2764_v9  ;;  %v3260_v44 = vshrl.u32 %v3217_v15, 16  ;;  %v422_v9 = vor.u32 %v3112_v10, %v418_v43  ;;  %v647_v43 = vrot.slane %v2909_v20, 2  ;;  %v3309_v20 = vsel %vm727_vm3, %v741_v28, %v743_v49 }
  0x47   : > { %606 = vrot.lane.b32.xlu0 %v3185_v57, %s2820_s30  ;;  %1639 = vmatprep.subr.bf16.mxu0 %v2819_v1 }
  0x48   : > { %v862_v27 = vrot.slane %v3260_v44, 2  ;;  %1815 = vmatpush2.bf16.msra.mxu1 %v2769_v56 }
  0x49   : > { %1816 = vmatprep.subr.bf16.mxu1 %v2819_v1  ;;  %v3305_v1 = vld [vmem:[%s2880_s27 + $0x68] sm:$0xff]  }
  0x4a   : > { %775 = vrot.lane.b32.xlu1 %v3202_v2, %s2820_s30  ;;  %1640 = vmatpush2.bf16.msra.mxu0 %v2766_v37  ;;  %v3294_v37 = vsel %vm539_vm0, %v557_v19, %v559_v16  ;;  %4197 = vst [vmem:[#allocation6_spill] sm:$0xff] %v3305_v1  ;;  %v864_v19 = vor.u32 %v863_v33, %v862_v27  ;;  %v654_v27 = vrot.slane %v2974_v0, 1  ;;  %v866_v33 = vrot.slane %v3302_v5, 2 }
  0x4b   : > { %512 = vrot.lane.b32.xlu0 %v411_v18, %s2820_s30  ;;  %2637 = vmatprep.subr.bf16.mxu0 %v3251_v6  ;;  %v641_v18 = vor.u32 %v640_v58, %v637_v31  ;;  %4196 = vst [vmem:[#allocation5_spill] sm:$0xff] %v3294_v37  ;;  %v650_v31 = vrot.slane %v2950_v48, 1  ;;  %v651_v58 = vrot.slane %v2947_v47, 2  ;;  %v3326_v48 = vsel %vm539_vm0, %v559_v16, %v4171_v41 }
  0x4c   : > { %1817 = vmatpush2.bf16.msra.mxu1 %v2771_v30  ;;  %v867_v30 = vrot.slane %v3299_v51, 3  ;;  %v865_v16 = vsel %vm821_vm1, %v860_v63, %v864_v19  ;;  %v659_v0 = vrot.slane %v3016_v24, 2  ;;  %v666_v63 = vrot.slane %v3112_v10, 1 }
  0x4d   : > { %v3290_v40 = vsel %vm633_vm4, %v641_v18, %v3197_v62  ;;  %v430_v18 = vor.u32 %v3157_v39, %v426_v35  ;;  %2681 = vmatprep.subr.bf16.mxu1 %v3251_v6  ;;  %v670_v41 = vrot.slane %v3157_v39, 1  ;;  %v675_v10 = vrot.slane %v3205_v11, 2 }
  0x4e   : > { %924 = vrot.lane.b32.xlu1 %v857_v34, %s2820_s30  ;;  %v646_v34 = vrot.slane %v2912_v21, 1  ;;  %v4170_v21 = vrot.slane %v3174_v53, 2 }
  0x4f   : > { %608 = vrot.lane.b32.xlu0 %v3237_v54, %s2820_s30 }
  0x50   : > { %v648_v56 = vor.u32 %v647_v43, %v646_v34  ;;  %v434_v34 = vrot.slane %v3205_v11, 1  ;;  %v3331_v47 = vsel %vm727_vm3, %v743_v49, %v4170_v21  ;;  %v3350_v43 = vshrl.u32 %v3305_v1, 16 }
  0x52   : > { %777 = vrot.lane.b32.xlu1 %v3257_v55, %s2820_s30  ;;  %v3321_v28 = vsel %vm633_vm4, %v3197_v62, %v648_v56  ;;  %v3337_v62 = vshll.u32 %v3305_v1, 16 }
  0x53   : > { %514 = vrot.lane.b32.xlu0 %v419_v52, %s2820_s30  ;;  %v427_v52 = vsel %vm351_vm2, %v422_v9, %v426_v35  ;;  %v652_v9 = vor.u32 %v651_v58, %v650_v31  ;;  %v658_v35 = vrot.slane %v3019_v26, 1  ;;  %v663_v58 = vrot.slane %v3064_v45, 2 }
  0x54   : > { %v868_v26 = vor.u32 %v867_v30, %v866_v33  ;;  %v435_v33 = vsel %vm351_vm2, %v430_v18, %v434_v34  ;;  %v563_v30 = vrot.slane %v3272_v61, 1  ;;  %v871_v18 = vrot.slane %v3337_v62, 3 }
  0x55   : > { %v3344_v49 = vsel %vm633_vm4, %v648_v56, %v652_v9  ;;  %v660_v21 = vor.u32 %v659_v0, %v658_v35  ;;  %v667_v56 = vrot.slane %v3109_v7, 2 }
  0x56   : > { %926 = vrot.lane.b32.xlu1 %v861_v3, %s2820_s30  ;;  %v655_v3 = vrot.slane %v2968_v60, 2  ;;  %v662_v60 = vrot.slane %v3067_v46, 1 }
  0x57   : > { %610 = vrot.lane.b32.xlu0 %v3294_v37, %s2820_s30  ;;  %v671_v37 = vrot.slane %v3154_v38, 2  ;;  %v668_v45 = vor.u32 %v667_v56, %v666_v63  ;;  %v679_v38 = vrot.slane %v3245_v50, 2 }
  0x58   : > { %v656_v31 = vor.u32 %v655_v3, %v654_v27  ;;  %v674_v27 = vrot.slane %v3208_v13, 1 }
  0x59   : > { %v672_v39 = vor.u32 %v671_v37, %v670_v41  ;;  %v683_v37 = vrot.slane %v3299_v51, 2  ;;  %v747_v41 = vrot.slane %v3217_v15, 2 }
  0x5a   : > { %779 = vrot.lane.b32.xlu1 %v3309_v20, %s2820_s30  ;;  %v3358_v24 = vsel %vm633_vm4, %v652_v9, %v656_v31  ;;  %v3363_v46 = vsel %vm633_vm4, %v656_v31, %v660_v21  ;;  %v678_v9 = vrot.slane %v3260_v44, 1  ;;  %v676_v11 = vor.u32 %v675_v10, %v674_v27 }
  0x5b   : > { %516 = vrot.lane.b32.xlu0 %v427_v52, %s2820_s30  ;;  %v664_v52 = vor.u32 %v663_v58, %v662_v60  ;;  %v869_v31 = vsel %vm821_vm1, %v864_v19, %v868_v26  ;;  %v870_v60 = vrot.slane %v3350_v43, 2  ;;  %v3395_v58 = vld [vmem:[%s2880_s27 + $0x70] sm:$0xff]   ;;  %v438_v27 = vor.u32 %v3208_v13, %v434_v34 }
  0x5c   : > { %v680_v35 = vor.u32 %v679_v38, %v678_v9  ;;  %v3389_v0 = vsel %vm633_vm4, %v672_v39, %v676_v11  ;;  %4198 = vst [vmem:[#allocation7_spill] sm:$0xff] %v3395_v58  ;;  %v442_v10 = vrot.slane %v3245_v50, 1  ;;  %v4202_v19 = vrot.slane %v3174_v53, 2 }
  0x5d   : > { %v3370_v7 = vsel %vm633_vm4, %v660_v21, %v664_v52  ;;  %v3377_v3 = vsel %vm633_vm4, %v664_v52, %v668_v45  ;;  %v682_v21 = vrot.slane %v3302_v5, 1  ;;  %v4199_v52 = vrot.slane %v3217_v15, 1 }
  0x5e   : > { %928 = vrot.lane.b32.xlu1 %v865_v16, %s2820_s30  ;;  %v3380_v16 = vsel %vm633_vm4, %v668_v45, %v672_v39  ;;  %v3398_v63 = vsel %vm633_vm4, %v676_v11, %v680_v35  ;;  %v3416_v9 = vsel %vm727_vm3, %v4202_v19, %v747_v41  ;;  %v872_v38 = vor.u32 %v871_v18, %v870_v60  ;;  %v3436_v60 = vld [vmem:[%s2880_s27 + $0x78] sm:$0xff]  }
  0x5f   : > { %612 = vrot.lane.b32.xlu0 %v3326_v48, %s2820_s30  ;;  %v684_v56 = vor.u32 %v683_v37, %v682_v21  ;;  %v3403_v45 = vsel %vm539_vm0, %v4199_v52, %v563_v30  ;;  %v3422_v13 = vshrl.u32 %v3395_v58, 16  ;;  %v443_v50 = vsel %vm351_vm2, %v438_v27, %v442_v10  ;;  %4203 = vst [vmem:[#allocation10_spill] sm:$0xff] %v3436_v60 }
  0x60   : > { %4200 = vst [vmem:[#allocation8_spill] sm:$0xff] %v3403_v45  ;;  %v565_v34 = vrot.slane %v3305_v1, 1  ;;  %v686_v11 = vrot.slane %v3350_v43, 1  ;;  %v749_v21 = vrot.slane %v3272_v61, 2  ;;  %v873_v37 = vsel %vm821_vm1, %v868_v26, %v872_v38 }
  0x61   : > { %v3408_v39 = vsel %vm633_vm4, %v680_v35, %v684_v56  ;;  %v687_v35 = vrot.slane %v3337_v62, 2  ;;  %v874_v18 = vrot.slane %v3422_v13, 2  ;;  %v446_v19 = vor.u32 %v3260_v44, %v442_v10 }
  0x62   : > { %781 = vrot.lane.b32.xlu1 %v3331_v47, %s2820_s30  ;;  %4201 = vst [vmem:[#allocation9_spill] sm:$0xff] %v3408_v39  ;;  %v3439_v27 = vsel %vm539_vm0, %v563_v30, %v565_v34  ;;  %v450_v15 = vrot.slane %v3299_v51, 1  ;;  %v3450_v26 = vsel %vm727_vm3, %v747_v41, %v749_v21  ;;  %v3453_v30 = vshll.u32 %v3436_v60, 16 }
  0x63   : > { %518 = vrot.lane.b32.xlu0 %v435_v33, %s2820_s30  ;;  %v3419_v33 = vshll.u32 %v3395_v58, 16  ;;  %v688_v52 = vor.u32 %v687_v35, %v686_v11  ;;  %4204 = vst [vmem:[#allocation11_spill] sm:$0xff] %v3439_v27  ;;  %v3456_v44 = vshrl.u32 %v3436_v60, 16  ;;  %v690_v10 = vrot.slane %v3422_v13, 1 }
  0x64   : > { %v451_v51 = vsel %vm351_vm2, %v446_v19, %v450_v15  ;;  %v751_v41 = vrot.slane %v3305_v1, 2  ;;  %v458_v39 = vrot.slane %v3337_v62, 1  ;;  %v569_v62 = vrot.slane %v3436_v60, 1 }
  0x65   : > { %v3444_v61 = vsel %vm633_vm4, %v684_v56, %v688_v52  ;;  %v567_v56 = vrot.slane %v3395_v58, 1  ;;  %v691_v11 = vrot.slane %v3419_v33, 2 }
  0x66   : > { %930 = vrot.lane.b32.xlu1 %v869_v31, %s2820_s30  ;;  %v875_v31 = vrot.slane %v3419_v33, 3  ;;  %4205 = vst [vmem:[#allocation12_spill] sm:$0xff] %v3444_v61 }
  0x67   : > { %614 = vrot.lane.b32.xlu0 %v3403_v45, %s2820_s30  ;;  %v692_v19 = vor.u32 %v691_v11, %v690_v10  ;;  %v3473_v61 = vsel %vm539_vm0, %v565_v34, %v567_v56  ;;  %v695_v10 = vrot.slane %v3453_v30, 2  ;;  %v466_v45 = vrot.slane %v3419_v33, 1 }
  0x68   : > { %4207 = vst [vmem:[#allocation14_spill] sm:$0xff] %v3473_v61 }
  0x69   : > { %v3478_v1 = vsel %vm633_vm4, %v688_v52, %v692_v19  ;;  %v694_v52 = vrot.slane %v3456_v44, 1 }
  0x6a   : > { %783 = vrot.lane.b32.xlu1 %v3416_v9, %s2820_s30  ;;  %4208 = vst [vmem:[#allocation15_spill] sm:$0xff] %v3478_v1  ;;  %v3507_v1 = vsel %vm539_vm0, %v567_v56, %v569_v62 }
  0x6b   : > { %520 = vrot.lane.b32.xlu0 %v443_v50, %s2820_s30  ;;  %v876_v50 = vor.u32 %v875_v31, %v874_v18  ;;  %v879_v18 = vrot.slane %v3453_v30, 3  ;;  %v3470_v31 = vld [vmem:[%s2880_s27 + $0x80] sm:$0xff]   ;;  %4210 = vst [vmem:[#allocation17_spill] sm:$0xff] %v3507_v1 }
  0x6c   : > { %4206 = vst [vmem:[#allocation13_spill] sm:$0xff] %v3470_v31  ;;  %v3487_v34 = vshll.u32 %v3470_v31, 16  ;;  %v571_v33 = vrot.slane %v3470_v31, 1 }
  0x6d   : > { %v877_v35 = vsel %vm821_vm1, %v872_v38, %v876_v50  ;;  %v3484_v38 = vsel %vm727_vm3, %v749_v21, %v751_v41  ;;  %v753_v21 = vrot.slane %v3395_v58, 2 }
  0x6e   : > { %932 = vrot.lane.b32.xlu1 %v873_v37, %s2820_s30  ;;  %v878_v37 = vrot.slane %v3456_v44, 2  ;;  %4209 = vst [vmem:[#allocation16_spill] sm:$0xff] %v3484_v38 }
  0x6f   : > { %616 = vrot.lane.b32.xlu0 %v3439_v27, %s2820_s30  ;;  %v454_v27 = vor.u32 %v3302_v5, %v450_v15  ;;  %v3490_v15 = vshrl.u32 %v3470_v31, 16 }
  0x71   : > { %v459_v5 = vsel %vm351_vm2, %v454_v27, %v458_v39  ;;  %v883_v27 = vrot.slane %v3487_v34, 3 }
  0x72   : > { %785 = vrot.lane.b32.xlu1 %v3450_v26, %s2820_s30 }
  0x73   : > { %522 = vrot.lane.b32.xlu0 %v451_v51, %s2820_s30  ;;  %v880_v51 = vor.u32 %v879_v18, %v878_v37  ;;  %v3504_v37 = vld [vmem:[%s2880_s27 + $0x88] sm:$0xff]   ;;  %v696_v18 = vor.u32 %v695_v10, %v694_v52 }
  0x74   : > { %v3522_v56 = vshll.u32 %v3504_v37, 16 }
  0x75   : > { %v881_v11 = vsel %vm821_vm1, %v876_v50, %v880_v51  ;;  %v3512_v58 = vsel %vm633_vm4, %v692_v19, %v696_v18  ;;  %v245_v50 = vld [vmem:[%s2880_s27] sm:$0xe]  ;;  %v2783_v19 = vld [vmem:[%s2880_s27 + $0x4] sm:$0xf] }
  0x76   : > { %934 = vrot.lane.b32.xlu1 %v877_v35, %s2820_s30  ;;  %v882_v35 = vrot.slane %v3490_v15, 2  ;;  %4211 = vst [vmem:[#allocation18_spill] sm:$0xff] %v3512_v58  ;;  %v2475_v10 = vcombine.low %v245_v50, %v2783_v19  ;;  %v699_v58 = vrot.slane %v3487_v34, 2  ;;  %v3543_v19 = vsel %vm539_vm0, %v569_v62, %v571_v33 }
  0x77   : > { %618 = vrot.lane.b32.xlu0 %v3473_v61, %s2820_s30  ;;  %v462_v61 = vor.u32 %v3350_v43, %v458_v39  ;;  %v3525_v43 = vshrl.u32 %v3504_v37, 16  ;;  %4213 = vst [vmem:[#allocation20_spill] sm:$0xff] %v3543_v19 }
  0x78   : > { %v884_v52 = vor.u32 %v883_v27, %v882_v35  ;;  %v540_v53 = vrot.slane %v2475_v10, 1 }
  0x79   : > { %v467_v39 = vsel %vm351_vm2, %v462_v61, %v466_v45  ;;  %v886_v27 = vrot.slane %v3525_v43, 2  ;;  %v887_v61 = vrot.slane %v3522_v56, 3  ;;  %v702_v10 = vrot.slane %v3525_v43, 1 }
  0x7a   : > { %787 = vrot.lane.b32.xlu1 %v3484_v38, %s2820_s30  ;;  %v885_v35 = vsel %vm821_vm1, %v880_v51, %v884_v52  ;;  %v470_v38 = vor.u32 %v3422_v13, %v466_v45 }
  0x7b   : > { %524 = vrot.lane.b32.xlu0 %v459_v5, %s2820_s30  ;;  %v3519_v5 = vsel %vm727_vm3, %v751_v41, %v753_v21  ;;  %v755_v41 = vrot.slane %v3436_v60, 2  ;;  %v541_v60 = vrot.slane %v2904_v17, 1  ;;  %v888_v51 = vor.u32 %v887_v61, %v886_v27 }
  0x7c   : > { %4212 = vst [vmem:[#allocation19_spill] sm:$0xff] %v3519_v5 }
  0x7e   : > { %936 = vrot.lane.b32.xlu1 %v881_v11, %s2820_s30  ;;  %v698_v11 = vrot.slane %v3490_v15, 1 }
  0x7f   : > { %620 = vrot.lane.b32.xlu0 %v3507_v1, %s2820_s30  ;;  %v3540_v1 = vld [vmem:[%s2880_s27 + $0x90] sm:$0xff]  }
  0x80   : > { %v700_v50 = vor.u32 %v699_v58, %v698_v11  ;;  %v3555_v58 = vsel %vm727_vm3, %v753_v21, %v755_v41  ;;  %v4192_v62 = vshrl.u32 %v3540_v1, 16  ;;  %v710_v45 = vshll.u32 %v3540_v1, 16 }
  0x81   : > { %4215 = vst [vmem:[#allocation22_spill] sm:$0xff] %v3555_v58  ;;  %v703_v11 = vrot.slane %v3522_v56, 2 }
  0x82   : > { %789 = vrot.lane.b32.xlu1 %v3519_v5, %s2820_s30  ;;  %v474_v5 = vrot.slane %v3453_v30, 1  ;;  %v3561_v30 = vrot.slane %v3504_v37, 1  ;;  %v890_v61 = vrot.slane %v4192_v62, 2 }
  0x83   : > { %526 = vrot.lane.b32.xlu0 %v467_v39, %s2820_s30  ;;  %v3549_v39 = vsel %vm633_vm4, %v696_v18, %v700_v50  ;;  %v542_v18 = vsel %vm539_vm0, %v540_v53, %v541_v60  ;;  %v891_v53 = vrot.slane %v710_v45, 3 }
  0x84   : > { %4214 = vst [vmem:[#allocation21_spill] sm:$0xff] %v3549_v39  ;;  %v475_v13 = vsel %vm351_vm2, %v470_v38, %v474_v5  ;;  %v889_v38 = vsel %vm821_vm1, %v884_v52, %v888_v51  ;;  %v3576_v39 = vld [vmem:[%s2880_s27 + $0x98] sm:$0xff]   ;;  %v482_v52 = vrot.slane %v3487_v34, 1 }
  0x85   : > { %v898_v34 = vshll.u32 %v3576_v39, 16 }
  0x86   : > { %938 = vrot.lane.b32.xlu1 %v885_v35, %s2820_s30  ;;  %v757_v35 = vrot.slane %v3470_v31, 2  ;;  %v3583_v31 = vsel %vm539_vm0, %v571_v33, %v3561_v30 }
  0x87   : > { %622 = vrot.lane.b32.xlu0 %v3543_v19, %s2820_s30  ;;  %v3578_v19 = vor.u32 %v703_v11, %v702_v10  ;;  %v544_v10 = vsel %vm539_vm0, %v541_v60, %v2899_v14 }
  0x88   : > { %v3597_v33 = vsel %vm727_vm3, %v755_v41, %v757_v35  ;;  %v2778_v41 = vld [vmem:[%s4167_s1 + $0x110] sm:$0xff]  }
  0x89   : > { %v3589_v62 = vsel %vm633_vm4, %v700_v50, %v3578_v19 }
  0x8a   : > { %791 = vrot.lane.b32.xlu1 %v3555_v58, %s2820_s30  ;;  %v597_v21 = vpop.permute.xlu1 %596 }
  0x8b   : > { %v595_v27 = vpop.permute.xlu0 %594  ;;  %528 = vrot.lane.b32.xlu0 %v475_v13, %s2820_s30  ;;  %v478_v13 = vor.u32 %v3456_v44, %v474_v5  ;;  %v895_v44 = vshrl.u32 %v3576_v39, 16  ;;  %v1050_v14 = vsel %vm989_vm5, %v544_v10, %v597_v21  ;;  %v486_v21 = vor.u32 %v3490_v15, %v482_v52  ;;  %v2774_v10 = vld [vmem:[%s2880_s27 + $0x98] ss:$0 sps:$4 sm:$0x11]  }
  0x8c   : > { %v1046_v58 = vsel %vm989_vm5, %v542_v18, %v595_v27  ;;  %v892_v18 = vor.u32 %v891_v53, %v890_v61  ;;  %v490_v61 = vrot.slane %v3522_v56, 1  ;;  %v3626_v15 = vld [vmem:[%s2880_s27 + $0xa0] ss:$0 sps:$4 sm:$0x77]   ;;  %v2779_v56 = vld [vmem:[%s4167_s1 + $0x108] sm:$0xff]  }
  0x8d   : > { %1641 = vmatprep.mubr.bf16.mxu0 %v1046_v58  ;;  %v483_v50 = vsel %vm351_vm2, %v478_v13, %v482_v52  ;;  %v590_v58 = vrot.slane %v3540_v1, 1  ;;  %v897_v53 = vrot.slane %v895_v44, 2  ;;  %v900_v13 = vrot.slane %v898_v34, 3 }
  0x8e   : > { %940 = vrot.lane.b32.xlu1 %v889_v38, %s2820_s30  ;;  %v759_v38 = vrot.slane %v3504_v37, 2  ;;  %v491_v34 = vsel %vm351_vm2, %v486_v21, %v490_v61 }
  0x8f   : > { %624 = vrot.lane.b32.xlu0 %v3583_v31, %s2820_s30 }
  0x90   : > { %v913_v5 = vpop.permute.xlu1 %912  ;;  %v3636_v44 = vsel %vm727_vm3, %v757_v35, %v759_v38 }
  0x91   : > { %v501_v11 = vpop.permute.xlu0 %500  ;;  %v1190_v60 = vsel %vm989_vm5, %v3234_v22, %v913_v5  ;;  %v893_v22 = vsel %vm821_vm1, %v888_v51, %v892_v18  ;;  %v591_v5 = vsel %vm539_vm0, %v3561_v30, %v590_v58 }
  0x92   : > { %793 = vrot.lane.b32.xlu1 %v3597_v33, %s2820_s30  ;;  %v991_v27 = vsel %vm989_vm5, %v2916_v23, %v501_v11  ;;  %1818 = vmatprep.mubr.bf16.mxu1 %v1190_v60  ;;  %v3623_v11 = vld [vmem:[%s2880_s27 + $0x90] ss:$0 sps:$4 sm:$0x11]  }
  0x93   : > { %1642 = vmatmul.mubr.bf16.vlgmr.msra.gmra.mxu0 %v991_v27  ;;  %530 = vrot.lane.b32.xlu0 %v483_v50, %s2820_s30  ;;  %v901_v50 = vor.u32 %v900_v13, %v897_v53  ;;  %v496_v27 = vshll.u32 %v3623_v11, 16  ;;  %v3655_v13 = vrot.slane %v3540_v1, 2 }
  0x94   : > { %2638 = vmatpush3.bf16.msra.mxu0 %v3251_v6  ;;  %1649 = vmatprep.mubr.bf16.mxu0 %v1050_v14  ;;  %v766_v23 = vpop.permute.xlu1 %765 }
  0x95   : > { %v1118_v52 = vsel %vm989_vm5, %v3290_v40, %v766_v23  ;;  %v503_v51 = vpop.permute.xlu0 %502  ;;  %2639 = vmatprep.subr.bf16.mxu0 %v2778_v41  ;;  %v592_v40 = vrot.slane %v2774_v10, 1  ;;  %v907_v23 = vshll.u32 %v3626_v15, 16  ;;  %v902_v21 = vsel %vm821_vm1, %v892_v18, %v901_v50  ;;  %v3658_v10 = vld [vmem:[%s2880_s27 + $0x98] ss:$0 sps:$4 sm:$0x33]  }
  0x96   : > { %942 = vrot.lane.b32.xlu1 %v893_v22, %s2820_s30  ;;  %1819 = vmatmul.mubr.bf16.vlgmr.msra.gmra.mxu1 %v1118_v52  ;;  %v994_v60 = vsel %vm989_vm5, %v2904_v17, %v503_v51  ;;  %v904_v22 = vshrl.u32 %v3626_v15, 16  ;;  %v498_v52 = vrot.slane %v496_v27, 1 }
  0x97   : > { %626 = vrot.lane.b32.xlu0 %v591_v5, %s2820_s30  ;;  %2685 = vmatpush3.bf16.msra.mxu1 %v3251_v6  ;;  %v593_v53 = vsel %vm539_vm0, %v590_v58, %v592_v40  ;;  %v3670_v40 = vsel %vm727_vm3, %v759_v38, %v3655_v13 }
  0x98   : > { %v915_v14 = vpop.permute.xlu1 %914  ;;  %2640 = vmatpush3.bf16.msra.mxu0 %v2778_v41  ;;  %2682 = vmatprep.subr.bf16.mxu1 %v2778_v41  ;;  %v906_v51 = vrot.slane %v904_v22, 2 }
  0x99   : > { %v599_v35 = vpop.permute.xlu0 %598  ;;  %v1194_v6 = vsel %vm989_vm5, %v3061_v42, %v915_v14  ;;  %2641 = vmatprep.subr.bf16.mxu0 %v2779_v56  ;;  %v2780_v42 = vld [vmem:[%s4167_s1 + $0x100] sm:$0xff]  }
  0x9a   : > { %795 = vrot.lane.b32.xlu1 %v3636_v44, %s2820_s30  ;;  %1826 = vmatprep.mubr.bf16.mxu1 %v1194_v6  ;;  %v1054_v17 = vsel %vm989_vm5, %v2924_v25, %v599_v35  ;;  %v494_v25 = vor.u32 %v3525_v43, %v490_v61  ;;  %v763_v43 = vrot.slane %v3658_v10, 2  ;;  %v3691_v35 = vld [vmem:[%s2880_s27 + $0x18] sm:$0xff]  }
  0x9b   : > { %1650 = vmatmul.mubr.bf16.gmra.mxu0 %v994_v60  ;;  %532 = vrot.lane.b32.xlu0 %v491_v34, %s2820_s30  ;;  %v909_v34 = vrot.slane %v907_v23, 3 }
  0x9c   : > { %v768_v5 = vpop.permute.xlu1 %767  ;;  %1657 = vmatprep.mubr.bf16.mxu0 %v1054_v17  ;;  %2686 = vmatpush3.bf16.msra.mxu1 %v2778_v41 }
  0x9d   : > { %v1122_v18 = vsel %vm989_vm5, %v3321_v28, %v768_v5  ;;  %v505_v58 = vpop.permute.xlu0 %504  ;;  %2642 = vmatpush3.bf16.msra.mxu0 %v2779_v56  ;;  %2683 = vmatprep.subr.bf16.mxu1 %v2779_v56  ;;  %v499_v28 = vsel %vm351_vm2, %v494_v25, %v498_v52  ;;  %v910_v14 = vor.u32 %v909_v34, %v906_v51  ;;  %v3702_v25 = vld [vmem:[%s2880_s27 + $0x20] sm:$0xff]  }
  0x9e   : > { %944 = vrot.lane.b32.xlu1 %v902_v21, %s2820_s30  ;;  %1827 = vmatmul.mubr.bf16.gmra.mxu1 %v1122_v18  ;;  %v997_v41 = vsel %vm989_vm5, %v2888_v8, %v505_v58  ;;  %v764_v8 = vsel %vm727_vm3, %v3655_v13, %v763_v43  ;;  %v3713_v43 = vld [vmem:[%s2880_s27 + $0x28] sm:$0xff]  }
  0x9f   : > { %628 = vrot.lane.b32.xlu0 %v593_v53, %s2820_s30  ;;  %2643 = vmatprep.subr.bf16.mxu0 %v2780_v42 }
  0xa0   : > { %v917_v61 = vpop.permute.xlu1 %916  ;;  %2687 = vmatpush3.bf16.msra.mxu1 %v2779_v56 }
  0xa1   : > { %v601_v60 = vpop.permute.xlu0 %600  ;;  %v1198_v27 = vsel %vm989_vm5, %v3106_v4, %v917_v61  ;;  %2644 = vmatpush3.bf16.msra.mxu0 %v2780_v42  ;;  %2684 = vmatprep.subr.bf16.mxu1 %v2780_v42  ;;  %v911_v4 = vsel %vm821_vm1, %v901_v50, %v910_v14 }
  0xa2   : > { %797 = vrot.lane.b32.xlu1 %v3670_v40, %s2820_s30  ;;  %1834 = vmatprep.mubr.bf16.mxu1 %v1198_v27  ;;  %v1058_v38 = vsel %vm989_vm5, %v3001_v12, %v601_v60  ;;  %v3724_v27 = vld [vmem:[%s2880_s27 + $0x30] sm:$0xff]  }
  0xa3   : > { %1658 = vmatmul.mubr.bf16.gmra.mxu0 %v997_v41  ;;  %534 = vrot.lane.b32.xlu0 %v499_v28, %s2820_s30 }
  0xa4   : > { %v770_v56 = vpop.permute.xlu1 %769  ;;  %1665 = vmatprep.mubr.bf16.mxu0 %v1058_v38  ;;  %2688 = vmatpush3.bf16.msra.mxu1 %v2780_v42 }
  0xa5   : > { %v1126_v22 = vsel %vm989_vm5, %v3344_v49, %v770_v56  ;;  %v507_v23 = vpop.permute.xlu0 %506 }
  0xa6   : > { %1835 = vmatmul.mubr.bf16.gmra.mxu1 %v1126_v22  ;;  %799 = vrot.lane.b32.xlu1 %v764_v8, %s2820_s30  ;;  %v1000_v6 = vsel %vm989_vm5, %v3691_v35, %v507_v23  ;;  %v3735_v23 = vld [vmem:[%s2880_s27 + $0x38] sm:$0xff]  }
  0xa7   : > { %946 = vrot.lane.b32.xlu0 %v911_v4, %s2820_s30 }
  0xa8   : > { %v919_v12 = vpop.permute.xlu1 %918 }
  0xa9   : > { %v603_v17 = vpop.permute.xlu0 %602  ;;  %v1202_v50 = vsel %vm989_vm5, %v3151_v36, %v919_v12 }
  0xaa   : > { %1842 = vmatprep.mubr.bf16.mxu1 %v1202_v50  ;;  %v1062_v49 = vsel %vm989_vm5, %v3045_v29, %v603_v17 }
  0xab   : > { %1666 = vmatmul.mubr.bf16.gmra.mxu0 %v1000_v6 }
  0xac   : > { %v772_v21 = vpop.permute.xlu1 %771  ;;  %1673 = vmatprep.mubr.bf16.mxu0 %v1062_v49 }
  0xad   : > { %v1130_v53 = vsel %vm989_vm5, %v3358_v24, %v772_v21  ;;  %v509_v42 = vpop.permute.xlu0 %508  ;;  %v3746_v21 = vld [vmem:[%s2880_s27 + $0x40] sm:$0xff]  }
  0xae   : > { %1843 = vmatmul.mubr.bf16.gmra.mxu1 %v1130_v53  ;;  %v1003_v52 = vsel %vm989_vm5, %v3702_v25, %v509_v42 }
  0xb0   : > { %v921_v5 = vpop.permute.xlu1 %920 }
  0xb1   : > { %v605_v36 = vpop.permute.xlu0 %604  ;;  %v1206_v51 = vsel %vm989_vm5, %v3202_v2, %v921_v5 }
  0xb2   : > { %1850 = vmatprep.mubr.bf16.mxu1 %v1206_v51  ;;  %v1066_v29 = vsel %vm989_vm5, %v3091_v59, %v605_v36 }
  0xb3   : > { %1674 = vmatmul.mubr.bf16.gmra.mxu0 %v1003_v52 }
  0xb4   : > { %v774_v34 = vpop.permute.xlu1 %773  ;;  %1681 = vmatprep.mubr.bf16.mxu0 %v1066_v29  ;;  %v3757_v29 = vld [vmem:[%s2880_s27 + $0x48] sm:$0xff]  }
  0xb5   : > { %v1134_v24 = vsel %vm989_vm5, %v3363_v46, %v774_v34  ;;  %v511_v18 = vpop.permute.xlu0 %510 }
  0xb6   : > { %1851 = vmatmul.mubr.bf16.gmra.mxu1 %v1134_v24  ;;  %v1006_v61 = vsel %vm989_vm5, %v3713_v43, %v511_v18 }
  0xb8   : > { %v923_v58 = vpop.permute.xlu1 %922 }
  0xb9   : > { %v607_v2 = vpop.permute.xlu0 %606  ;;  %v1210_v41 = vsel %vm989_vm5, %v3257_v55, %v923_v58 }
  0xba   : > { %1858 = vmatprep.mubr.bf16.mxu1 %v1210_v41  ;;  %v1070_v59 = vsel %vm989_vm5, %v3136_v32, %v607_v2  ;;  %v4217_v41 = vld [vmem:[#allocation2_spill] sm:$0xff] }
  0xbb   : > { %1682 = vmatmul.mubr.bf16.gmra.mxu0 %v1006_v61 }
  0xbc   : > { %v776_v28 = vpop.permute.xlu1 %775  ;;  %1689 = vmatprep.mubr.bf16.mxu0 %v1070_v59 }
  0xbd   : > { %v1138_v46 = vsel %vm989_vm5, %v3370_v7, %v776_v28  ;;  %v513_v14 = vpop.permute.xlu0 %512 }
  0xbe   : > { %1859 = vmatmul.mubr.bf16.gmra.mxu1 %v1138_v46  ;;  %v1009_v38 = vsel %vm989_vm5, %v3724_v27, %v513_v14  ;;  %v4218_v46 = vld [vmem:[#allocation16_spill] sm:$0xff] }
  0xbf   : > { %v4219_v14 = vld [vmem:[#allocation8_spill] sm:$0xff] }
  0xc0   : > { %v925_v60 = vpop.permute.xlu1 %924 }
  0xc1   : > { %v609_v55 = vpop.permute.xlu0 %608  ;;  %v1214_v8 = vsel %vm989_vm5, %v3309_v20, %v925_v60 }
  0xc2   : > { %1866 = vmatprep.mubr.bf16.mxu1 %v1214_v8  ;;  %v1074_v32 = vsel %vm989_vm5, %v3185_v57, %v609_v55 }
  0xc3   : > { %1690 = vmatmul.mubr.bf16.gmra.mxu0 %v1009_v38  ;;  %v4220_v38 = vld [vmem:[#allocation9_spill] sm:$0xff] }
  0xc4   : > { %v778_v56 = vpop.permute.xlu1 %777  ;;  %1697 = vmatprep.mubr.bf16.mxu0 %v1074_v32  ;;  %v4221_v32 = vld [vmem:[#allocation3_spill] sm:$0xff] }
  0xc5   : > { %v1142_v7 = vsel %vm989_vm5, %v3377_v3, %v778_v56  ;;  %v515_v4 = vpop.permute.xlu0 %514 }
  0xc6   : > { %1867 = vmatmul.mubr.bf16.gmra.mxu1 %v1142_v7  ;;  %v1012_v12 = vsel %vm989_vm5, %v3735_v23, %v515_v4  ;;  %v4222_v4 = vld [vmem:[#allocation19_spill] sm:$0xff] }
  0xc8   : > { %v927_v22 = vpop.permute.xlu1 %926 }
  0xc9   : > { %v611_v20 = vpop.permute.xlu0 %610  ;;  %v1218_v6 = vsel %vm989_vm5, %v3331_v47, %v927_v22 }
  0xca   : > { %1874 = vmatprep.mubr.bf16.mxu1 %v1218_v6  ;;  %v1078_v57 = vsel %vm989_vm5, %v3237_v54, %v611_v20  ;;  %v4216_v54 = vld [vmem:[#allocation5_spill] sm:$0xff] }
  0xcb   : > { %1698 = vmatmul.mubr.bf16.gmra.mxu0 %v1012_v12  ;;  %v4223_v12 = vld [vmem:[#allocation11_spill] sm:$0xff] }
  0xcc   : > { %v780_v17 = vpop.permute.xlu1 %779  ;;  %1705 = vmatprep.mubr.bf16.mxu0 %v1078_v57  ;;  %v4224_v57 = vld [vmem:[#allocation12_spill] sm:$0xff] }
  0xcd   : > { %v1146_v3 = vsel %vm989_vm5, %v3380_v16, %v780_v17  ;;  %v517_v50 = vpop.permute.xlu0 %516 }
  0xce   : > { %1875 = vmatmul.mubr.bf16.gmra.mxu1 %v1146_v3  ;;  %v1015_v53 = vsel %vm989_vm5, %v3746_v21, %v517_v50 }
  0xd0   : > { %v929_v49 = vpop.permute.xlu1 %928 }
  0xd1   : > { %v613_v47 = vpop.permute.xlu0 %612  ;;  %v1222_v42 = vsel %vm989_vm5, %v3416_v9, %v929_v49  ;;  %v4225_v49 = vld [vmem:[#allocation4_spill] sm:$0xff] }
  0xd2   : > { %1882 = vmatprep.mubr.bf16.mxu1 %v1222_v42  ;;  %v1082_v5 = vsel %vm989_vm5, %v4216_v54, %v613_v47  ;;  %v4226_v42 = vld [vmem:[#allocation22_spill] sm:$0xff] }
  0xd3   : > { %1706 = vmatmul.mubr.bf16.gmra.mxu0 %v1015_v53 }
  0xd4   : > { %v782_v52 = vpop.permute.xlu1 %781  ;;  %1713 = vmatprep.mubr.bf16.mxu0 %v1082_v5  ;;  %v4227_v5 = vld [vmem:[#allocation14_spill] sm:$0xff] }
  0xd5   : > { %v1150_v16 = vsel %vm989_vm5, %v3389_v0, %v782_v52  ;;  %v519_v36 = vpop.permute.xlu0 %518 }
  0xd6   : > { %1883 = vmatmul.mubr.bf16.gmra.mxu1 %v1150_v16  ;;  %v1018_v34 = vsel %vm989_vm5, %v3757_v29, %v519_v36  ;;  %v4228_v36 = vld [vmem:[#allocation15_spill] sm:$0xff] }
  0xd8   : > { %v931_v51 = vpop.permute.xlu1 %930 }
  0xd9   : > { %v615_v24 = vpop.permute.xlu0 %614  ;;  %v1226_v9 = vsel %vm989_vm5, %v3450_v26, %v931_v51 }
  0xda   : > { %1890 = vmatprep.mubr.bf16.mxu1 %v1226_v9  ;;  %v1086_v18 = vsel %vm989_vm5, %v3326_v48, %v615_v24  ;;  %v4229_v9 = vld [vmem:[#allocation6_spill] sm:$0xff] }
  0xdb   : > { %1714 = vmatmul.mubr.bf16.gmra.mxu0 %v1018_v34 }
  0xdc   : > { %v784_v58 = vpop.permute.xlu1 %783  ;;  %1721 = vmatprep.mubr.bf16.mxu0 %v1086_v18 }
  0xdd   : > { %v1154_v0 = vsel %vm989_vm5, %v3398_v63, %v784_v58  ;;  %v521_v61 = vpop.permute.xlu0 %520 }
  0xde   : > { %1891 = vmatmul.mubr.bf16.gmra.mxu1 %v1154_v0  ;;  %v1021_v59 = vsel %vm989_vm5, %v4217_v41, %v521_v61  ;;  %v4230_v61 = vld [vmem:[#allocation17_spill] sm:$0xff] }
  0xe0   : > { %v933_v2 = vpop.permute.xlu1 %932 }
  0xe1   : > { %v617_v28 = vpop.permute.xlu0 %616  ;;  %v1230_v26 = vsel %vm989_vm5, %v4218_v46, %v933_v2 }
  0xe2   : > { %1898 = vmatprep.mubr.bf16.mxu1 %v1230_v26  ;;  %v1090_v48 = vsel %vm989_vm5, %v4219_v14, %v617_v28  ;;  %v4232_v14 = vld [vmem:[#allocation7_spill] sm:$0xff] }
  0xe3   : > { %1722 = vmatmul.mubr.bf16.gmra.mxu0 %v1021_v59  ;;  %v4231_v59 = vld [vmem:[#allocation18_spill] sm:$0xff] }
  0xe4   : > { %v786_v60 = vpop.permute.xlu1 %785  ;;  %1729 = vmatprep.mubr.bf16.mxu0 %v1090_v48 }
  0xe5   : > { %v1158_v63 = vsel %vm989_vm5, %v4220_v38, %v786_v60  ;;  %v523_v55 = vpop.permute.xlu0 %522  ;;  %v4233_v38 = vld [vmem:[#allocation20_spill] sm:$0xff] }
  0xe6   : > { %1899 = vmatmul.mubr.bf16.gmra.mxu1 %v1158_v63  ;;  %v1024_v56 = vsel %vm989_vm5, %v4221_v32, %v523_v55 }
  0xe8   : > { %v935_v8 = vpop.permute.xlu1 %934 }
  0xe9   : > { %v619_v7 = vpop.permute.xlu0 %618  ;;  %v1234_v22 = vsel %vm989_vm5, %v4222_v4, %v935_v8  ;;  %v4234_v8 = vld [vmem:[#allocation21_spill] sm:$0xff]  ;;  %v4235_v4 = vld [vmem:[#allocation10_spill] sm:$0xff] }
  0xea   : > { %1906 = vmatprep.mubr.bf16.mxu1 %v1234_v22  ;;  %v1094_v20 = vsel %vm989_vm5, %v4223_v12, %v619_v7 }
  0xeb   : > { %1730 = vmatmul.mubr.bf16.gmra.mxu0 %v1024_v56 }
  0xec   : > { %v788_v6 = vpop.permute.xlu1 %787  ;;  %1737 = vmatprep.mubr.bf16.mxu0 %v1094_v20 }
  0xed   : > { %v1162_v17 = vsel %vm989_vm5, %v4224_v57, %v788_v6  ;;  %v525_v3 = vpop.permute.xlu0 %524  ;;  %v814_v6 = vrot.slane %v3576_v39, 2  ;;  %v4236_v57 = vshrl.u32 %v3540_v1, 16 }
  0xee   : > { %1907 = vmatmul.mubr.bf16.gmra.mxu1 %v1162_v17  ;;  %v1027_v53 = vsel %vm989_vm5, %v4225_v49, %v525_v3  ;;  %v712_v3 = vrot.slane %v710_v45, 2  ;;  %v257_v45 = vld [vmem:[%s2880_s27 + $0x10] sm:$0x8] }
  0xef   : > { %v709_v17 = vrot.slane %v4236_v57, 1  ;;  %v981_v57 = vrot.slane %v3504_v37, 3 }
  0xf0   : > { %v937_v50 = vpop.permute.xlu1 %936 }
  0xf1   : > { %v621_v47 = vpop.permute.xlu0 %620  ;;  %v1238_v54 = vsel %vm989_vm5, %v4226_v42, %v937_v50  ;;  %v575_v50 = vrot.slane %v3623_v11, 1  ;;  %v815_v42 = vsel %vm727_vm3, %v3655_v13, %v814_v6 }
  0xf2   : > { %1914 = vmatprep.mubr.bf16.mxu1 %v1238_v54  ;;  %v1098_v52 = vsel %vm989_vm5, %v4227_v5, %v621_v47  ;;  %v713_v54 = vor.u32 %v712_v3, %v709_v17  ;;  %v2781_v5 = vld [vmem:[%s2880_s27 + $0xa0] ss:$0 sps:$4 sm:$0x33]  }
  0xf3   : > { %1738 = vmatmul.mubr.bf16.gmra.mxu0 %v1027_v53  ;;  %v719_v53 = vshll.u32 %v3658_v10, 16  ;;  %v576_v11 = vsel %vm539_vm0, %v3561_v30, %v575_v50  ;;  %v816_v30 = vrot.slane %v2781_v5, 2  ;;  %v965_v50 = vrot.slane %v3757_v29, 3 }
  0xf4   : > { %v790_v16 = vpop.permute.xlu1 %789  ;;  %1745 = vmatprep.mubr.bf16.mxu0 %v1098_v52 }
  0xf5   : > { %v1166_v51 = vsel %vm989_vm5, %v4228_v36, %v790_v16  ;;  %v527_v34 = vpop.permute.xlu0 %526  ;;  %v4237_v16 = vld [vmem:[#allocation13_spill] sm:$0xff] }
  0xf6   : > { %1915 = vmatmul.mubr.bf16.gmra.mxu1 %v1166_v51  ;;  %v1030_v18 = vsel %vm989_vm5, %v4229_v9, %v527_v34 }
  0xf8   : > { %v939_v24 = vpop.permute.xlu1 %938 }
  0xf9   : > { %v623_v58 = vpop.permute.xlu0 %622  ;;  %v1242_v0 = vsel %vm989_vm5, %v3597_v33, %v939_v24  ;;  %v2791_v24 = vld [vmem:[%s2880_s27 + $0x14] sm:$0xf] }
  0xfa   : > { %1922 = vmatprep.mubr.bf16.mxu1 %v1242_v0  ;;  %v1102_v2 = vsel %vm989_vm5, %v4230_v61, %v623_v58  ;;  %v714_v58 = vsel %vm633_vm4, %v3578_v19, %v713_v54 }
  0xfb   : > { %1746 = vmatmul.mubr.bf16.gmra.mxu0 %v1030_v18  ;;  %v2485_v18 = vcombine.low %v257_v45, %v2791_v24 }
  0xfc   : > { %v792_v41 = vpop.permute.xlu1 %791  ;;  %1753 = vmatprep.mubr.bf16.mxu0 %v1102_v2 }
  0xfd   : > { %v1170_v28 = vsel %vm989_vm5, %v4231_v59, %v792_v41  ;;  %v529_v46 = vpop.permute.xlu0 %528  ;;  %v952_v59 = vrot.slane %v2485_v18, 3 }
  0xfe   : > { %1923 = vmatmul.mubr.bf16.gmra.mxu1 %v1170_v28  ;;  %v1033_v48 = vsel %vm989_vm5, %v4232_v14, %v529_v46  ;;  %v953_v28 = vrot.slane %v3691_v35, 3  ;;  %v817_v46 = vsel %vm727_vm3, %v814_v6, %v816_v30  ;;  %v961_v6 = vrot.slane %v3735_v23, 3 }
  0xff   : > { %v963_v23 = vrot.slane %v3746_v21, 3 }
 0x100   : > { %v941_v26 = vpop.permute.xlu1 %940 }
 0x101   : > { %v625_v60 = vpop.permute.xlu0 %624  ;;  %v1246_v33 = vsel %vm989_vm5, %v3636_v44, %v941_v26 }
 0x102   : > { %1930 = vmatprep.mubr.bf16.mxu1 %v1246_v33  ;;  %v1106_v63 = vsel %vm989_vm5, %v4233_v38, %v625_v60  ;;  %v2792_v60 = vld [vmem:[%s2880_s27 + $0x60] sm:$0xff]   ;;  %v973_v38 = vrot.slane %v4229_v9, 3  ;;  %v975_v9 = vrot.slane %v4232_v14, 3  ;;  %v979_v14 = vrot.slane %v4237_v16, 3 }
 0x103   : > { %1754 = vmatmul.mubr.bf16.gmra.mxu0 %v1033_v48  ;;  %v971_v33 = vrot.slane %v2792_v60, 3 }
 0x104   : > { %v794_v55 = vpop.permute.xlu1 %793  ;;  %1761 = vmatprep.mubr.bf16.mxu0 %v1106_v63  ;;  %v982_v3 = vsel %vm951_vm6, %v979_v14, %v981_v57 }
 0x105   : > { %v1174_v32 = vsel %vm989_vm5, %v4234_v8, %v794_v55  ;;  %v531_v56 = vpop.permute.xlu0 %530  ;;  %v954_v55 = vsel %vm951_vm6, %v952_v59, %v953_v28 }
 0x106   : > { %1931 = vmatmul.mubr.bf16.gmra.mxu1 %v1174_v32  ;;  %v1036_v22 = vsel %vm989_vm5, %v4235_v4, %v531_v56  ;;  %v955_v32 = vrot.slane %v3702_v25, 3  ;;  %v974_v56 = vsel %vm951_vm6, %v971_v33, %v973_v38  ;;  %v959_v25 = vrot.slane %v3724_v27, 3 }
 0x108   : > { %v943_v7 = vpop.permute.xlu1 %942  ;;  %v962_v17 = vsel %vm951_vm6, %v959_v25, %v961_v6 }
 0x109   : > { %v627_v12 = vpop.permute.xlu0 %626  ;;  %v1250_v44 = vsel %vm989_vm5, %v3670_v40, %v943_v7  ;;  %v716_v40 = vshrl.u32 %v3658_v10, 16  ;;  %v721_v10 = vrot.slane %v719_v53, 2  ;;  %v957_v7 = vrot.slane %v3713_v43, 3 }
 0x10a   : > { %1938 = vmatprep.mubr.bf16.mxu1 %v1250_v44  ;;  %v1110_v20 = vsel %vm989_vm5, %v3583_v31, %v627_v12  ;;  %v977_v12 = vrot.slane %v4235_v4, 3  ;;  %v966_v53 = vsel %vm951_vm6, %v963_v23, %v965_v50 }
 0x10b   : > { %1762 = vmatmul.mubr.bf16.gmra.mxu0 %v1036_v22  ;;  %v718_v51 = vrot.slane %v716_v40, 1  ;;  %v956_v22 = vsel %vm951_vm6, %v953_v28, %v955_v32  ;;  %v958_v44 = vsel %vm951_vm6, %v955_v32, %v957_v7  ;;  %v960_v4 = vsel %vm951_vm6, %v957_v7, %v959_v25 }
 0x10c   : > { %v796_v49 = vpop.permute.xlu1 %795  ;;  %1769 = vmatprep.mubr.bf16.mxu0 %v1110_v20  ;;  %v976_v20 = vsel %vm951_vm6, %v973_v38, %v975_v9  ;;  %v978_v43 = vsel %vm951_vm6, %v975_v9, %v977_v12  ;;  %v980_v27 = vsel %vm951_vm6, %v977_v12, %v979_v14  ;;  %v985_v40 = vrot.slane %v3576_v39, 3 }
 0x10d   : > { %v1178_v31 = vsel %vm989_vm5, %v3589_v62, %v796_v49  ;;  %v533_v47 = vpop.permute.xlu0 %532  ;;  %v722_v61 = vor.u32 %v721_v10, %v718_v51  ;;  %v964_v49 = vsel %vm951_vm6, %v961_v6, %v963_v23 }
 0x10e   : > { %1939 = vmatmul.mubr.bf16.gmra.mxu1 %v1178_v31  ;;  %v1039_v36 = vsel %vm989_vm5, %v4237_v16, %v533_v47  ;;  %v2793_v31 = vld [vmem:[%s2880_s27 + $0x50] sm:$0xff]  }
 0x10f   : > { %v723_v48 = vsel %vm633_vm4, %v713_v54, %v722_v61  ;;  %v967_v29 = vrot.slane %v2793_v31, 3 }
 0x110   : > { %v945_v52 = vpop.permute.xlu1 %944 }
 0x111   : > { %v629_v34 = vpop.permute.xlu0 %628  ;;  %v1254_v62 = vsel %vm989_vm5, %v815_v42, %v945_v52  ;;  %v2794_v42 = vld [vmem:[%s2880_s27 + $0x58] sm:$0xff]   ;;  %v968_v39 = vsel %vm951_vm6, %v965_v50, %v967_v29 }
 0x112   : > { %1946 = vmatprep.mubr.bf16.mxu1 %v1254_v62  ;;  %v1114_v13 = vsel %vm989_vm5, %v576_v11, %v629_v34  ;;  %v969_v54 = vrot.slane %v2794_v42, 3 }
 0x113   : > { %1770 = vmatmul.mubr.bf16.gmra.mxu0 %v1039_v36 }
 0x114   : > { %v798_v0 = vpop.permute.xlu1 %797  ;;  %1777 = vmatprep.mubr.bf16.mxu0 %v1114_v13  ;;  %v970_v45 = vsel %vm951_vm6, %v967_v29, %v969_v54  ;;  %v972_v5 = vsel %vm951_vm6, %v969_v54, %v971_v33 }
 0x115   : > { %v1182_v2 = vsel %vm989_vm5, %v714_v58, %v798_v0  ;;  %v535_v41 = vpop.permute.xlu0 %534 }
 0x116   : > { %1947 = vmatmul.mubr.bf16.gmra.mxu1 %v1182_v2  ;;  %v1042_v26 = vsel %vm989_vm5, %v3504_v37, %v535_v41  ;;  %v983_v37 = vrot.slane %v3540_v1, 3  ;;  %v987_v1 = vrot.slane %v3626_v15, 3  ;;  %v3900_v15 = vld [vmem:[%s4168_s2] ss:$0 sm:$0xff] }
 0x118   : > { %v800_v19 = vpop.permute.xlu1 %799  ;;  %v984_v21 = vsel %vm951_vm6, %v981_v57, %v983_v37  ;;  %v986_v47 = vsel %vm951_vm6, %v983_v37, %v985_v40  ;;  %v988_v11 = vsel %vm951_vm6, %v985_v40, %v987_v1 }
 0x119   : > { %v947_v63 = vpop.permute.xlu0 %946  ;;  %v1186_v35 = vsel %vm989_vm5, %v723_v48, %v800_v19 }
 0x11a   : > { %v1258_v8 = vsel %vm989_vm5, %v817_v46, %v947_v63 }
 0x11b   : > { %1778 = vmatmul.mubr.bf16.gmra.mxu0 %v1042_v26  ;;  %1954 = vmatprep.mubr.bf16.mxu1 %v1258_v8 }
 0x11c   : > { %2645 = vmatprep.mubr.msk.bf16.mxu0 %vm989_vm5, %v954_v55 }
 0x11e   : > { %1955 = vmatmul.mubr.bf16.gmra.mxu1 %v1186_v35 }
 0x11f   : > { %2665 = vmatprep.mubr.msk.bf16.mxu1 %vm989_vm5, %v974_v56 }
 0x123   : > { %2646 = vmatmul.mubr.msk.bf16.vlgmr.msra.gmra.mxu0 %vm989_vm5, %v956_v22 }
 0x124   : > { %2649 = vmatprep.mubr.msk.bf16.mxu0 %vm989_vm5, %v958_v44 }
 0x126   : > { %2666 = vmatmul.mubr.msk.bf16.vlgmr.msra.gmra.mxu1 %vm989_vm5, %v976_v20 }
 0x127   : > { %2669 = vmatprep.mubr.msk.bf16.mxu1 %vm989_vm5, %v978_v43 }
 0x12b   : > { %2650 = vmatmul.mubr.msk.bf16.gmra.mxu0 %vm989_vm5, %v960_v4 }
 0x12c   : > { %2653 = vmatprep.mubr.msk.bf16.mxu0 %vm989_vm5, %v962_v17 }
 0x12e   : > { %2670 = vmatmul.mubr.msk.bf16.gmra.mxu1 %vm989_vm5, %v980_v27 }
 0x12f   : > { %2673 = vmatprep.mubr.msk.bf16.mxu1 %vm989_vm5, %v982_v3 }
 0x133   : > { %2654 = vmatmul.mubr.msk.bf16.gmra.mxu0 %vm989_vm5, %v964_v49 }
 0x134   : > { %2657 = vmatprep.mubr.msk.bf16.mxu0 %vm989_vm5, %v966_v53 }
 0x136   : > { %2674 = vmatmul.mubr.msk.bf16.gmra.mxu1 %vm989_vm5, %v984_v21 }
 0x137   : > { %2677 = vmatprep.mubr.msk.bf16.mxu1 %vm989_vm5, %v986_v47 }
 0x13b   : > { %2658 = vmatmul.mubr.msk.bf16.gmra.mxu0 %vm989_vm5, %v968_v39 }
 0x13c   : > { %2661 = vmatprep.mubr.msk.bf16.mxu0 %vm989_vm5, %v970_v45 }
 0x13e   : > { %2678 = vmatmul.mubr.msk.bf16.gmra.mxu1 %vm989_vm5, %v988_v11 }
 0x143   : > { %2662 = vmatmul.mubr.msk.bf16.gmra.mxu0 %vm989_vm5, %v972_v5 }
 0x153   : > { %v1643_v52 = vpop.f32.mrf.mxu0 }
 0x154   : > { %v1644_v16 = vadd.f32 %v3900_v15, %v1643_v52 }
 0x155   : > { %v1645_v36 = vpop.f32.mrf.mxu0 }
 0x156   : > { %v1820_v51 = vpop.f32.mrf.mxu1 }
 0x157   : > { %v1646_v10 = vpop.f32.mrf.mxu0  ;;  %v3903_v34 = vadd.f32 %v1820_v51, %v1644_v16 }
 0x158   : > { %v1822_v62 = vpop.f32.mrf.mxu1  ;;  %v1647_v24 = vadd.f32 %v3900_v15, %v1646_v10 }
 0x159   : > { %v1648_v18 = vpop.f32.mrf.mxu0 }
 0x15a   : > { %v1823_v13 = vpop.f32.mrf.mxu1 }
 0x15b   : > { %v1651_v58 = vpop.f32.mrf.mxu0  ;;  %v3906_v30 = vadd.f32 %v1823_v13, %v1647_v24 }
 0x15c   : > { %v1825_v0 = vpop.f32.mrf.mxu1  ;;  %v1652_v61 = vadd.f32 %v3900_v15, %v1651_v58 }
 0x15d   : > { %v1653_v2 = vpop.f32.mrf.mxu0 }
 0x15e   : > { %v1828_v41 = vpop.f32.mrf.mxu1 }
 0x15f   : > { %v1654_v59 = vpop.f32.mrf.mxu0  ;;  %v3909_v28 = vadd.f32 %v1828_v41, %v1652_v61 }
 0x160   : > { %v1830_v46 = vpop.f32.mrf.mxu1  ;;  %v1655_v26 = vadd.f32 %v3900_v15, %v1654_v59 }
 0x161   : > { %v1656_v19 = vpop.f32.mrf.mxu0 }
 0x162   : > { %v1831_v48 = vpop.f32.mrf.mxu1 }
 0x163   : > { %v1659_v60 = vpop.f32.mrf.mxu0  ;;  %v3912_v33 = vadd.f32 %v1831_v48, %v1655_v26 }
 0x164   : > { %v1833_v38 = vpop.f32.mrf.mxu1  ;;  %v1660_v63 = vadd.f32 %v3900_v15, %v1659_v60 }
 0x165   : > { %v1661_v55 = vpop.f32.mrf.mxu0 }
 0x166   : > { %v1836_v8 = vpop.f32.mrf.mxu1 }
 0x167   : > { %v1662_v35 = vpop.f32.mrf.mxu0  ;;  %v3915_v32 = vadd.f32 %v1836_v8, %v1660_v63 }
 0x168   : > { %v1838_v56 = vpop.f32.mrf.mxu1  ;;  %v1663_v7 = vadd.f32 %v3900_v15, %v1662_v35 }
 0x169   : > { %v1664_v9 = vpop.f32.mrf.mxu0 }
 0x16a   : > { %v1839_v22 = vpop.f32.mrf.mxu1 }
 0x16b   : > { %v1667_v12 = vpop.f32.mrf.mxu0  ;;  %v3918_v44 = vadd.f32 %v1839_v22, %v1663_v7 }
 0x16c   : > { %v1841_v20 = vpop.f32.mrf.mxu1  ;;  %v1668_v25 = vadd.f32 %v3900_v15, %v1667_v12 }
 0x16d   : > { %v1669_v43 = vpop.f32.mrf.mxu0 }
 0x16e   : > { %v1844_v6 = vpop.f32.mrf.mxu1 }
 0x16f   : > { %v1670_v14 = vpop.f32.mrf.mxu0  ;;  %v3921_v4 = vadd.f32 %v1844_v6, %v1668_v25 }
 0x170   : > { %v1846_v57 = vpop.f32.mrf.mxu1  ;;  %v1671_v17 = vadd.f32 %v3900_v15, %v1670_v14 }
 0x171   : > { %v1672_v27 = vpop.f32.mrf.mxu0 }
 0x172   : > { %v1847_v23 = vpop.f32.mrf.mxu1 }
 0x173   : > { %v1675_v3 = vpop.f32.mrf.mxu0  ;;  %v3924_v50 = vadd.f32 %v1847_v23, %v1671_v17 }
 0x174   : > { %v1849_v37 = vpop.f32.mrf.mxu1  ;;  %v1676_v49 = vadd.f32 %v3900_v15, %v1675_v3 }
 0x175   : > { %v1677_v40 = vpop.f32.mrf.mxu0 }
 0x176   : > { %v1852_v53 = vpop.f32.mrf.mxu1 }
 0x177   : > { %v1678_v21 = vpop.f32.mrf.mxu0  ;;  %v3927_v31 = vadd.f32 %v1852_v53, %v1676_v49 }
 0x178   : > { %v1854_v29 = vpop.f32.mrf.mxu1  ;;  %v1679_v47 = vadd.f32 %v3900_v15, %v1678_v21 }
 0x179   : > { %v1680_v42 = vpop.f32.mrf.mxu0 }
 0x17a   : > { %v1855_v54 = vpop.f32.mrf.mxu1 }
 0x17b   : > { %v1683_v1 = vpop.f32.mrf.mxu0  ;;  %v3930_v39 = vadd.f32 %v1855_v54, %v1679_v47 }
 0x17c   : > { %v1857_v45 = vpop.f32.mrf.mxu1  ;;  %v1684_v11 = vadd.f32 %v3900_v15, %v1683_v1 }
 0x17d   : > { %v1685_v5 = vpop.f32.mrf.mxu0 }
 0x17e   : > { %v1860_v52 = vpop.f32.mrf.mxu1 }
 0x17f   : > { %v1686_v16 = vpop.f32.mrf.mxu0  ;;  %v3933_v36 = vadd.f32 %v1860_v52, %v1684_v11 }
 0x180   : > { %v1862_v51 = vpop.f32.mrf.mxu1  ;;  %v1687_v10 = vadd.f32 %v3900_v15, %v1686_v16 }
 0x181   : > { %v1688_v62 = vpop.f32.mrf.mxu0 }
 0x182   : > { %v1863_v24 = vpop.f32.mrf.mxu1 }
 0x183   : > { %v1691_v18 = vpop.f32.mrf.mxu0  ;;  %v3936_v13 = vadd.f32 %v1863_v24, %v1687_v10 }
 0x184   : > { %v1865_v58 = vpop.f32.mrf.mxu1  ;;  %v1692_v0 = vadd.f32 %v3900_v15, %v1691_v18 }
 0x185   : > { %v1693_v61 = vpop.f32.mrf.mxu0 }
 0x186   : > { %v1868_v2 = vpop.f32.mrf.mxu1 }
 0x187   : > { %v1694_v41 = vpop.f32.mrf.mxu0  ;;  %v3939_v59 = vadd.f32 %v1868_v2, %v1692_v0 }
 0x188   : > { %v1870_v46 = vpop.f32.mrf.mxu1  ;;  %v1695_v26 = vadd.f32 %v3900_v15, %v1694_v41 }
 0x189   : > { %v1696_v19 = vpop.f32.mrf.mxu0 }
 0x18a   : > { %v1871_v48 = vpop.f32.mrf.mxu1 }
 0x18b   : > { %v1699_v60 = vpop.f32.mrf.mxu0  ;;  %v3942_v38 = vadd.f32 %v1871_v48, %v1695_v26 }
 0x18c   : > { %v1873_v63 = vpop.f32.mrf.mxu1  ;;  %v1700_v55 = vadd.f32 %v3900_v15, %v1699_v60 }
 0x18d   : > { %v1701_v8 = vpop.f32.mrf.mxu0 }
 0x18e   : > { %v1876_v35 = vpop.f32.mrf.mxu1 }
 0x18f   : > { %v1702_v56 = vpop.f32.mrf.mxu0  ;;  %v3945_v7 = vadd.f32 %v1876_v35, %v1700_v55 }
 0x190   : > { %v1878_v9 = vpop.f32.mrf.mxu1  ;;  %v1703_v22 = vadd.f32 %v3900_v15, %v1702_v56 }
 0x191   : > { %v1704_v12 = vpop.f32.mrf.mxu0 }
 0x192   : > { %v1879_v20 = vpop.f32.mrf.mxu1 }
 0x193   : > { %v1707_v25 = vpop.f32.mrf.mxu0  ;;  %v3948_v43 = vadd.f32 %v1879_v20, %v1703_v22 }
 0x194   : > { %v1881_v6 = vpop.f32.mrf.mxu1  ;;  %v1708_v14 = vadd.f32 %v3900_v15, %v1707_v25 }
 0x195   : > { %v1709_v57 = vpop.f32.mrf.mxu0 }
 0x196   : > { %v1884_v17 = vpop.f32.mrf.mxu1 }
 0x197   : > { %v1710_v27 = vpop.f32.mrf.mxu0  ;;  %v3951_v23 = vadd.f32 %v1884_v17, %v1708_v14 }
 0x198   : > { %v1886_v3 = vpop.f32.mrf.mxu1  ;;  %v1711_v37 = vadd.f32 %v3900_v15, %v1710_v27 }
 0x199   : > { %v1712_v49 = vpop.f32.mrf.mxu0 }
 0x19a   : > { %v1887_v40 = vpop.f32.mrf.mxu1 }
 0x19b   : > { %v1715_v53 = vpop.f32.mrf.mxu0  ;;  %v3954_v21 = vadd.f32 %v1887_v40, %v1711_v37 }
 0x19c   : > { %v1889_v29 = vpop.f32.mrf.mxu1  ;;  %v1716_v47 = vadd.f32 %v3900_v15, %v1715_v53 }
 0x19d   : > { %v1717_v42 = vpop.f32.mrf.mxu0 }
 0x19e   : > { %v1892_v54 = vpop.f32.mrf.mxu1 }
 0x19f   : > { %v1718_v1 = vpop.f32.mrf.mxu0  ;;  %v3957_v45 = vadd.f32 %v1892_v54, %v1716_v47 }
 0x1a0   : > { %v1894_v11 = vpop.f32.mrf.mxu1  ;;  %v1719_v5 = vadd.f32 %v3900_v15, %v1718_v1 }
 0x1a1   : > { %v1720_v52 = vpop.f32.mrf.mxu0 }
 0x1a2   : > { %v1895_v16 = vpop.f32.mrf.mxu1 }
 0x1a3   : > { %v1723_v51 = vpop.f32.mrf.mxu0  ;;  %v3960_v10 = vadd.f32 %v1895_v16, %v1719_v5 }
 0x1a4   : > { %v1897_v62 = vpop.f32.mrf.mxu1  ;;  %v1724_v24 = vadd.f32 %v3900_v15, %v1723_v51 }
 0x1a5   : > { %v1725_v18 = vpop.f32.mrf.mxu0 }
 0x1a6   : > { %v1900_v58 = vpop.f32.mrf.mxu1 }
 0x1a7   : > { %v1726_v0 = vpop.f32.mrf.mxu0  ;;  %v3963_v61 = vadd.f32 %v1900_v58, %v1724_v24 }
 0x1a8   : > { %v1902_v2 = vpop.f32.mrf.mxu1  ;;  %v1727_v41 = vadd.f32 %v3900_v15, %v1726_v0 }
 0x1a9   : > { %v1728_v46 = vpop.f32.mrf.mxu0 }
 0x1aa   : > { %v1903_v26 = vpop.f32.mrf.mxu1 }
 0x1ab   : > { %v1731_v19 = vpop.f32.mrf.mxu0  ;;  %v3966_v48 = vadd.f32 %v1903_v26, %v1727_v41 }
 0x1ac   : > { %v1905_v60 = vpop.f32.mrf.mxu1 }
 0x1ad   : > { %v1733_v63 = vpop.f32.mrf.mxu0 }
 0x1ae   : > { %v1908_v55 = vpop.f32.mrf.mxu1 }
 0x1af   : > { %v1734_v8 = vpop.f32.mrf.mxu0 }
 0x1b0   : > { %v1910_v35 = vpop.f32.mrf.mxu1 }
 0x1b1   : > { %v1736_v56 = vpop.f32.mrf.mxu0 }
 0x1b2   : > { %v3968_v9 = vpop.f32.mrf.mxu1 }
 0x1b3   : > { %v3970_v22 = vpop.f32.mrf.mxu0 }
 0x1b4   : > { %v1913_v12 = vpop.f32.mrf.mxu1 }
 0x1b5   : > { %v1741_v20 = vpop.f32.mrf.mxu0 }
 0x1b6   : > { %v3972_v25 = vpop.f32.mrf.mxu1 }
 0x1b7   : > { %v3974_v6 = vpop.f32.mrf.mxu0 }
 0x1b8   : > { %v1918_v14 = vpop.f32.mrf.mxu1 }
 0x1b9   : > { %v1744_v57 = vpop.f32.mrf.mxu0 }
 0x1ba   : > { %v3976_v17 = vpop.f32.mrf.mxu1 }
 0x1bb   : > { %v3978_v27 = vpop.f32.mrf.mxu0 }
 0x1bc   : > { %v1921_v3 = vpop.f32.mrf.mxu1 }
 0x1bd   : > { %v1749_v37 = vpop.f32.mrf.mxu0 }
 0x1be   : > { %v3980_v49 = vpop.f32.mrf.mxu1 }
 0x1bf   : > { %v3982_v40 = vpop.f32.mrf.mxu0 }
 0x1c0   : > { %v1926_v53 = vpop.f32.mrf.mxu1 }
 0x1c1   : > { %v1752_v29 = vpop.f32.mrf.mxu0 }
 0x1c2   : > { %v3984_v47 = vpop.f32.mrf.mxu1 }
 0x1c3   : > { %v3986_v42 = vpop.f32.mrf.mxu0 }
 0x1c4   : > { %v1929_v54 = vpop.f32.mrf.mxu1 }
 0x1c5   : > { %v1757_v1 = vpop.f32.mrf.mxu0 }
 0x1c6   : > { %v3988_v11 = vpop.f32.mrf.mxu1 }
 0x1c7   : > { %v3990_v5 = vpop.f32.mrf.mxu0 }
 0x1c8   : > { %v1934_v52 = vpop.f32.mrf.mxu1 }
 0x1c9   : > { %v1760_v16 = vpop.f32.mrf.mxu0 }
 0x1ca   : > { %v3992_v51 = vpop.f32.mrf.mxu1  ;;  %v1732_v16 = vadd.f32 %v3900_v15, %v1731_v19 }
 0x1cb   : > { %v3994_v62 = vpop.f32.mrf.mxu0 }
 0x1cc   : > { %v1937_v24 = vpop.f32.mrf.mxu1 }
 0x1cd   : > { %v1765_v18 = vpop.f32.mrf.mxu0 }
 0x1ce   : > { %v3996_v58 = vpop.f32.mrf.mxu1 }
 0x1cf   : > { %v3998_v0 = vpop.f32.mrf.mxu0 }
 0x1d0   : > { %v1942_v2 = vpop.f32.mrf.mxu1 }
 0x1d1   : > { %v1768_v41 = vpop.f32.mrf.mxu0 }
 0x1d2   : > { %v4000_v46 = vpop.f32.mrf.mxu1  ;;  %v1909_v41 = vadd.f32 %v1908_v55, %v1732_v16 }
 0x1d3   : > { %v4002_v26 = vpop.f32.mrf.mxu0 }
 0x1d4   : > { %v1945_v60 = vpop.f32.mrf.mxu1 }
 0x1d5   : > { %v1773_v63 = vpop.f32.mrf.mxu0 }
 0x1d6   : > { %v4004_v35 = vpop.f32.mrf.mxu1 }
 0x1d7   : > { %v4006_v56 = vpop.f32.mrf.mxu0 }
 0x1d8   : > { %v1950_v12 = vpop.f32.mrf.mxu1 }
 0x1d9   : > { %v1776_v20 = vpop.f32.mrf.mxu0 }
 0x1da   : > { %v4008_v14 = vpop.f32.mrf.mxu1 }
 0x1db   : > { %v4010_v57 = vpop.f32.mrf.mxu0 }
 0x1dc   : > { %v1953_v3 = vpop.f32.mrf.mxu1 }
 0x1dd   : > { %v1781_v37 = vpop.f32.mrf.mxu0  ;;  %v1735_v3 = vadd.f32 %v3900_v15, %v1734_v8 }
 0x1de   : > { %v4012_v53 = vpop.f32.mrf.mxu1 }
 0x1df   : > { %v4014_v29 = vpop.f32.mrf.mxu0 }
 0x1e0   : > { %v1958_v54 = vpop.f32.mrf.mxu1 }
 0x1e1   : > { %v1784_v1 = vpop.f32.mrf.mxu0 }
 0x1e2   : > { %v4016_v52 = vpop.f32.mrf.mxu1 }
 0x1e3   : > { %v2647_v24 = vpop.f32.mrf.mxu0 }
 0x1e4   : > { %v2006_v18 = vadd.f32 %v2647_v24, %v3909_v28  ;;  %v1961_v2 = vpop.f32.mrf.mxu1 }
 0x1e5   : > { %v1997_v60 = vpop.f32.mrf.mxu0 }
 0x1e6   : > { %v2142_v63 = vmax.f32 %v2006_v18, 0.0  ;;  %v1998_v12 = vadd.f32 %v1997_v60, %v3903_v34  ;;  %v2667_v20 = vpop.f32.mrf.mxu1  ;;  %v1912_v34 = vadd.f32 %v3968_v9, %v1735_v3  ;;  %v1740_v3 = vadd.f32 %v3900_v15, %v3970_v22 }
 0x1e7   : > { %v2648_v19 = vpop.f32.mrf.mxu0  ;;  %v2086_v37 = vadd.f32 %v2667_v20, %v1909_v41 }
 0x1e8   : > { %v2581_v54 = vpack.c.bf16 %v2142_v63, %v2142_v63  ;;  %v2140_v28 = vmax.f32 %v1998_v12, 0.0  ;;  %v2009_v55 = vadd.f32 %v2648_v19, %v3912_v33  ;;  %v2077_v1 = vpop.f32.mrf.mxu1  ;;  %v1748_v63 = vadd.f32 %v3900_v15, %v3978_v27 }
 0x1e9   : > { %v2162_v16 = vmax.f32 %v2086_v37, 0.0  ;;  %v2000_v24 = vpop.f32.mrf.mxu0  ;;  %v2078_v8 = vadd.f32 %v2077_v1, %v3963_v61  ;;  %v1917_v22 = vadd.f32 %v3972_v25, %v1740_v3  ;;  %v1743_v25 = vadd.f32 %v3900_v15, %v3974_v6 }
 0x1ea   : > { %2323 = vst.msk [vmem:[%s4026_s6 + $0x8] sm:$0xf] %vm2320_vm7, %v2581_v54  ;;  %v2579_v18 = vpack.c.bf16 %v2140_v28, %v2140_v28  ;;  %v2143_v2 = vmax.f32 %v2009_v55, 0.0  ;;  %v2001_v60 = vadd.f32 %v2000_v24, %v3906_v30  ;;  %v2668_v41 = vpop.f32.mrf.mxu1  ;;  %v1925_v54 = vadd.f32 %v3980_v49, %v1748_v63 }
 0x1eb   : > { %v2601_v33 = vpack.c.bf16 %v2162_v16, %v2162_v16  ;;  %v2160_v12 = vmax.f32 %v2078_v8, 0.0  ;;  %v2651_v20 = vpop.f32.mrf.mxu0  ;;  %v2089_v9 = vadd.f32 %v2668_v41, %v1912_v34  ;;  %v1751_v49 = vadd.f32 %v3900_v15, %v3982_v40 }
 0x1ec   : > { %2321 = vst.msk [vmem:[%s4026_s6] sm:$0xf] %vm2320_vm7, %v2579_v18  ;;  %v2582_v61 = vpack.c.bf16 %v2143_v2, %v2143_v2  ;;  %v2141_v19 = vmax.f32 %v2001_v60, 0.0  ;;  %v2022_v37 = vadd.f32 %v2651_v20, %v3921_v4  ;;  %v2080_v30 = vpop.f32.mrf.mxu1  ;;  %v1920_v3 = vadd.f32 %v3976_v17, %v1743_v25 }
 0x1ed   : > { %2343 = vst.msk [vmem:[%s4026_s6 + $0x58] sm:$0xf] %vm2320_vm7, %v2601_v33  ;;  %v2599_v27 = vpack.c.bf16 %v2160_v12, %v2160_v12  ;;  %v2163_v28 = vmax.f32 %v2089_v9, 0.0  ;;  %v2013_v55 = vpop.f32.mrf.mxu0  ;;  %v2081_v1 = vadd.f32 %v2080_v30, %v3966_v48  ;;  %v1928_v40 = vadd.f32 %v3984_v47, %v1751_v49 }
 0x1ee   : > { %2324 = vst.msk [vmem:[%s4026_s6 + $0xc] sm:$0xf] %vm2320_vm7, %v2582_v61  ;;  %v2580_v34 = vpack.c.bf16 %v2141_v19, %v2141_v19  ;;  %v2146_v16 = vmax.f32 %v2022_v37, 0.0  ;;  %v2014_v4 = vadd.f32 %v2013_v55, %v3915_v32  ;;  %v2671_v24 = vpop.f32.mrf.mxu1  ;;  %v1764_v47 = vadd.f32 %v3900_v15, %v3994_v62 }
 0x1ef   : > { %2341 = vst.msk [vmem:[%s4026_s6 + $0x50] sm:$0xf] %vm2320_vm7, %v2599_v27  ;;  %v2602_v8 = vpack.c.bf16 %v2163_v28, %v2163_v28  ;;  %v2161_v18 = vmax.f32 %v2081_v1, 0.0  ;;  %v2652_v2 = vpop.f32.mrf.mxu0  ;;  %v2102_v48 = vadd.f32 %v2671_v24, %v1925_v54  ;;  %v1756_v17 = vadd.f32 %v3900_v15, %v3986_v42 }
 0x1f0   : > { %2322 = vst.msk [vmem:[%s4026_s6 + $0x4] sm:$0xf] %vm2320_vm7, %v2580_v34  ;;  %v2585_v60 = vpack.c.bf16 %v2146_v16, %v2146_v16  ;;  %v2144_v41 = vmax.f32 %v2014_v4, 0.0  ;;  %v2025_v32 = vadd.f32 %v2652_v2, %v3924_v50  ;;  %v2093_v63 = vpop.f32.mrf.mxu1  ;;  %v1941_v62 = vadd.f32 %v3996_v58, %v1764_v47 }
 0x1f1   : > { %2344 = vst.msk [vmem:[%s4026_s6 + $0x5c] sm:$0xf] %vm2320_vm7, %v2602_v8  ;;  %v2600_v33 = vpack.c.bf16 %v2161_v18, %v2161_v18  ;;  %v2166_v12 = vmax.f32 %v2102_v48, 0.0  ;;  %v2016_v20 = vpop.f32.mrf.mxu0  ;;  %v2094_v9 = vadd.f32 %v2093_v63, %v1917_v22  ;;  %v1933_v24 = vadd.f32 %v3988_v11, %v1756_v17 }
 0x1f2   : > { %2327 = vst.msk [vmem:[%s4026_s6 + $0x18] sm:$0xf] %vm2320_vm7, %v2585_v60  ;;  %v2583_v6 = vpack.c.bf16 %v2144_v41, %v2144_v41  ;;  %v2147_v61 = vmax.f32 %v2025_v32, 0.0  ;;  %v2017_v19 = vadd.f32 %v2016_v20, %v3918_v44  ;;  %v2672_v50 = vpop.f32.mrf.mxu1  ;;  %v1767_v58 = vadd.f32 %v3900_v15, %v3998_v0 }
 0x1f3   : > { %2342 = vst.msk [vmem:[%s4026_s6 + $0x54] sm:$0xf] %vm2320_vm7, %v2600_v33  ;;  %v2605_v37 = vpack.c.bf16 %v2166_v12, %v2166_v12  ;;  %v2164_v30 = vmax.f32 %v2094_v9, 0.0  ;;  %v2655_v54 = vpop.f32.mrf.mxu0  ;;  %v2105_v27 = vadd.f32 %v2672_v50, %v1928_v40  ;;  %v1759_v11 = vadd.f32 %v3900_v15, %v3990_v5 }
 0x1f4   : > { %2325 = vst.msk [vmem:[%s4026_s6 + $0x10] sm:$0xf] %vm2320_vm7, %v2583_v6  ;;  %v2586_v28 = vpack.c.bf16 %v2147_v61, %v2147_v61  ;;  %v2145_v55 = vmax.f32 %v2017_v19, 0.0  ;;  %v2038_v44 = vadd.f32 %v2655_v54, %v3933_v36  ;;  %v2096_v1 = vpop.f32.mrf.mxu1  ;;  %v1944_v0 = vadd.f32 %v4000_v46, %v1767_v58 }
 0x1f5   : > { %2347 = vst.msk [vmem:[%s4026_s6 + $0x68] sm:$0xf] %vm2320_vm7, %v2605_v37  ;;  %v2603_v22 = vpack.c.bf16 %v2164_v30, %v2164_v30  ;;  %v2167_v34 = vmax.f32 %v2105_v27, 0.0  ;;  %v2029_v16 = vpop.f32.mrf.mxu0  ;;  %v2097_v4 = vadd.f32 %v2096_v1, %v1920_v3  ;;  %v1936_v20 = vadd.f32 %v3992_v51, %v1759_v11 }
 0x1f6   : > { %2328 = vst.msk [vmem:[%s4026_s6 + $0x1c] sm:$0xf] %vm2320_vm7, %v2586_v28  ;;  %v2584_v42 = vpack.c.bf16 %v2145_v55, %v2145_v55  ;;  %v2150_v49 = vmax.f32 %v2038_v44, 0.0  ;;  %v2030_v8 = vadd.f32 %v2029_v16, %v3927_v31  ;;  %v2675_v36 = vpop.f32.mrf.mxu1  ;;  %v1780_v46 = vadd.f32 %v3900_v15, %v4010_v57 }
 0x1f7   : > { %2345 = vst.msk [vmem:[%s4026_s6 + $0x60] sm:$0xf] %vm2320_vm7, %v2603_v22  ;;  %v2606_v18 = vpack.c.bf16 %v2167_v34, %v2167_v34  ;;  %v2165_v2 = vmax.f32 %v2097_v4, 0.0  ;;  %v2656_v48 = vpop.f32.mrf.mxu0  ;;  %v2118_v25 = vadd.f32 %v2675_v36, %v1941_v62  ;;  %v1772_v51 = vadd.f32 %v3900_v15, %v4002_v26 }
 0x1f8   : > { %2326 = vst.msk [vmem:[%s4026_s6 + $0x14] sm:$0xf] %vm2320_vm7, %v2584_v42  ;;  %v2589_v60 = vpack.c.bf16 %v2150_v49, %v2150_v49  ;;  %v2148_v41 = vmax.f32 %v2030_v8, 0.0  ;;  %v2041_v31 = vadd.f32 %v2656_v48, %v3936_v13  ;;  %v2109_v32 = vpop.f32.mrf.mxu1  ;;  %v1957_v57 = vadd.f32 %v4012_v53, %v1780_v46 }
 0x1f9   : > { %2348 = vst.msk [vmem:[%s4026_s6 + $0x6c] sm:$0xf] %vm2320_vm7, %v2606_v18  ;;  %v2604_v63 = vpack.c.bf16 %v2165_v2, %v2165_v2  ;;  %v2170_v40 = vmax.f32 %v2118_v25, 0.0  ;;  %v2032_v33 = vpop.f32.mrf.mxu0  ;;  %v2110_v12 = vadd.f32 %v2109_v32, %v1933_v24  ;;  %v1949_v55 = vadd.f32 %v4004_v35, %v1772_v51 }
 0x1fa   : > { %2331 = vst.msk [vmem:[%s4026_s6 + $0x28] sm:$0xf] %vm2320_vm7, %v2589_v60  ;;  %v2587_v5 = vpack.c.bf16 %v2148_v41, %v2148_v41  ;;  %v2151_v9 = vmax.f32 %v2041_v31, 0.0  ;;  %v2033_v3 = vadd.f32 %v2032_v33, %v3930_v39  ;;  %v2676_v13 = vpop.f32.mrf.mxu1  ;;  %v1783_v53 = vadd.f32 %v3900_v15, %v4014_v29 }
 0x1fb   : > { %2346 = vst.msk [vmem:[%s4026_s6 + $0x64] sm:$0xf] %vm2320_vm7, %v2604_v63  ;;  %v2609_v6 = vpack.c.bf16 %v2170_v40, %v2170_v40  ;;  %v2168_v61 = vmax.f32 %v2110_v12, 0.0  ;;  %v2659_v19 = vpop.f32.mrf.mxu0  ;;  %v2121_v50 = vadd.f32 %v2676_v13, %v1944_v0  ;;  %v1775_v35 = vadd.f32 %v3900_v15, %v4006_v56 }
 0x1fc   : > { %2329 = vst.msk [vmem:[%s4026_s6 + $0x20] sm:$0xf] %vm2320_vm7, %v2587_v5  ;;  %v2590_v47 = vpack.c.bf16 %v2151_v9, %v2151_v9  ;;  %v2149_v37 = vmax.f32 %v2033_v3, 0.0  ;;  %v2054_v39 = vadd.f32 %v2659_v19, %v3945_v7  ;;  %v2112_v30 = vpop.f32.mrf.mxu1  ;;  %v1960_v29 = vadd.f32 %v4016_v52, %v1783_v53 }
 0x1fd   : > { %2351 = vst.msk [vmem:[%s4026_s6 + $0x78] sm:$0xf] %vm2320_vm7, %v2609_v6  ;;  %v2607_v54 = vpack.c.bf16 %v2168_v61, %v2168_v61  ;;  %v2171_v27 = vmax.f32 %v2121_v50, 0.0  ;;  %v2045_v17 = vpop.f32.mrf.mxu0  ;;  %v2113_v28 = vadd.f32 %v2112_v30, %v1936_v20 }
 0x1fe   : > { %2332 = vst.msk [vmem:[%s4026_s6 + $0x2c] sm:$0xf] %vm2320_vm7, %v2590_v47  ;;  %v2588_v26 = vpack.c.bf16 %v2149_v37, %v2149_v37  ;;  %v2154_v44 = vmax.f32 %v2054_v39, 0.0  ;;  %v2046_v1 = vadd.f32 %v2045_v17, %v3939_v59  ;;  %v2679_v7 = vpop.f32.mrf.mxu1 }
 0x1ff   : > { %2349 = vst.msk [vmem:[%s4026_s6 + $0x70] sm:$0xf] %vm2320_vm7, %v2607_v54  ;;  %v2610_v62 = vpack.c.bf16 %v2171_v27, %v2171_v27  ;;  %v2169_v22 = vmax.f32 %v2113_v28, 0.0  ;;  %v2660_v34 = vpop.f32.mrf.mxu0  ;;  %v2134_v16 = vadd.f32 %v2679_v7, %v1957_v57 }
 0x200   : > { %2330 = vst.msk [vmem:[%s4026_s6 + $0x24] sm:$0xf] %vm2320_vm7, %v2588_v26  ;;  %v2593_v4 = vpack.c.bf16 %v2154_v44, %v2154_v44  ;;  %v2152_v24 = vmax.f32 %v2046_v1, 0.0  ;;  %v2057_v59 = vadd.f32 %v2660_v34, %v3948_v43  ;;  %v2125_v42 = vpop.f32.mrf.mxu1  ;;  %v1952_v43 = vadd.f32 %v4008_v14, %v1775_v35 }
 0x201   : > { %2352 = vst.msk [vmem:[%s4026_s6 + $0x7c] sm:$0xf] %vm2320_vm7, %v2610_v62  ;;  %v2608_v49 = vpack.c.bf16 %v2169_v22, %v2169_v22  ;;  %v2174_v8 = vmax.f32 %v2134_v16, 0.0  ;;  %v2048_v36 = vpop.f32.mrf.mxu0  ;;  %v2126_v58 = vadd.f32 %v2125_v42, %v1949_v55 }
 0x202   : > { %2335 = vst.msk [vmem:[%s4026_s6 + $0x38] sm:$0xf] %vm2320_vm7, %v2593_v4  ;;  %v2591_v15 = vpack.c.bf16 %v2152_v24, %v2152_v24  ;;  %v2155_v56 = vmax.f32 %v2057_v59, 0.0  ;;  %v2049_v18 = vadd.f32 %v2048_v36, %v3942_v38  ;;  %v2680_v2 = vpop.f32.mrf.mxu1 }
 0x203   : > { %2350 = vst.msk [vmem:[%s4026_s6 + $0x74] sm:$0xf] %vm2320_vm7, %v2608_v49  ;;  %v2613_v52 = vpack.c.bf16 %v2174_v8, %v2174_v8  ;;  %v2172_v48 = vmax.f32 %v2126_v58, 0.0  ;;  %v2663_v25 = vpop.f32.mrf.mxu0  ;;  %v2137_v11 = vadd.f32 %v2680_v2, %v1960_v29 }
 0x204   : > { %2333 = vst.msk [vmem:[%s4026_s6 + $0x30] sm:$0xf] %vm2320_vm7, %v2591_v15  ;;  %v2594_v60 = vpack.c.bf16 %v2155_v56, %v2155_v56  ;;  %v2153_v41 = vmax.f32 %v2049_v18, 0.0  ;;  %v2070_v31 = vadd.f32 %v2663_v25, %v3957_v45  ;;  %v2128_v32 = vpop.f32.mrf.mxu1 }
 0x205   : > { %2355 = vst.msk [vmem:[%s4026_s6 + $0x88] sm:$0xf] %vm2320_vm7, %v2613_v52  ;;  %v2611_v38 = vpack.c.bf16 %v2172_v48, %v2172_v48  ;;  %v2175_v14 = vmax.f32 %v2137_v11, 0.0  ;;  %v2061_v0 = vpop.f32.mrf.mxu0  ;;  %v2129_v63 = vadd.f32 %v2128_v32, %v1952_v43 }
 0x206   : > { %2336 = vst.msk [vmem:[%s4026_s6 + $0x3c] sm:$0xf] %vm2320_vm7, %v2594_v60  ;;  %v2592_v40 = vpack.c.bf16 %v2153_v41, %v2153_v41  ;;  %v2158_v33 = vmax.f32 %v2070_v31, 0.0  ;;  %v2062_v12 = vadd.f32 %v2061_v0, %v3951_v23 }
 0x207   : > { %2353 = vst.msk [vmem:[%s4026_s6 + $0x80] sm:$0xf] %vm2320_vm7, %v2611_v38  ;;  %v2614_v45 = vpack.c.bf16 %v2175_v14, %v2175_v14  ;;  %v2173_v20 = vmax.f32 %v2129_v63, 0.0  ;;  %v2664_v5 = vpop.f32.mrf.mxu0 }
 0x208   : > { %2334 = vst.msk [vmem:[%s4026_s6 + $0x34] sm:$0xf] %vm2320_vm7, %v2592_v40  ;;  %v2597_v9 = vpack.c.bf16 %v2158_v33, %v2158_v33  ;;  %v2156_v3 = vmax.f32 %v2062_v12, 0.0  ;;  %v2073_v13 = vadd.f32 %v2664_v5, %v3960_v10 }
 0x209   : > { %2356 = vst.msk [vmem:[%s4026_s6 + $0x8c] sm:$0xf] %vm2320_vm7, %v2614_v45  ;;  %v2612_v46 = vpack.c.bf16 %v2173_v20, %v2173_v20  ;;  %v2064_v6 = vpop.f32.mrf.mxu0 }
 0x20a   : > { %2339 = vst.msk [vmem:[%s4026_s6 + $0x48] sm:$0xf] %vm2320_vm7, %v2597_v9  ;;  %v2595_v23 = vpack.c.bf16 %v2156_v3, %v2156_v3  ;;  %v2159_v61 = vmax.f32 %v2073_v13, 0.0  ;;  %v2065_v19 = vadd.f32 %v2064_v6, %v3954_v21 }
 0x20b   : > { %2354 = vst.msk [vmem:[%s4026_s6 + $0x84] sm:$0xf] %vm2320_vm7, %v2612_v46 }
 0x20c   : > { %2337 = vst.msk [vmem:[%s4026_s6 + $0x40] sm:$0xf] %vm2320_vm7, %v2595_v23  ;;  %v2598_v50 = vpack.c.bf16 %v2159_v61, %v2159_v61  ;;  %v2157_v51 = vmax.f32 %v2065_v19, 0.0 }
 0x20e   : > { %2340 = vst.msk [vmem:[%s4026_s6 + $0x4c] sm:$0xf] %vm2320_vm7, %v2598_v50  ;;  %v2596_v47 = vpack.c.bf16 %v2157_v51, %v2157_v51 }
 0x210   : > { %2338 = vst.msk [vmem:[%s4026_s6 + $0x44] sm:$0xf] %vm2320_vm7, %v2596_v47 }
 0x211 PF: > { %s13_s14 = sadd.s32 1, %s2817_s14   ;;  %s4238_s12 = smov %s2813_s13 }
 0x212   : > { %p10_p5 = scmp.ge.s32.totalorder %s13_s14, 4   ;;  %s4239_s13 = smov %s4241_s15 }
 0x214   :  { %12 = sbr.rel (!%p10_p5) target bundleno = 2 (0x2), region = 62 }

// kernel: decoder_forward.5
= control target key start
LH: loop header
LB: loop body
LE: loop exit
PB: predicated region body
PF: predicated region fallthrough
CT: control target
= control target key end

     0   :  { %s2588_s12 = smov 0   ;;  %s2590_s13 = smov 0   ;;  %s3880_s0 = inlined_call_operand.vmem [shape: bf16[2,1,328,64], index: 0, kind: input, shape index: {}]   ;;  %s3881_s1 = inlined_call_operand.vmem [shape: bf16[576,128], index: 1, kind: input, shape index: {}]   ;;  %s3882_s2 = inlined_call_operand.vmem [shape: f32[1,128], index: 2, kind: input, shape index: {}]   ;;  %s3883_s3 = inlined_call_operand.vmem [shape: f32[2,1,288,128], index: 3, kind: output, shape index: {}]  }
   0x1   :  { %s2592_s14 = smov 0  }
   0x2 LB: > { %s25_s15 = sadd.s32 1, %s2560_s13  ;;  %p2272_p0 = scmp.ge.s32.totalorder %s2564_s14, 1  ;;  %s2564_s14 = sphi %s2592_s14, %s13_s14   ;;  %s2560_s13 = sphi %s2590_s13, %s3953_s13   ;;  %s2556_s12 = sphi %s2588_s12, %s3952_s12  }
   0x3   : > { %p27_p1 = scmp.ge.s32.totalorder %s25_s15, 2  ;;  %p157_p2 = scmp.lt.s32.totalorder %s2564_s14, 3 }
   0x5   : > { %s3955_s15 = smov (%p27_p1, %s25_s15), 0  ;;  %p158_p3 = pnand %p2272_p0, %p157_p2 }
   0x7   : > { %161 = sbr.rel (%p158_p3) target bundleno = 525 (0x20d), region = 32 }
   0xc   : > { %p189_p4 = scmp.lt.s32.totalorder %s2556_s12, 1  ;;  %v2477_v0 = vld [vmem:[%s3881_s1 + $0x38] sm:$0xff]   ;;  %v2566_v1 = vmov 0   ;;  %v2478_v2 = vld [vmem:[%s3881_s1 + $0x30] sm:$0xff]   ;;  %v2481_v4 = vld [vmem:[%s3881_s1 + $0x28] sm:$0xff]   ;;  %vm539_vm0 = vcmask 1046528  }
   0xd   : > { %1609 = vmatprep.subr.bf16.mxu0 %v2566_v1  ;;  %1786 = vmatprep.subr.bf16.mxu1 %v2566_v1  ;;  %v2480_v3 = vld [vmem:[%s3881_s1 + $0xb8] sm:$0xff]   ;;  %v2482_v5 = vld [vmem:[%s3881_s1 + $0xb0] sm:$0xff]   ;;  %vm821_vm1 = vsmask.f32 5376  ;;  %s2567_s30 = smov 64   ;;  %vm727_vm3 = vcmask 1045504  }
   0xe   : > { %s3957_s12 = smov (!%p189_p4, %s2556_s12), 1  ;;  %1610 = vmatpush1.bf16.msra.mxu0 %v2477_v0  ;;  %1787 = vmatpush1.bf16.msra.mxu1 %v2480_v3  ;;  %vm351_vm2 = vsmask.f32 7424  ;;  %v2483_v57 = vld [vmem:[%s3881_s1 + $0x20] sm:$0xff]   ;;  %vm633_vm4 = vsmask.f32 6400 }
   0xf   : > { %s2436_s20 = smul.u32 164, %s3957_s12  ;;  %1611 = vmatprep.subr.bf16.mxu0 %v2566_v1  ;;  %1788 = vmatprep.subr.bf16.mxu1 %v2566_v1  ;;  %vm989_vm5 = vcmask 523264   ;;  %vm951_vm6 = vcmask 1044480  }
  0x10   : > { %s2437_s29 = smul.u32 288, %s3957_s12 }
  0x11   : > { %s2627_s27 = scalar_lea.vmem %s3880_s0, %s2436_s20 }
  0x12   : > { %v212_v6 = vld [vmem:[%s2627_s27 + $0x10] sm:$0xf]  ;;  %v213_v7 = vld [vmem:[%s2627_s27 + $0x14] sm:$0xf]  ;;  %1612 = vmatpush1.bf16.msra.mxu0 %v2478_v2  ;;  %v2638_v9 = vld [vmem:[%s2627_s27 + $0x18] sm:$0xff]   ;;  %1789 = vmatpush1.bf16.msra.mxu1 %v2482_v5  ;;  %s3772_s6 = scalar_lea.vmem %s3883_s3, %s2437_s29 }
  0x13   : > { %v2635_v8 = vcombine.low %v212_v6, %v213_v7  ;;  %v211_v10 = vld [vmem:[%s2627_s27 + $0xc] sm:$0xf]  ;;  %1613 = vmatprep.subr.bf16.mxu0 %v2566_v1  ;;  %v246_v11 = vld [vmem:[%s2627_s27 + $0x8] sm:$0xe]  ;;  %v252_v13 = vld [vmem:[%s2627_s27 + $0x10] sm:$0xc]  ;;  %1790 = vmatprep.subr.bf16.mxu1 %v2566_v1 }
  0x14   : > { %v210_v12 = vld [vmem:[%s2627_s27 + $0x8] sm:$0xf]  ;;  %v545_v15 = vrot.slane %v2638_v9, 1  ;;  %v2649_v16 = vcombine.low %v246_v11, %v211_v10  ;;  %v208_v18 = vld [vmem:[%s2627_s27] sm:$0xf]  ;;  %v2656_v20 = vshll.u32 %v2638_v9, 16  ;;  %v2661_v22 = vcombine.low %v252_v13, %v213_v7 }
  0x15   : > { %v2646_v14 = vrot.slane %v2635_v8, 1  ;;  %v2651_v17 = vcombine.low %v210_v12, %v211_v10  ;;  %v209_v19 = vld [vmem:[%s2627_s27 + $0x4] sm:$0xf]  ;;  %v2659_v21 = vshrl.u32 %v2638_v9, 16  ;;  %v251_v24 = vld [vmem:[%s2627_s27 + $0x8] sm:$0xc] }
  0x16   : > { %v2663_v23 = vcombine.low %v208_v18, %v209_v19  ;;  %1614 = vmatpush1.bf16.msra.mxu0 %v2481_v4  ;;  %v588_v26 = vrot.slane %v2649_v16, 1  ;;  %v2299_v28 = vcombine.low %v251_v24, %v211_v10  ;;  %v2676_v29 = vld [vmem:[%s2627_s27 + $0x20] sm:$0xff]   ;;  %v823_v30 = vshrl.u32 %v2661_v22, 16  ;;  %v2700_v49 = vld [vmem:[%s2627_s27 + $0x28] sm:$0xff]   ;;  %v2727_v3 = vld [vmem:[%s2627_s27 + $0x30] sm:$0xff]  }
  0x17   : > { %v2671_v25 = vsel %vm539_vm0, %v2646_v14, %v545_v15  ;;  %v360_v27 = vshll.u32 %v2651_v17, 16  ;;  %1615 = vmatprep.subr.bf16.mxu0 %v2566_v1  ;;  %v826_v31 = vshll.u32 %v2661_v22, 16  ;;  %v830_v32 = vrot.slane %v2659_v21, 2  ;;  %v2485_v2 = vld [vmem:[%s3881_s1 + $0xa8] sm:$0xff]   ;;  %v2486_v4 = vld [vmem:[%s3881_s1 + $0x18] sm:$0xff]   ;;  %v2487_v11 = vld [vmem:[%s3881_s1 + $0xa0] sm:$0xff]  }
  0x18   : > { %596 = vrot.lane.b32.xlu1 %v2671_v25, %s2567_s30  ;;  %v831_v33 = vrot.slane %v2656_v20, 3  ;;  %v589_v34 = vsel %vm539_vm0, %v588_v26, %v2646_v14  ;;  %v353_v35 = vshrl.u32 %v2663_v23, 16  ;;  %v355_v36 = vshll.u32 %v2663_v23, 16  ;;  %1791 = vmatpush1.bf16.msra.mxu1 %v2485_v2  ;;  %v2488_v19 = vld [vmem:[%s3881_s1 + $0x10] sm:$0xff]   ;;  %v2500_v2 = vld [vmem:[%s3881_s1 + $0xf8] sm:$0xff]  }
  0x19   : > { %594 = vrot.lane.b32.xlu0 %v589_v34, %s2567_s30  ;;  %v825_v37 = vrot.slane %v823_v30, 2  ;;  %v828_v38 = vrot.slane %v826_v31, 3  ;;  %v362_v40 = vrot.slane %v360_v27, 1  ;;  %v728_v42 = vrot.slane %v2299_v28, 2  ;;  %1792 = vmatprep.subr.bf16.mxu1 %v2566_v1  ;;  %v2490_v30 = vld [vmem:[%s3881_s1 + $0x98] sm:$0xff]   ;;  %v2492_v34 = vld [vmem:[%s3881_s1 + $0x90] sm:$0xff]  }
  0x1a   : > { %v832_v39 = vor.u32 %v831_v33, %v830_v32  ;;  %v357_v41 = vrot.slane %v355_v36, 1  ;;  %v364_v43 = vshrl.u32 %v2651_v17, 16  ;;  %v368_v44 = vshll.u32 %v2635_v8, 16  ;;  %1616 = vmatpush1.bf16.msra.mxu0 %v2483_v57  ;;  %v2775_v31 = vld [vmem:[%s2627_s27 + $0x38] sm:$0xff]   ;;  %v2491_v33 = vld [vmem:[%s3881_s1 + $0x8] sm:$0xff]  }
  0x1b   : > { %v829_v45 = vor.u32 %v828_v38, %v825_v37  ;;  %v729_v46 = vrot.slane %v2635_v8, 2  ;;  %v2694_v47 = vshll.u32 %v2676_v29, 16  ;;  %v2697_v48 = vshrl.u32 %v2676_v29, 16  ;;  %1617 = vmatprep.subr.bf16.mxu0 %v2566_v1 }
  0x1c   : > { %v358_v50 = vor.u32 %v357_v41, %v353_v35  ;;  %v366_v51 = vor.u32 %v364_v43, %v362_v40  ;;  %v370_v52 = vrot.slane %v368_v44, 1  ;;  %v2715_v60 = vshll.u32 %v2700_v49, 16  ;;  %1793 = vmatpush1.bf16.msra.mxu1 %v2487_v11  ;;  %v2495_v41 = vld [vmem:[%s3881_s1 + $0x88] sm:$0xff]  }
  0x1d   : > { %v833_v53 = vsel %vm821_vm1, %v829_v45, %v832_v39  ;;  %v834_v54 = vrot.slane %v2697_v48, 2  ;;  %v835_v55 = vrot.slane %v2694_v47, 3  ;;  %v730_v58 = vsel %vm727_vm3, %v728_v42, %v729_v46  ;;  %1794 = vmatprep.subr.bf16.mxu1 %v2566_v1 }
  0x1e   : > { %912 = vrot.lane.b32.xlu1 %v833_v53, %s2567_s30  ;;  %v363_v56 = vsel %vm351_vm2, %v358_v50, %v362_v40  ;;  %v371_v61 = vsel %vm351_vm2, %v366_v51, %v370_v52  ;;  %v547_v62 = vrot.slane %v2676_v29, 1  ;;  %v372_v63 = vshrl.u32 %v2635_v8, 16  ;;  %1618 = vmatpush1.bf16.msra.mxu0 %v2486_v4  ;;  %v2493_v40 = vld [vmem:[%s3881_s1] sm:$0xff]  }
  0x1f   : > { %500 = vrot.lane.b32.xlu0 %v363_v56, %s2567_s30  ;;  %v836_v59 = vor.u32 %v835_v55, %v834_v54  ;;  %v2721_v0 = vshrl.u32 %v2700_v49, 16  ;;  %v2737_v6 = vrot.slane %v2638_v9, 2  ;;  %v839_v10 = vrot.slane %v2715_v60, 3  ;;  %1619 = vmatprep.subr.bf16.mxu0 %v2566_v1  ;;  %v2827_v54 = vld [vmem:[%s2627_s27 + $0x40] sm:$0xff]  }
  0x20   : > { %v2748_v12 = vsel %vm539_vm0, %v545_v15, %v547_v62  ;;  %v374_v13 = vor.u32 %v372_v63, %v370_v52  ;;  %v378_v18 = vrot.slane %v2656_v20, 1  ;;  %v2763_v24 = vshll.u32 %v2727_v3, 16  ;;  %1795 = vmatpush1.bf16.msra.mxu1 %v2490_v30  ;;  %v2496_v52 = vld [vmem:[%s3881_s1 + $0x78] sm:$0xff]   ;;  %v2497_v55 = vld [vmem:[%s3881_s1 + $0x80] sm:$0xff]   ;;  %v2879_v30 = vld [vmem:[%s2627_s27 + $0x48] sm:$0xff]  }
  0x21   : > { %v837_v5 = vsel %vm821_vm1, %v832_v39, %v836_v59  ;;  %v838_v7 = vrot.slane %v2721_v0, 2  ;;  %v732_v9 = vsel %vm727_vm3, %v729_v46, %v2737_v6  ;;  %v2766_v26 = vshrl.u32 %v2727_v3, 16  ;;  %1796 = vmatprep.subr.bf16.mxu1 %v2566_v1 }
  0x22   : > { %765 = vrot.lane.b32.xlu1 %v730_v58, %s2567_s30  ;;  %v379_v27 = vsel %vm351_vm2, %v374_v13, %v378_v18  ;;  %v549_v28 = vrot.slane %v2700_v49, 1  ;;  %1620 = vmatpush1.bf16.msra.mxu0 %v2488_v19  ;;  %v733_v32 = vrot.slane %v2676_v29, 2  ;;  %v843_v37 = vrot.slane %v2763_v24, 3  ;;  %v2502_v19 = vld [vmem:[%s3881_s1 + $0xf0] sm:$0xff]  }
  0x23   : > { %502 = vrot.lane.b32.xlu0 %v371_v61, %s2567_s30  ;;  %v840_v15 = vor.u32 %v839_v10, %v838_v7  ;;  %1621 = vmatprep.subr.bf16.mxu0 %v2566_v1  ;;  %v842_v36 = vrot.slane %v2766_v26, 2  ;;  %v382_v38 = vor.u32 %v2659_v21, %v378_v18  ;;  %v386_v39 = vrot.slane %v2694_v47, 1  ;;  %v2501_v18 = vld [vmem:[%s3881_s1 + $0x68] sm:$0xff]  }
  0x24   : > { %v2792_v29 = vsel %vm539_vm0, %v547_v62, %v549_v28  ;;  %1797 = vmatpush1.bf16.msra.mxu1 %v2492_v34  ;;  %v2808_v42 = vsel %vm727_vm3, %v2737_v6, %v733_v32  ;;  %v2811_v45 = vshll.u32 %v2775_v31, 16  ;;  %v2814_v46 = vshrl.u32 %v2775_v31, 16  ;;  %v2498_v62 = vld [vmem:[%s3881_s1 + $0x70] sm:$0xff]  }
  0x25   : > { %v841_v35 = vsel %vm821_vm1, %v836_v59, %v840_v15  ;;  %v844_v43 = vor.u32 %v843_v37, %v842_v36  ;;  %1798 = vmatprep.subr.bf16.mxu1 %v2566_v1  ;;  %v387_v50 = vsel %vm351_vm2, %v382_v38, %v386_v39  ;;  %v551_v51 = vrot.slane %v2727_v3, 1 }
  0x26   : > { %914 = vrot.lane.b32.xlu1 %v837_v5, %s2567_s30  ;;  %1622 = vmatpush1.bf16.msra.mxu0 %v2491_v33  ;;  %v735_v53 = vrot.slane %v2700_v49, 2  ;;  %v846_v57 = vrot.slane %v2814_v46, 2  ;;  %v847_v58 = vrot.slane %v2811_v45, 3  ;;  %v390_v49 = vor.u32 %v2697_v48, %v386_v39 }
  0x27   : > { %598 = vrot.lane.b32.xlu0 %v2748_v12, %s2567_s30  ;;  %1623 = vmatprep.subr.bf16.mxu0 %v2566_v1  ;;  %v845_v56 = vsel %vm821_vm1, %v840_v15, %v844_v43  ;;  %v2838_v59 = vsel %vm539_vm0, %v549_v28, %v551_v51  ;;  %v394_v61 = vrot.slane %v2715_v60, 1  ;;  %v2856_v7 = vshll.u32 %v2827_v54, 16 }
  0x28   : > { %1799 = vmatpush1.bf16.msra.mxu1 %v2495_v41  ;;  %v2853_v4 = vsel %vm727_vm3, %v733_v32, %v735_v53  ;;  %v848_v5 = vor.u32 %v847_v58, %v846_v57  ;;  %v2859_v10 = vshrl.u32 %v2827_v54, 16  ;;  %v553_v13 = vrot.slane %v2775_v31, 1 }
  0x29   : > { %1800 = vmatprep.subr.bf16.mxu1 %v2566_v1  ;;  %v395_v11 = vsel %vm351_vm2, %v390_v49, %v394_v61  ;;  %v737_v15 = vrot.slane %v2727_v3, 2  ;;  %v851_v28 = vrot.slane %v2856_v7, 3  ;;  %v398_v33 = vor.u32 %v2721_v0, %v394_v61  ;;  %v2503_v3 = vld [vmem:[%s3881_s1 + $0x60] sm:$0xff]   ;;  %v2508_v49 = vld [vmem:[%s3881_s1 + $0x50] sm:$0xff]   ;;  %v2510_v61 = vld [vmem:[%s3881_s1 + $0xd8] sm:$0xff]  }
  0x2a   : > { %767 = vrot.lane.b32.xlu1 %v732_v9, %s2567_s30  ;;  %1624 = vmatpush1.bf16.msra.mxu0 %v2493_v40  ;;  %v849_v9 = vsel %vm821_vm1, %v844_v43, %v848_v5  ;;  %v2883_v32 = vsel %vm539_vm0, %v551_v51, %v553_v13  ;;  %v402_v34 = vrot.slane %v2763_v24, 1  ;;  %v2901_v38 = vshll.u32 %v2879_v30, 16  ;;  %v2506_v43 = vld [vmem:[%s3881_s1 + $0x58] sm:$0xff]  }
  0x2b   : > { %504 = vrot.lane.b32.xlu0 %v379_v27, %s2567_s30  ;;  %1625 = vmatprep.subr.bf16.mxu0 %v2566_v1  ;;  %v850_v27 = vrot.slane %v2859_v10, 2  ;;  %v2898_v36 = vsel %vm727_vm3, %v735_v53, %v737_v15  ;;  %v2904_v39 = vshrl.u32 %v2879_v30, 16  ;;  %v555_v41 = vrot.slane %v2827_v54, 1  ;;  %v2921_v53 = vld [vmem:[%s2627_s27 + $0x50] sm:$0xff]  }
  0x2c   : > { %1801 = vmatpush1.bf16.msra.mxu1 %v2497_v55  ;;  %v403_v40 = vsel %vm351_vm2, %v398_v33, %v402_v34  ;;  %v642_v51 = vrot.slane %v372_v63, 1  ;;  %3907 = vst [vmem:[#allocation2_spill] sm:$0xff] %v2921_v53  ;;  %v2507_v55 = vld [vmem:[%s3881_s1 + $0xe0] sm:$0xff]   ;;  %v855_v63 = vrot.slane %v2901_v38, 3  ;;  %v410_v58 = vrot.slane %v2811_v45, 1  ;;  %v2512_v33 = vld [vmem:[%s3881_s1 + $0xd0] sm:$0xff]  }
  0x2d   : > { %1802 = vmatprep.subr.bf16.mxu1 %v2566_v1  ;;  %v852_v37 = vor.u32 %v851_v28, %v850_v27  ;;  %v2932_v57 = vsel %vm539_vm0, %v553_v13, %v555_v41  ;;  %v2955_v13 = vshrl.u32 %v2921_v53, 16  ;;  %v812_v27 = vrot.slane %v2661_v22, 2 }
  0x2e   : > { %916 = vrot.lane.b32.xlu1 %v841_v35, %s2567_s30  ;;  %1626 = vmatpush2.bf16.msra.mxu0 %v2496_v52  ;;  %v2505_v35 = vld [vmem:[%s3881_s1 + $0xe8] sm:$0xff]   ;;  %v739_v52 = vrot.slane %v2775_v31, 2  ;;  %v406_v31 = vor.u32 %v2766_v26, %v402_v34  ;;  %v741_v28 = vrot.slane %v2827_v54, 2 }
  0x2f   : > { %600 = vrot.lane.b32.xlu0 %v2792_v29, %s2567_s30  ;;  %1627 = vmatprep.subr.bf16.mxu0 %v2566_v1  ;;  %v2981_v22 = vsel %vm727_vm3, %v812_v27, %v2737_v6  ;;  %v2998_v6 = vld [vmem:[%s3881_s1 + $0x118] sm:$0xff]  }
  0x30   : > { %1803 = vmatpush2.bf16.msra.mxu1 %v2500_v2  ;;  %v2949_v2 = vsel %vm727_vm3, %v737_v15, %v739_v52  ;;  %v2964_v15 = vld [vmem:[%s2627_s27 + $0x58] sm:$0xff]  }
  0x31   : > { %1804 = vmatprep.subr.bf16.mxu1 %v2566_v1  ;;  %3908 = vst [vmem:[#allocation3_spill] sm:$0xff] %v2964_v15 }
  0x32   : > { %769 = vrot.lane.b32.xlu1 %v2808_v42, %s2567_s30  ;;  %1628 = vmatpush2.bf16.msra.mxu0 %v2498_v62 }
  0x33   : > { %506 = vrot.lane.b32.xlu0 %v387_v50, %s2567_s30  ;;  %1629 = vmatprep.subr.bf16.mxu0 %v2566_v1  ;;  %v643_v50 = vrot.slane %v368_v44, 2  ;;  %v853_v44 = vsel %vm821_vm1, %v848_v5, %v852_v37 }
  0x34   : > { %1805 = vmatpush2.bf16.msra.mxu1 %v2502_v19  ;;  %v557_v19 = vrot.slane %v2879_v30, 1 }
  0x35   : > { %1806 = vmatprep.subr.bf16.mxu1 %v2566_v1  ;;  %v2944_v62 = vor.u32 %v643_v50, %v642_v51  ;;  %v2992_v50 = vshll.u32 %v2964_v15, 16  ;;  %v638_v51 = vshll.u32 %v2649_v16, 16 }
  0x36   : > { %918 = vrot.lane.b32.xlu1 %v845_v56, %s2567_s30  ;;  %1630 = vmatpush2.bf16.msra.mxu0 %v2501_v18  ;;  %v854_v56 = vrot.slane %v2904_v39, 2  ;;  %v411_v18 = vsel %vm351_vm2, %v406_v31, %v410_v58  ;;  %v2984_v54 = vsel %vm539_vm0, %v555_v41, %v557_v19  ;;  %v635_v41 = vshrl.u32 %v2649_v16, 16 }
  0x37   : > { %602 = vrot.lane.b32.xlu0 %v2838_v59, %s2567_s30  ;;  %1631 = vmatprep.subr.bf16.mxu0 %v2566_v1  ;;  %v559_v16 = vrot.slane %v2921_v53, 1 }
  0x38   : > { %1807 = vmatpush2.bf16.msra.mxu1 %v2505_v35  ;;  %v856_v5 = vor.u32 %v855_v63, %v854_v56  ;;  %v2516_v56 = vld [vmem:[%s3881_s1 + $0xc8] sm:$0xff]   ;;  %v637_v31 = vrot.slane %v635_v41, 1  ;;  %v3885_v41 = vrot.slane %v2964_v15, 1 }
  0x39   : > { %1808 = vmatprep.subr.bf16.mxu1 %v2566_v1 }
  0x3a   : > { %771 = vrot.lane.b32.xlu1 %v2853_v4, %s2567_s30  ;;  %1632 = vmatpush2.bf16.msra.mxu0 %v2503_v3  ;;  %v857_v34 = vsel %vm821_vm1, %v852_v37, %v856_v5  ;;  %v858_v3 = vrot.slane %v2955_v13, 2  ;;  %v2513_v37 = vld [vmem:[%s3881_s1 + $0x40] sm:$0xff]  }
  0x3b   : > { %508 = vrot.lane.b32.xlu0 %v395_v11, %s2567_s30  ;;  %1633 = vmatprep.subr.bf16.mxu0 %v2566_v1  ;;  %v2952_v11 = vshll.u32 %v2921_v53, 16 }
  0x3c   : > { %1809 = vmatpush2.bf16.msra.mxu1 %v2507_v55  ;;  %v3004_v55 = vsel %vm727_vm3, %v739_v52, %v741_v28 }
  0x3d   : > { %1810 = vmatprep.subr.bf16.mxu1 %v2566_v1  ;;  %v859_v35 = vrot.slane %v2952_v11, 3 }
  0x3e   : > { %920 = vrot.lane.b32.xlu1 %v849_v9, %s2567_s30  ;;  %1634 = vmatpush2.bf16.msra.mxu0 %v2506_v43  ;;  %v2511_v9 = vld [vmem:[%s3881_s1 + $0x48] sm:$0xff]   ;;  %v418_v43 = vrot.slane %v2856_v7, 1 }
  0x3f   : > { %604 = vrot.lane.b32.xlu0 %v2883_v32, %s2567_s30  ;;  %1635 = vmatprep.subr.bf16.mxu0 %v2566_v1  ;;  %v860_v63 = vor.u32 %v859_v35, %v858_v3  ;;  %v426_v35 = vrot.slane %v2901_v38, 1 }
  0x40   : > { %1811 = vmatpush2.bf16.msra.mxu1 %v2510_v61  ;;  %v3019_v61 = vld [vmem:[%s2627_s27 + $0x60] sm:$0xff]  }
  0x41   : > { %1812 = vmatprep.subr.bf16.mxu1 %v2566_v1  ;;  %3909 = vst [vmem:[#allocation4_spill] sm:$0xff] %v3019_v61  ;;  %v861_v3 = vsel %vm821_vm1, %v856_v5, %v860_v63  ;;  %v3049_v5 = vshrl.u32 %v3019_v61, 16 }
  0x42   : > { %773 = vrot.lane.b32.xlu1 %v2898_v36, %s2567_s30  ;;  %1636 = vmatpush2.bf16.msra.mxu0 %v2508_v49  ;;  %v743_v49 = vrot.slane %v2879_v30, 2  ;;  %v2518_v30 = vld [vmem:[%s3881_s1 + $0xc0] sm:$0xff]  }
  0x43   : > { %510 = vrot.lane.b32.xlu0 %v403_v40, %s2567_s30  ;;  %1637 = vmatprep.subr.bf16.mxu0 %v2566_v1  ;;  %v414_v40 = vor.u32 %v2814_v46, %v410_v58  ;;  %v640_v58 = vrot.slane %v638_v51, 2  ;;  %v3046_v51 = vshll.u32 %v3019_v61, 16 }
  0x44   : > { %1813 = vmatpush2.bf16.msra.mxu1 %v2512_v33  ;;  %v863_v33 = vrot.slane %v2992_v50, 3 }
  0x45   : > { %1814 = vmatprep.subr.bf16.mxu1 %v2566_v1  ;;  %v419_v52 = vsel %vm351_vm2, %v414_v40, %v418_v43 }
  0x46   : > { %922 = vrot.lane.b32.xlu1 %v853_v44, %s2567_s30  ;;  %1638 = vmatpush2.bf16.msra.mxu0 %v2511_v9  ;;  %v3007_v44 = vshrl.u32 %v2964_v15, 16  ;;  %v422_v9 = vor.u32 %v2859_v10, %v418_v43  ;;  %v647_v43 = vrot.slane %v2656_v20, 2  ;;  %v3056_v20 = vsel %vm727_vm3, %v741_v28, %v743_v49 }
  0x47   : > { %606 = vrot.lane.b32.xlu0 %v2932_v57, %s2567_s30  ;;  %1639 = vmatprep.subr.bf16.mxu0 %v2566_v1 }
  0x48   : > { %v862_v27 = vrot.slane %v3007_v44, 2  ;;  %1815 = vmatpush2.bf16.msra.mxu1 %v2516_v56 }
  0x49   : > { %1816 = vmatprep.subr.bf16.mxu1 %v2566_v1  ;;  %v3052_v1 = vld [vmem:[%s2627_s27 + $0x68] sm:$0xff]  }
  0x4a   : > { %775 = vrot.lane.b32.xlu1 %v2949_v2, %s2567_s30  ;;  %1640 = vmatpush2.bf16.msra.mxu0 %v2513_v37  ;;  %v3041_v37 = vsel %vm539_vm0, %v557_v19, %v559_v16  ;;  %3911 = vst [vmem:[#allocation6_spill] sm:$0xff] %v3052_v1  ;;  %v864_v19 = vor.u32 %v863_v33, %v862_v27  ;;  %v654_v27 = vrot.slane %v2721_v0, 1  ;;  %v866_v33 = vrot.slane %v3049_v5, 2 }
  0x4b   : > { %512 = vrot.lane.b32.xlu0 %v411_v18, %s2567_s30  ;;  %2384 = vmatprep.subr.bf16.mxu0 %v2998_v6  ;;  %v641_v18 = vor.u32 %v640_v58, %v637_v31  ;;  %3910 = vst [vmem:[#allocation5_spill] sm:$0xff] %v3041_v37  ;;  %v650_v31 = vrot.slane %v2697_v48, 1  ;;  %v651_v58 = vrot.slane %v2694_v47, 2  ;;  %v3073_v48 = vsel %vm539_vm0, %v559_v16, %v3885_v41 }
  0x4c   : > { %1817 = vmatpush2.bf16.msra.mxu1 %v2518_v30  ;;  %v867_v30 = vrot.slane %v3046_v51, 3  ;;  %v865_v16 = vsel %vm821_vm1, %v860_v63, %v864_v19  ;;  %v659_v0 = vrot.slane %v2763_v24, 2  ;;  %v666_v63 = vrot.slane %v2859_v10, 1 }
  0x4d   : > { %v3037_v40 = vsel %vm633_vm4, %v641_v18, %v2944_v62  ;;  %v430_v18 = vor.u32 %v2904_v39, %v426_v35  ;;  %2428 = vmatprep.subr.bf16.mxu1 %v2998_v6  ;;  %v670_v41 = vrot.slane %v2904_v39, 1  ;;  %v675_v10 = vrot.slane %v2952_v11, 2 }
  0x4e   : > { %924 = vrot.lane.b32.xlu1 %v857_v34, %s2567_s30  ;;  %v646_v34 = vrot.slane %v2659_v21, 1  ;;  %v3884_v21 = vrot.slane %v2921_v53, 2 }
  0x4f   : > { %608 = vrot.lane.b32.xlu0 %v2984_v54, %s2567_s30 }
  0x50   : > { %v648_v56 = vor.u32 %v647_v43, %v646_v34  ;;  %v434_v34 = vrot.slane %v2952_v11, 1  ;;  %v3078_v47 = vsel %vm727_vm3, %v743_v49, %v3884_v21  ;;  %v3097_v43 = vshrl.u32 %v3052_v1, 16 }
  0x52   : > { %777 = vrot.lane.b32.xlu1 %v3004_v55, %s2567_s30  ;;  %v3068_v28 = vsel %vm633_vm4, %v2944_v62, %v648_v56  ;;  %v3084_v62 = vshll.u32 %v3052_v1, 16 }
  0x53   : > { %514 = vrot.lane.b32.xlu0 %v419_v52, %s2567_s30  ;;  %v427_v52 = vsel %vm351_vm2, %v422_v9, %v426_v35  ;;  %v652_v9 = vor.u32 %v651_v58, %v650_v31  ;;  %v658_v35 = vrot.slane %v2766_v26, 1  ;;  %v663_v58 = vrot.slane %v2811_v45, 2 }
  0x54   : > { %v868_v26 = vor.u32 %v867_v30, %v866_v33  ;;  %v435_v33 = vsel %vm351_vm2, %v430_v18, %v434_v34  ;;  %v563_v30 = vrot.slane %v3019_v61, 1  ;;  %v871_v18 = vrot.slane %v3084_v62, 3 }
  0x55   : > { %v3091_v49 = vsel %vm633_vm4, %v648_v56, %v652_v9  ;;  %v660_v21 = vor.u32 %v659_v0, %v658_v35  ;;  %v667_v56 = vrot.slane %v2856_v7, 2 }
  0x56   : > { %926 = vrot.lane.b32.xlu1 %v861_v3, %s2567_s30  ;;  %v655_v3 = vrot.slane %v2715_v60, 2  ;;  %v662_v60 = vrot.slane %v2814_v46, 1 }
  0x57   : > { %610 = vrot.lane.b32.xlu0 %v3041_v37, %s2567_s30  ;;  %v671_v37 = vrot.slane %v2901_v38, 2  ;;  %v668_v45 = vor.u32 %v667_v56, %v666_v63  ;;  %v679_v38 = vrot.slane %v2992_v50, 2 }
  0x58   : > { %v656_v31 = vor.u32 %v655_v3, %v654_v27  ;;  %v674_v27 = vrot.slane %v2955_v13, 1 }
  0x59   : > { %v672_v39 = vor.u32 %v671_v37, %v670_v41  ;;  %v683_v37 = vrot.slane %v3046_v51, 2  ;;  %v747_v41 = vrot.slane %v2964_v15, 2 }
  0x5a   : > { %779 = vrot.lane.b32.xlu1 %v3056_v20, %s2567_s30  ;;  %v3105_v24 = vsel %vm633_vm4, %v652_v9, %v656_v31  ;;  %v3110_v46 = vsel %vm633_vm4, %v656_v31, %v660_v21  ;;  %v678_v9 = vrot.slane %v3007_v44, 1  ;;  %v676_v11 = vor.u32 %v675_v10, %v674_v27 }
  0x5b   : > { %516 = vrot.lane.b32.xlu0 %v427_v52, %s2567_s30  ;;  %v664_v52 = vor.u32 %v663_v58, %v662_v60  ;;  %v869_v31 = vsel %vm821_vm1, %v864_v19, %v868_v26  ;;  %v870_v60 = vrot.slane %v3097_v43, 2  ;;  %v3142_v58 = vld [vmem:[%s2627_s27 + $0x70] sm:$0xff]   ;;  %v438_v27 = vor.u32 %v2955_v13, %v434_v34 }
  0x5c   : > { %v680_v35 = vor.u32 %v679_v38, %v678_v9  ;;  %v3136_v0 = vsel %vm633_vm4, %v672_v39, %v676_v11  ;;  %3912 = vst [vmem:[#allocation7_spill] sm:$0xff] %v3142_v58  ;;  %v442_v10 = vrot.slane %v2992_v50, 1  ;;  %v3916_v19 = vrot.slane %v2921_v53, 2 }
  0x5d   : > { %v3117_v7 = vsel %vm633_vm4, %v660_v21, %v664_v52  ;;  %v3124_v3 = vsel %vm633_vm4, %v664_v52, %v668_v45  ;;  %v682_v21 = vrot.slane %v3049_v5, 1  ;;  %v3913_v52 = vrot.slane %v2964_v15, 1 }
  0x5e   : > { %928 = vrot.lane.b32.xlu1 %v865_v16, %s2567_s30  ;;  %v3127_v16 = vsel %vm633_vm4, %v668_v45, %v672_v39  ;;  %v3145_v63 = vsel %vm633_vm4, %v676_v11, %v680_v35  ;;  %v3163_v9 = vsel %vm727_vm3, %v3916_v19, %v747_v41  ;;  %v872_v38 = vor.u32 %v871_v18, %v870_v60  ;;  %v3183_v60 = vld [vmem:[%s2627_s27 + $0x78] sm:$0xff]  }
  0x5f   : > { %612 = vrot.lane.b32.xlu0 %v3073_v48, %s2567_s30  ;;  %v684_v56 = vor.u32 %v683_v37, %v682_v21  ;;  %v3150_v45 = vsel %vm539_vm0, %v3913_v52, %v563_v30  ;;  %v3169_v13 = vshrl.u32 %v3142_v58, 16  ;;  %v443_v50 = vsel %vm351_vm2, %v438_v27, %v442_v10  ;;  %3917 = vst [vmem:[#allocation10_spill] sm:$0xff] %v3183_v60 }
  0x60   : > { %3914 = vst [vmem:[#allocation8_spill] sm:$0xff] %v3150_v45  ;;  %v565_v34 = vrot.slane %v3052_v1, 1  ;;  %v686_v11 = vrot.slane %v3097_v43, 1  ;;  %v749_v21 = vrot.slane %v3019_v61, 2  ;;  %v873_v37 = vsel %vm821_vm1, %v868_v26, %v872_v38 }
  0x61   : > { %v3155_v39 = vsel %vm633_vm4, %v680_v35, %v684_v56  ;;  %v687_v35 = vrot.slane %v3084_v62, 2  ;;  %v874_v18 = vrot.slane %v3169_v13, 2  ;;  %v446_v19 = vor.u32 %v3007_v44, %v442_v10 }
  0x62   : > { %781 = vrot.lane.b32.xlu1 %v3078_v47, %s2567_s30  ;;  %3915 = vst [vmem:[#allocation9_spill] sm:$0xff] %v3155_v39  ;;  %v3186_v27 = vsel %vm539_vm0, %v563_v30, %v565_v34  ;;  %v450_v15 = vrot.slane %v3046_v51, 1  ;;  %v3197_v26 = vsel %vm727_vm3, %v747_v41, %v749_v21  ;;  %v3200_v30 = vshll.u32 %v3183_v60, 16 }
  0x63   : > { %518 = vrot.lane.b32.xlu0 %v435_v33, %s2567_s30  ;;  %v3166_v33 = vshll.u32 %v3142_v58, 16  ;;  %v688_v52 = vor.u32 %v687_v35, %v686_v11  ;;  %3918 = vst [vmem:[#allocation11_spill] sm:$0xff] %v3186_v27  ;;  %v3203_v44 = vshrl.u32 %v3183_v60, 16  ;;  %v690_v10 = vrot.slane %v3169_v13, 1 }
  0x64   : > { %v451_v51 = vsel %vm351_vm2, %v446_v19, %v450_v15  ;;  %v751_v41 = vrot.slane %v3052_v1, 2  ;;  %v458_v39 = vrot.slane %v3084_v62, 1  ;;  %v569_v62 = vrot.slane %v3183_v60, 1 }
  0x65   : > { %v3191_v61 = vsel %vm633_vm4, %v684_v56, %v688_v52  ;;  %v567_v56 = vrot.slane %v3142_v58, 1  ;;  %v691_v11 = vrot.slane %v3166_v33, 2 }
  0x66   : > { %930 = vrot.lane.b32.xlu1 %v869_v31, %s2567_s30  ;;  %v875_v31 = vrot.slane %v3166_v33, 3  ;;  %3919 = vst [vmem:[#allocation12_spill] sm:$0xff] %v3191_v61 }
  0x67   : > { %614 = vrot.lane.b32.xlu0 %v3150_v45, %s2567_s30  ;;  %v692_v19 = vor.u32 %v691_v11, %v690_v10  ;;  %v3220_v61 = vsel %vm539_vm0, %v565_v34, %v567_v56  ;;  %v695_v10 = vrot.slane %v3200_v30, 2  ;;  %v466_v45 = vrot.slane %v3166_v33, 1 }
  0x68   : > { %3921 = vst [vmem:[#allocation14_spill] sm:$0xff] %v3220_v61 }
  0x69   : > { %v3225_v1 = vsel %vm633_vm4, %v688_v52, %v692_v19  ;;  %v694_v52 = vrot.slane %v3203_v44, 1 }
  0x6a   : > { %783 = vrot.lane.b32.xlu1 %v3163_v9, %s2567_s30  ;;  %3922 = vst [vmem:[#allocation15_spill] sm:$0xff] %v3225_v1  ;;  %v3254_v1 = vsel %vm539_vm0, %v567_v56, %v569_v62 }
  0x6b   : > { %520 = vrot.lane.b32.xlu0 %v443_v50, %s2567_s30  ;;  %v876_v50 = vor.u32 %v875_v31, %v874_v18  ;;  %v879_v18 = vrot.slane %v3200_v30, 3  ;;  %v3217_v31 = vld [vmem:[%s2627_s27 + $0x80] sm:$0xff]   ;;  %3924 = vst [vmem:[#allocation17_spill] sm:$0xff] %v3254_v1 }
  0x6c   : > { %3920 = vst [vmem:[#allocation13_spill] sm:$0xff] %v3217_v31  ;;  %v3234_v34 = vshll.u32 %v3217_v31, 16  ;;  %v571_v33 = vrot.slane %v3217_v31, 1 }
  0x6d   : > { %v877_v35 = vsel %vm821_vm1, %v872_v38, %v876_v50  ;;  %v3231_v38 = vsel %vm727_vm3, %v749_v21, %v751_v41  ;;  %v753_v21 = vrot.slane %v3142_v58, 2 }
  0x6e   : > { %932 = vrot.lane.b32.xlu1 %v873_v37, %s2567_s30  ;;  %v878_v37 = vrot.slane %v3203_v44, 2  ;;  %3923 = vst [vmem:[#allocation16_spill] sm:$0xff] %v3231_v38 }
  0x6f   : > { %616 = vrot.lane.b32.xlu0 %v3186_v27, %s2567_s30  ;;  %v454_v27 = vor.u32 %v3049_v5, %v450_v15  ;;  %v3237_v15 = vshrl.u32 %v3217_v31, 16 }
  0x71   : > { %v459_v5 = vsel %vm351_vm2, %v454_v27, %v458_v39  ;;  %v883_v27 = vrot.slane %v3234_v34, 3 }
  0x72   : > { %785 = vrot.lane.b32.xlu1 %v3197_v26, %s2567_s30 }
  0x73   : > { %522 = vrot.lane.b32.xlu0 %v451_v51, %s2567_s30  ;;  %v880_v51 = vor.u32 %v879_v18, %v878_v37  ;;  %v3251_v37 = vld [vmem:[%s2627_s27 + $0x88] sm:$0xff]   ;;  %v696_v18 = vor.u32 %v695_v10, %v694_v52 }
  0x74   : > { %v3269_v56 = vshll.u32 %v3251_v37, 16 }
  0x75   : > { %v881_v11 = vsel %vm821_vm1, %v876_v50, %v880_v51  ;;  %v3259_v58 = vsel %vm633_vm4, %v692_v19, %v696_v18  ;;  %v245_v50 = vld [vmem:[%s2627_s27] sm:$0xe]  ;;  %v2530_v19 = vld [vmem:[%s2627_s27 + $0x4] sm:$0xf] }
  0x76   : > { %934 = vrot.lane.b32.xlu1 %v877_v35, %s2567_s30  ;;  %v882_v35 = vrot.slane %v3237_v15, 2  ;;  %3925 = vst [vmem:[#allocation18_spill] sm:$0xff] %v3259_v58  ;;  %v2294_v10 = vcombine.low %v245_v50, %v2530_v19  ;;  %v699_v58 = vrot.slane %v3234_v34, 2  ;;  %v3290_v19 = vsel %vm539_vm0, %v569_v62, %v571_v33 }
  0x77   : > { %618 = vrot.lane.b32.xlu0 %v3220_v61, %s2567_s30  ;;  %v462_v61 = vor.u32 %v3097_v43, %v458_v39  ;;  %v3272_v43 = vshrl.u32 %v3251_v37, 16  ;;  %3927 = vst [vmem:[#allocation20_spill] sm:$0xff] %v3290_v19 }
  0x78   : > { %v884_v52 = vor.u32 %v883_v27, %v882_v35  ;;  %v540_v53 = vrot.slane %v2294_v10, 1 }
  0x79   : > { %v467_v39 = vsel %vm351_vm2, %v462_v61, %v466_v45  ;;  %v886_v27 = vrot.slane %v3272_v43, 2  ;;  %v887_v61 = vrot.slane %v3269_v56, 3  ;;  %v702_v10 = vrot.slane %v3272_v43, 1 }
  0x7a   : > { %787 = vrot.lane.b32.xlu1 %v3231_v38, %s2567_s30  ;;  %v885_v35 = vsel %vm821_vm1, %v880_v51, %v884_v52  ;;  %v470_v38 = vor.u32 %v3169_v13, %v466_v45 }
  0x7b   : > { %524 = vrot.lane.b32.xlu0 %v459_v5, %s2567_s30  ;;  %v3266_v5 = vsel %vm727_vm3, %v751_v41, %v753_v21  ;;  %v755_v41 = vrot.slane %v3183_v60, 2  ;;  %v541_v60 = vrot.slane %v2651_v17, 1  ;;  %v888_v51 = vor.u32 %v887_v61, %v886_v27 }
  0x7c   : > { %3926 = vst [vmem:[#allocation19_spill] sm:$0xff] %v3266_v5 }
  0x7e   : > { %936 = vrot.lane.b32.xlu1 %v881_v11, %s2567_s30  ;;  %v698_v11 = vrot.slane %v3237_v15, 1 }
  0x7f   : > { %620 = vrot.lane.b32.xlu0 %v3254_v1, %s2567_s30  ;;  %v3287_v1 = vld [vmem:[%s2627_s27 + $0x90] sm:$0xff]  }
  0x80   : > { %v700_v50 = vor.u32 %v699_v58, %v698_v11  ;;  %v3302_v58 = vsel %vm727_vm3, %v753_v21, %v755_v41  ;;  %v3906_v62 = vshrl.u32 %v3287_v1, 16  ;;  %v710_v45 = vshll.u32 %v3287_v1, 16 }
  0x81   : > { %3929 = vst [vmem:[#allocation22_spill] sm:$0xff] %v3302_v58  ;;  %v703_v11 = vrot.slane %v3269_v56, 2 }
  0x82   : > { %789 = vrot.lane.b32.xlu1 %v3266_v5, %s2567_s30  ;;  %v474_v5 = vrot.slane %v3200_v30, 1  ;;  %v3308_v30 = vrot.slane %v3251_v37, 1  ;;  %v890_v61 = vrot.slane %v3906_v62, 2 }
  0x83   : > { %526 = vrot.lane.b32.xlu0 %v467_v39, %s2567_s30  ;;  %v3296_v39 = vsel %vm633_vm4, %v696_v18, %v700_v50  ;;  %v542_v18 = vsel %vm539_vm0, %v540_v53, %v541_v60  ;;  %v891_v53 = vrot.slane %v710_v45, 3 }
  0x84   : > { %3928 = vst [vmem:[#allocation21_spill] sm:$0xff] %v3296_v39  ;;  %v475_v13 = vsel %vm351_vm2, %v470_v38, %v474_v5  ;;  %v889_v38 = vsel %vm821_vm1, %v884_v52, %v888_v51  ;;  %v3323_v39 = vld [vmem:[%s2627_s27 + $0x98] sm:$0xff]   ;;  %v482_v52 = vrot.slane %v3234_v34, 1 }
  0x85   : > { %v898_v34 = vshll.u32 %v3323_v39, 16 }
  0x86   : > { %938 = vrot.lane.b32.xlu1 %v885_v35, %s2567_s30  ;;  %v757_v35 = vrot.slane %v3217_v31, 2  ;;  %v3330_v31 = vsel %vm539_vm0, %v571_v33, %v3308_v30 }
  0x87   : > { %622 = vrot.lane.b32.xlu0 %v3290_v19, %s2567_s30  ;;  %v3325_v19 = vor.u32 %v703_v11, %v702_v10  ;;  %v544_v10 = vsel %vm539_vm0, %v541_v60, %v2646_v14 }
  0x88   : > { %v3344_v33 = vsel %vm727_vm3, %v755_v41, %v757_v35  ;;  %v2525_v41 = vld [vmem:[%s3881_s1 + $0x110] sm:$0xff]  }
  0x89   : > { %v3336_v62 = vsel %vm633_vm4, %v700_v50, %v3325_v19 }
  0x8a   : > { %791 = vrot.lane.b32.xlu1 %v3302_v58, %s2567_s30  ;;  %v597_v21 = vpop.permute.xlu1 %596 }
  0x8b   : > { %v595_v27 = vpop.permute.xlu0 %594  ;;  %528 = vrot.lane.b32.xlu0 %v475_v13, %s2567_s30  ;;  %v478_v13 = vor.u32 %v3203_v44, %v474_v5  ;;  %v895_v44 = vshrl.u32 %v3323_v39, 16  ;;  %v1050_v14 = vsel %vm989_vm5, %v544_v10, %v597_v21  ;;  %v486_v21 = vor.u32 %v3237_v15, %v482_v52  ;;  %v2521_v10 = vld [vmem:[%s2627_s27 + $0x98] ss:$0 sps:$4 sm:$0x11]  }
  0x8c   : > { %v1046_v58 = vsel %vm989_vm5, %v542_v18, %v595_v27  ;;  %v892_v18 = vor.u32 %v891_v53, %v890_v61  ;;  %v490_v61 = vrot.slane %v3269_v56, 1  ;;  %v3373_v15 = vld [vmem:[%s2627_s27 + $0xa0] ss:$0 sps:$4 sm:$0x77]   ;;  %v2526_v56 = vld [vmem:[%s3881_s1 + $0x108] sm:$0xff]  }
  0x8d   : > { %1641 = vmatprep.mubr.bf16.mxu0 %v1046_v58  ;;  %v483_v50 = vsel %vm351_vm2, %v478_v13, %v482_v52  ;;  %v590_v58 = vrot.slane %v3287_v1, 1  ;;  %v897_v53 = vrot.slane %v895_v44, 2  ;;  %v900_v13 = vrot.slane %v898_v34, 3 }
  0x8e   : > { %940 = vrot.lane.b32.xlu1 %v889_v38, %s2567_s30  ;;  %v759_v38 = vrot.slane %v3251_v37, 2  ;;  %v491_v34 = vsel %vm351_vm2, %v486_v21, %v490_v61 }
  0x8f   : > { %624 = vrot.lane.b32.xlu0 %v3330_v31, %s2567_s30 }
  0x90   : > { %v913_v5 = vpop.permute.xlu1 %912  ;;  %v3383_v44 = vsel %vm727_vm3, %v757_v35, %v759_v38 }
  0x91   : > { %v501_v11 = vpop.permute.xlu0 %500  ;;  %v1190_v60 = vsel %vm989_vm5, %v2981_v22, %v913_v5  ;;  %v893_v22 = vsel %vm821_vm1, %v888_v51, %v892_v18  ;;  %v591_v5 = vsel %vm539_vm0, %v3308_v30, %v590_v58 }
  0x92   : > { %793 = vrot.lane.b32.xlu1 %v3344_v33, %s2567_s30  ;;  %v991_v27 = vsel %vm989_vm5, %v2663_v23, %v501_v11  ;;  %1818 = vmatprep.mubr.bf16.mxu1 %v1190_v60  ;;  %v3370_v11 = vld [vmem:[%s2627_s27 + $0x90] ss:$0 sps:$4 sm:$0x11]  }
  0x93   : > { %1642 = vmatmul.mubr.bf16.vlgmr.msra.gmra.mxu0 %v991_v27  ;;  %530 = vrot.lane.b32.xlu0 %v483_v50, %s2567_s30  ;;  %v901_v50 = vor.u32 %v900_v13, %v897_v53  ;;  %v496_v27 = vshll.u32 %v3370_v11, 16  ;;  %v3402_v13 = vrot.slane %v3287_v1, 2 }
  0x94   : > { %2385 = vmatpush3.bf16.msra.mxu0 %v2998_v6  ;;  %1649 = vmatprep.mubr.bf16.mxu0 %v1050_v14  ;;  %v766_v23 = vpop.permute.xlu1 %765 }
  0x95   : > { %v1118_v52 = vsel %vm989_vm5, %v3037_v40, %v766_v23  ;;  %v503_v51 = vpop.permute.xlu0 %502  ;;  %2386 = vmatprep.subr.bf16.mxu0 %v2525_v41  ;;  %v592_v40 = vrot.slane %v2521_v10, 1  ;;  %v907_v23 = vshll.u32 %v3373_v15, 16  ;;  %v902_v21 = vsel %vm821_vm1, %v892_v18, %v901_v50  ;;  %v3405_v10 = vld [vmem:[%s2627_s27 + $0x98] ss:$0 sps:$4 sm:$0x33]  }
  0x96   : > { %942 = vrot.lane.b32.xlu1 %v893_v22, %s2567_s30  ;;  %1819 = vmatmul.mubr.bf16.vlgmr.msra.gmra.mxu1 %v1118_v52  ;;  %v994_v60 = vsel %vm989_vm5, %v2651_v17, %v503_v51  ;;  %v904_v22 = vshrl.u32 %v3373_v15, 16  ;;  %v498_v52 = vrot.slane %v496_v27, 1 }
  0x97   : > { %626 = vrot.lane.b32.xlu0 %v591_v5, %s2567_s30  ;;  %2432 = vmatpush3.bf16.msra.mxu1 %v2998_v6  ;;  %v593_v53 = vsel %vm539_vm0, %v590_v58, %v592_v40  ;;  %v3417_v40 = vsel %vm727_vm3, %v759_v38, %v3402_v13 }
  0x98   : > { %v915_v14 = vpop.permute.xlu1 %914  ;;  %2387 = vmatpush3.bf16.msra.mxu0 %v2525_v41  ;;  %2429 = vmatprep.subr.bf16.mxu1 %v2525_v41  ;;  %v906_v51 = vrot.slane %v904_v22, 2 }
  0x99   : > { %v599_v35 = vpop.permute.xlu0 %598  ;;  %v1194_v6 = vsel %vm989_vm5, %v2808_v42, %v915_v14  ;;  %2388 = vmatprep.subr.bf16.mxu0 %v2526_v56  ;;  %v2527_v42 = vld [vmem:[%s3881_s1 + $0x100] sm:$0xff]  }
  0x9a   : > { %795 = vrot.lane.b32.xlu1 %v3383_v44, %s2567_s30  ;;  %1826 = vmatprep.mubr.bf16.mxu1 %v1194_v6  ;;  %v1054_v17 = vsel %vm989_vm5, %v2671_v25, %v599_v35  ;;  %v494_v25 = vor.u32 %v3272_v43, %v490_v61  ;;  %v763_v43 = vrot.slane %v3405_v10, 2  ;;  %v3438_v35 = vld [vmem:[%s2627_s27 + $0x18] sm:$0xff]  }
  0x9b   : > { %1650 = vmatmul.mubr.bf16.gmra.mxu0 %v994_v60  ;;  %532 = vrot.lane.b32.xlu0 %v491_v34, %s2567_s30  ;;  %v909_v34 = vrot.slane %v907_v23, 3 }
  0x9c   : > { %v768_v5 = vpop.permute.xlu1 %767  ;;  %1657 = vmatprep.mubr.bf16.mxu0 %v1054_v17  ;;  %2433 = vmatpush3.bf16.msra.mxu1 %v2525_v41 }
  0x9d   : > { %v1122_v18 = vsel %vm989_vm5, %v3068_v28, %v768_v5  ;;  %v505_v58 = vpop.permute.xlu0 %504  ;;  %2389 = vmatpush3.bf16.msra.mxu0 %v2526_v56  ;;  %2430 = vmatprep.subr.bf16.mxu1 %v2526_v56  ;;  %v499_v28 = vsel %vm351_vm2, %v494_v25, %v498_v52  ;;  %v910_v14 = vor.u32 %v909_v34, %v906_v51  ;;  %v3449_v25 = vld [vmem:[%s2627_s27 + $0x20] sm:$0xff]  }
  0x9e   : > { %944 = vrot.lane.b32.xlu1 %v902_v21, %s2567_s30  ;;  %1827 = vmatmul.mubr.bf16.gmra.mxu1 %v1122_v18  ;;  %v997_v41 = vsel %vm989_vm5, %v2635_v8, %v505_v58  ;;  %v764_v8 = vsel %vm727_vm3, %v3402_v13, %v763_v43  ;;  %v3460_v43 = vld [vmem:[%s2627_s27 + $0x28] sm:$0xff]  }
  0x9f   : > { %628 = vrot.lane.b32.xlu0 %v593_v53, %s2567_s30  ;;  %2390 = vmatprep.subr.bf16.mxu0 %v2527_v42 }
  0xa0   : > { %v917_v61 = vpop.permute.xlu1 %916  ;;  %2434 = vmatpush3.bf16.msra.mxu1 %v2526_v56 }
  0xa1   : > { %v601_v60 = vpop.permute.xlu0 %600  ;;  %v1198_v27 = vsel %vm989_vm5, %v2853_v4, %v917_v61  ;;  %2391 = vmatpush3.bf16.msra.mxu0 %v2527_v42  ;;  %2431 = vmatprep.subr.bf16.mxu1 %v2527_v42  ;;  %v911_v4 = vsel %vm821_vm1, %v901_v50, %v910_v14 }
  0xa2   : > { %797 = vrot.lane.b32.xlu1 %v3417_v40, %s2567_s30  ;;  %1834 = vmatprep.mubr.bf16.mxu1 %v1198_v27  ;;  %v1058_v38 = vsel %vm989_vm5, %v2748_v12, %v601_v60  ;;  %v3471_v27 = vld [vmem:[%s2627_s27 + $0x30] sm:$0xff]  }
  0xa3   : > { %1658 = vmatmul.mubr.bf16.gmra.mxu0 %v997_v41  ;;  %534 = vrot.lane.b32.xlu0 %v499_v28, %s2567_s30 }
  0xa4   : > { %v770_v56 = vpop.permute.xlu1 %769  ;;  %1665 = vmatprep.mubr.bf16.mxu0 %v1058_v38  ;;  %2435 = vmatpush3.bf16.msra.mxu1 %v2527_v42 }
  0xa5   : > { %v1126_v22 = vsel %vm989_vm5, %v3091_v49, %v770_v56  ;;  %v507_v23 = vpop.permute.xlu0 %506 }
  0xa6   : > { %1835 = vmatmul.mubr.bf16.gmra.mxu1 %v1126_v22  ;;  %799 = vrot.lane.b32.xlu1 %v764_v8, %s2567_s30  ;;  %v1000_v6 = vsel %vm989_vm5, %v3438_v35, %v507_v23  ;;  %v3482_v23 = vld [vmem:[%s2627_s27 + $0x38] sm:$0xff]  }
  0xa7   : > { %946 = vrot.lane.b32.xlu0 %v911_v4, %s2567_s30 }
  0xa8   : > { %v919_v12 = vpop.permute.xlu1 %918 }
  0xa9   : > { %v603_v17 = vpop.permute.xlu0 %602  ;;  %v1202_v50 = vsel %vm989_vm5, %v2898_v36, %v919_v12 }
  0xaa   : > { %1842 = vmatprep.mubr.bf16.mxu1 %v1202_v50  ;;  %v1062_v49 = vsel %vm989_vm5, %v2792_v29, %v603_v17 }
  0xab   : > { %1666 = vmatmul.mubr.bf16.gmra.mxu0 %v1000_v6 }
  0xac   : > { %v772_v21 = vpop.permute.xlu1 %771  ;;  %1673 = vmatprep.mubr.bf16.mxu0 %v1062_v49 }
  0xad   : > { %v1130_v53 = vsel %vm989_vm5, %v3105_v24, %v772_v21  ;;  %v509_v42 = vpop.permute.xlu0 %508  ;;  %v3493_v21 = vld [vmem:[%s2627_s27 + $0x40] sm:$0xff]  }
  0xae   : > { %1843 = vmatmul.mubr.bf16.gmra.mxu1 %v1130_v53  ;;  %v1003_v52 = vsel %vm989_vm5, %v3449_v25, %v509_v42 }
  0xb0   : > { %v921_v5 = vpop.permute.xlu1 %920 }
  0xb1   : > { %v605_v36 = vpop.permute.xlu0 %604  ;;  %v1206_v51 = vsel %vm989_vm5, %v2949_v2, %v921_v5 }
  0xb2   : > { %1850 = vmatprep.mubr.bf16.mxu1 %v1206_v51  ;;  %v1066_v29 = vsel %vm989_vm5, %v2838_v59, %v605_v36 }
  0xb3   : > { %1674 = vmatmul.mubr.bf16.gmra.mxu0 %v1003_v52 }
  0xb4   : > { %v774_v34 = vpop.permute.xlu1 %773  ;;  %1681 = vmatprep.mubr.bf16.mxu0 %v1066_v29  ;;  %v3504_v29 = vld [vmem:[%s2627_s27 + $0x48] sm:$0xff]  }
  0xb5   : > { %v1134_v24 = vsel %vm989_vm5, %v3110_v46, %v774_v34  ;;  %v511_v18 = vpop.permute.xlu0 %510 }
  0xb6   : > { %1851 = vmatmul.mubr.bf16.gmra.mxu1 %v1134_v24  ;;  %v1006_v61 = vsel %vm989_vm5, %v3460_v43, %v511_v18 }
  0xb8   : > { %v923_v58 = vpop.permute.xlu1 %922 }
  0xb9   : > { %v607_v2 = vpop.permute.xlu0 %606  ;;  %v1210_v41 = vsel %vm989_vm5, %v3004_v55, %v923_v58 }
  0xba   : > { %1858 = vmatprep.mubr.bf16.mxu1 %v1210_v41  ;;  %v1070_v59 = vsel %vm989_vm5, %v2883_v32, %v607_v2  ;;  %v3931_v41 = vld [vmem:[#allocation2_spill] sm:$0xff] }
  0xbb   : > { %1682 = vmatmul.mubr.bf16.gmra.mxu0 %v1006_v61 }
  0xbc   : > { %v776_v28 = vpop.permute.xlu1 %775  ;;  %1689 = vmatprep.mubr.bf16.mxu0 %v1070_v59 }
  0xbd   : > { %v1138_v46 = vsel %vm989_vm5, %v3117_v7, %v776_v28  ;;  %v513_v14 = vpop.permute.xlu0 %512 }
  0xbe   : > { %1859 = vmatmul.mubr.bf16.gmra.mxu1 %v1138_v46  ;;  %v1009_v38 = vsel %vm989_vm5, %v3471_v27, %v513_v14  ;;  %v3932_v46 = vld [vmem:[#allocation16_spill] sm:$0xff] }
  0xbf   : > { %v3933_v14 = vld [vmem:[#allocation8_spill] sm:$0xff] }
  0xc0   : > { %v925_v60 = vpop.permute.xlu1 %924 }
  0xc1   : > { %v609_v55 = vpop.permute.xlu0 %608  ;;  %v1214_v8 = vsel %vm989_vm5, %v3056_v20, %v925_v60 }
  0xc2   : > { %1866 = vmatprep.mubr.bf16.mxu1 %v1214_v8  ;;  %v1074_v32 = vsel %vm989_vm5, %v2932_v57, %v609_v55 }
  0xc3   : > { %1690 = vmatmul.mubr.bf16.gmra.mxu0 %v1009_v38  ;;  %v3934_v38 = vld [vmem:[#allocation9_spill] sm:$0xff] }
  0xc4   : > { %v778_v56 = vpop.permute.xlu1 %777  ;;  %1697 = vmatprep.mubr.bf16.mxu0 %v1074_v32  ;;  %v3935_v32 = vld [vmem:[#allocation3_spill] sm:$0xff] }
  0xc5   : > { %v1142_v7 = vsel %vm989_vm5, %v3124_v3, %v778_v56  ;;  %v515_v4 = vpop.permute.xlu0 %514 }
  0xc6   : > { %1867 = vmatmul.mubr.bf16.gmra.mxu1 %v1142_v7  ;;  %v1012_v12 = vsel %vm989_vm5, %v3482_v23, %v515_v4  ;;  %v3936_v4 = vld [vmem:[#allocation19_spill] sm:$0xff] }
  0xc8   : > { %v927_v22 = vpop.permute.xlu1 %926 }
  0xc9   : > { %v611_v20 = vpop.permute.xlu0 %610  ;;  %v1218_v6 = vsel %vm989_vm5, %v3078_v47, %v927_v22 }
  0xca   : > { %1874 = vmatprep.mubr.bf16.mxu1 %v1218_v6  ;;  %v1078_v57 = vsel %vm989_vm5, %v2984_v54, %v611_v20  ;;  %v3930_v54 = vld [vmem:[#allocation5_spill] sm:$0xff] }
  0xcb   : > { %1698 = vmatmul.mubr.bf16.gmra.mxu0 %v1012_v12  ;;  %v3937_v12 = vld [vmem:[#allocation11_spill] sm:$0xff] }
  0xcc   : > { %v780_v17 = vpop.permute.xlu1 %779  ;;  %1705 = vmatprep.mubr.bf16.mxu0 %v1078_v57  ;;  %v3938_v57 = vld [vmem:[#allocation12_spill] sm:$0xff] }
  0xcd   : > { %v1146_v3 = vsel %vm989_vm5, %v3127_v16, %v780_v17  ;;  %v517_v50 = vpop.permute.xlu0 %516 }
  0xce   : > { %1875 = vmatmul.mubr.bf16.gmra.mxu1 %v1146_v3  ;;  %v1015_v53 = vsel %vm989_vm5, %v3493_v21, %v517_v50 }
  0xd0   : > { %v929_v49 = vpop.permute.xlu1 %928 }
  0xd1   : > { %v613_v47 = vpop.permute.xlu0 %612  ;;  %v1222_v42 = vsel %vm989_vm5, %v3163_v9, %v929_v49  ;;  %v3939_v49 = vld [vmem:[#allocation4_spill] sm:$0xff] }
  0xd2   : > { %1882 = vmatprep.mubr.bf16.mxu1 %v1222_v42  ;;  %v1082_v5 = vsel %vm989_vm5, %v3930_v54, %v613_v47  ;;  %v3940_v42 = vld [vmem:[#allocation22_spill] sm:$0xff] }
  0xd3   : > { %1706 = vmatmul.mubr.bf16.gmra.mxu0 %v1015_v53 }
  0xd4   : > { %v782_v52 = vpop.permute.xlu1 %781  ;;  %1713 = vmatprep.mubr.bf16.mxu0 %v1082_v5  ;;  %v3941_v5 = vld [vmem:[#allocation14_spill] sm:$0xff] }
  0xd5   : > { %v1150_v16 = vsel %vm989_vm5, %v3136_v0, %v782_v52  ;;  %v519_v36 = vpop.permute.xlu0 %518 }
  0xd6   : > { %1883 = vmatmul.mubr.bf16.gmra.mxu1 %v1150_v16  ;;  %v1018_v34 = vsel %vm989_vm5, %v3504_v29, %v519_v36  ;;  %v3942_v36 = vld [vmem:[#allocation15_spill] sm:$0xff] }
  0xd8   : > { %v931_v51 = vpop.permute.xlu1 %930 }
  0xd9   : > { %v615_v24 = vpop.permute.xlu0 %614  ;;  %v1226_v9 = vsel %vm989_vm5, %v3197_v26, %v931_v51 }
  0xda   : > { %1890 = vmatprep.mubr.bf16.mxu1 %v1226_v9  ;;  %v1086_v18 = vsel %vm989_vm5, %v3073_v48, %v615_v24  ;;  %v3943_v9 = vld [vmem:[#allocation6_spill] sm:$0xff] }
  0xdb   : > { %1714 = vmatmul.mubr.bf16.gmra.mxu0 %v1018_v34 }
  0xdc   : > { %v784_v58 = vpop.permute.xlu1 %783  ;;  %1721 = vmatprep.mubr.bf16.mxu0 %v1086_v18 }
  0xdd   : > { %v1154_v0 = vsel %vm989_vm5, %v3145_v63, %v784_v58  ;;  %v521_v61 = vpop.permute.xlu0 %520 }
  0xde   : > { %1891 = vmatmul.mubr.bf16.gmra.mxu1 %v1154_v0  ;;  %v1021_v59 = vsel %vm989_vm5, %v3931_v41, %v521_v61  ;;  %v3944_v61 = vld [vmem:[#allocation17_spill] sm:$0xff] }
  0xe0   : > { %v933_v2 = vpop.permute.xlu1 %932 }
  0xe1   : > { %v617_v28 = vpop.permute.xlu0 %616  ;;  %v1230_v26 = vsel %vm989_vm5, %v3932_v46, %v933_v2 }
  0xe2   : > { %1898 = vmatprep.mubr.bf16.mxu1 %v1230_v26  ;;  %v1090_v48 = vsel %vm989_vm5, %v3933_v14, %v617_v28  ;;  %v3946_v14 = vld [vmem:[#allocation7_spill] sm:$0xff] }
  0xe3   : > { %1722 = vmatmul.mubr.bf16.gmra.mxu0 %v1021_v59  ;;  %v3945_v59 = vld [vmem:[#allocation18_spill] sm:$0xff] }
  0xe4   : > { %v786_v60 = vpop.permute.xlu1 %785  ;;  %1729 = vmatprep.mubr.bf16.mxu0 %v1090_v48 }
  0xe5   : > { %v1158_v63 = vsel %vm989_vm5, %v3934_v38, %v786_v60  ;;  %v523_v55 = vpop.permute.xlu0 %522  ;;  %v3947_v38 = vld [vmem:[#allocation20_spill] sm:$0xff] }
  0xe6   : > { %1899 = vmatmul.mubr.bf16.gmra.mxu1 %v1158_v63  ;;  %v1024_v56 = vsel %vm989_vm5, %v3935_v32, %v523_v55 }
  0xe8   : > { %v935_v8 = vpop.permute.xlu1 %934 }
  0xe9   : > { %v619_v7 = vpop.permute.xlu0 %618  ;;  %v1234_v22 = vsel %vm989_vm5, %v3936_v4, %v935_v8  ;;  %v3948_v8 = vld [vmem:[#allocation21_spill] sm:$0xff]  ;;  %v3949_v4 = vld [vmem:[#allocation10_spill] sm:$0xff] }
  0xea   : > { %1906 = vmatprep.mubr.bf16.mxu1 %v1234_v22  ;;  %v1094_v20 = vsel %vm989_vm5, %v3937_v12, %v619_v7 }
  0xeb   : > { %1730 = vmatmul.mubr.bf16.gmra.mxu0 %v1024_v56 }
  0xec   : > { %v788_v6 = vpop.permute.xlu1 %787  ;;  %1737 = vmatprep.mubr.bf16.mxu0 %v1094_v20 }
  0xed   : > { %v1162_v17 = vsel %vm989_vm5, %v3938_v57, %v788_v6  ;;  %v525_v3 = vpop.permute.xlu0 %524  ;;  %v814_v6 = vrot.slane %v3323_v39, 2  ;;  %v3950_v57 = vshrl.u32 %v3287_v1, 16 }
  0xee   : > { %1907 = vmatmul.mubr.bf16.gmra.mxu1 %v1162_v17  ;;  %v1027_v53 = vsel %vm989_vm5, %v3939_v49, %v525_v3  ;;  %v712_v3 = vrot.slane %v710_v45, 2  ;;  %v257_v45 = vld [vmem:[%s2627_s27 + $0x10] sm:$0x8] }
  0xef   : > { %v709_v17 = vrot.slane %v3950_v57, 1  ;;  %v981_v57 = vrot.slane %v3251_v37, 3 }
  0xf0   : > { %v937_v50 = vpop.permute.xlu1 %936 }
  0xf1   : > { %v621_v47 = vpop.permute.xlu0 %620  ;;  %v1238_v54 = vsel %vm989_vm5, %v3940_v42, %v937_v50  ;;  %v575_v50 = vrot.slane %v3370_v11, 1  ;;  %v815_v42 = vsel %vm727_vm3, %v3402_v13, %v814_v6 }
  0xf2   : > { %1914 = vmatprep.mubr.bf16.mxu1 %v1238_v54  ;;  %v1098_v52 = vsel %vm989_vm5, %v3941_v5, %v621_v47  ;;  %v713_v54 = vor.u32 %v712_v3, %v709_v17  ;;  %v2528_v5 = vld [vmem:[%s2627_s27 + $0xa0] ss:$0 sps:$4 sm:$0x33]  }
  0xf3   : > { %1738 = vmatmul.mubr.bf16.gmra.mxu0 %v1027_v53  ;;  %v719_v53 = vshll.u32 %v3405_v10, 16  ;;  %v576_v11 = vsel %vm539_vm0, %v3308_v30, %v575_v50  ;;  %v816_v30 = vrot.slane %v2528_v5, 2  ;;  %v965_v50 = vrot.slane %v3504_v29, 3 }
  0xf4   : > { %v790_v16 = vpop.permute.xlu1 %789  ;;  %1745 = vmatprep.mubr.bf16.mxu0 %v1098_v52 }
  0xf5   : > { %v1166_v51 = vsel %vm989_vm5, %v3942_v36, %v790_v16  ;;  %v527_v34 = vpop.permute.xlu0 %526  ;;  %v3951_v16 = vld [vmem:[#allocation13_spill] sm:$0xff] }
  0xf6   : > { %1915 = vmatmul.mubr.bf16.gmra.mxu1 %v1166_v51  ;;  %v1030_v18 = vsel %vm989_vm5, %v3943_v9, %v527_v34 }
  0xf8   : > { %v939_v24 = vpop.permute.xlu1 %938 }
  0xf9   : > { %v623_v58 = vpop.permute.xlu0 %622  ;;  %v1242_v0 = vsel %vm989_vm5, %v3344_v33, %v939_v24  ;;  %v2538_v24 = vld [vmem:[%s2627_s27 + $0x14] sm:$0xf] }
  0xfa   : > { %1922 = vmatprep.mubr.bf16.mxu1 %v1242_v0  ;;  %v1102_v2 = vsel %vm989_vm5, %v3944_v61, %v623_v58  ;;  %v714_v58 = vsel %vm633_vm4, %v3325_v19, %v713_v54 }
  0xfb   : > { %1746 = vmatmul.mubr.bf16.gmra.mxu0 %v1030_v18  ;;  %v2304_v18 = vcombine.low %v257_v45, %v2538_v24 }
  0xfc   : > { %v792_v41 = vpop.permute.xlu1 %791  ;;  %1753 = vmatprep.mubr.bf16.mxu0 %v1102_v2 }
  0xfd   : > { %v1170_v28 = vsel %vm989_vm5, %v3945_v59, %v792_v41  ;;  %v529_v46 = vpop.permute.xlu0 %528  ;;  %v952_v59 = vrot.slane %v2304_v18, 3 }
  0xfe   : > { %1923 = vmatmul.mubr.bf16.gmra.mxu1 %v1170_v28  ;;  %v1033_v48 = vsel %vm989_vm5, %v3946_v14, %v529_v46  ;;  %v953_v28 = vrot.slane %v3438_v35, 3  ;;  %v817_v46 = vsel %vm727_vm3, %v814_v6, %v816_v30  ;;  %v961_v6 = vrot.slane %v3482_v23, 3 }
  0xff   : > { %v963_v23 = vrot.slane %v3493_v21, 3 }
 0x100   : > { %v941_v26 = vpop.permute.xlu1 %940 }
 0x101   : > { %v625_v60 = vpop.permute.xlu0 %624  ;;  %v1246_v33 = vsel %vm989_vm5, %v3383_v44, %v941_v26 }
 0x102   : > { %1930 = vmatprep.mubr.bf16.mxu1 %v1246_v33  ;;  %v1106_v63 = vsel %vm989_vm5, %v3947_v38, %v625_v60  ;;  %v2539_v60 = vld [vmem:[%s2627_s27 + $0x60] sm:$0xff]   ;;  %v973_v38 = vrot.slane %v3943_v9, 3  ;;  %v975_v9 = vrot.slane %v3946_v14, 3  ;;  %v979_v14 = vrot.slane %v3951_v16, 3 }
 0x103   : > { %1754 = vmatmul.mubr.bf16.gmra.mxu0 %v1033_v48  ;;  %v971_v33 = vrot.slane %v2539_v60, 3 }
 0x104   : > { %v794_v55 = vpop.permute.xlu1 %793  ;;  %1761 = vmatprep.mubr.bf16.mxu0 %v1106_v63  ;;  %v982_v3 = vsel %vm951_vm6, %v979_v14, %v981_v57 }
 0x105   : > { %v1174_v32 = vsel %vm989_vm5, %v3948_v8, %v794_v55  ;;  %v531_v56 = vpop.permute.xlu0 %530  ;;  %v954_v55 = vsel %vm951_vm6, %v952_v59, %v953_v28 }
 0x106   : > { %1931 = vmatmul.mubr.bf16.gmra.mxu1 %v1174_v32  ;;  %v1036_v22 = vsel %vm989_vm5, %v3949_v4, %v531_v56  ;;  %v955_v32 = vrot.slane %v3449_v25, 3  ;;  %v974_v56 = vsel %vm951_vm6, %v971_v33, %v973_v38  ;;  %v959_v25 = vrot.slane %v3471_v27, 3 }
 0x108   : > { %v943_v7 = vpop.permute.xlu1 %942  ;;  %v962_v17 = vsel %vm951_vm6, %v959_v25, %v961_v6 }
 0x109   : > { %v627_v12 = vpop.permute.xlu0 %626  ;;  %v1250_v44 = vsel %vm989_vm5, %v3417_v40, %v943_v7  ;;  %v716_v40 = vshrl.u32 %v3405_v10, 16  ;;  %v721_v10 = vrot.slane %v719_v53, 2  ;;  %v957_v7 = vrot.slane %v3460_v43, 3 }
 0x10a   : > { %1938 = vmatprep.mubr.bf16.mxu1 %v1250_v44  ;;  %v1110_v20 = vsel %vm989_vm5, %v3330_v31, %v627_v12  ;;  %v977_v12 = vrot.slane %v3949_v4, 3  ;;  %v966_v53 = vsel %vm951_vm6, %v963_v23, %v965_v50 }
 0x10b   : > { %1762 = vmatmul.mubr.bf16.gmra.mxu0 %v1036_v22  ;;  %v718_v51 = vrot.slane %v716_v40, 1  ;;  %v956_v22 = vsel %vm951_vm6, %v953_v28, %v955_v32  ;;  %v958_v44 = vsel %vm951_vm6, %v955_v32, %v957_v7  ;;  %v960_v4 = vsel %vm951_vm6, %v957_v7, %v959_v25 }
 0x10c   : > { %v796_v49 = vpop.permute.xlu1 %795  ;;  %1769 = vmatprep.mubr.bf16.mxu0 %v1110_v20  ;;  %v976_v20 = vsel %vm951_vm6, %v973_v38, %v975_v9  ;;  %v978_v43 = vsel %vm951_vm6, %v975_v9, %v977_v12  ;;  %v980_v27 = vsel %vm951_vm6, %v977_v12, %v979_v14  ;;  %v985_v40 = vrot.slane %v3323_v39, 3 }
 0x10d   : > { %v1178_v31 = vsel %vm989_vm5, %v3336_v62, %v796_v49  ;;  %v533_v47 = vpop.permute.xlu0 %532  ;;  %v722_v61 = vor.u32 %v721_v10, %v718_v51  ;;  %v964_v49 = vsel %vm951_vm6, %v961_v6, %v963_v23 }
 0x10e   : > { %1939 = vmatmul.mubr.bf16.gmra.mxu1 %v1178_v31  ;;  %v1039_v36 = vsel %vm989_vm5, %v3951_v16, %v533_v47  ;;  %v2540_v31 = vld [vmem:[%s2627_s27 + $0x50] sm:$0xff]  }
 0x10f   : > { %v723_v48 = vsel %vm633_vm4, %v713_v54, %v722_v61  ;;  %v967_v29 = vrot.slane %v2540_v31, 3 }
 0x110   : > { %v945_v52 = vpop.permute.xlu1 %944 }
 0x111   : > { %v629_v34 = vpop.permute.xlu0 %628  ;;  %v1254_v62 = vsel %vm989_vm5, %v815_v42, %v945_v52  ;;  %v2541_v42 = vld [vmem:[%s2627_s27 + $0x58] sm:$0xff]   ;;  %v968_v39 = vsel %vm951_vm6, %v965_v50, %v967_v29 }
 0x112   : > { %1946 = vmatprep.mubr.bf16.mxu1 %v1254_v62  ;;  %v1114_v13 = vsel %vm989_vm5, %v576_v11, %v629_v34  ;;  %v969_v54 = vrot.slane %v2541_v42, 3 }
 0x113   : > { %1770 = vmatmul.mubr.bf16.gmra.mxu0 %v1039_v36 }
 0x114   : > { %v798_v0 = vpop.permute.xlu1 %797  ;;  %1777 = vmatprep.mubr.bf16.mxu0 %v1114_v13  ;;  %v970_v45 = vsel %vm951_vm6, %v967_v29, %v969_v54  ;;  %v972_v5 = vsel %vm951_vm6, %v969_v54, %v971_v33 }
 0x115   : > { %v1182_v2 = vsel %vm989_vm5, %v714_v58, %v798_v0  ;;  %v535_v41 = vpop.permute.xlu0 %534 }
 0x116   : > { %1947 = vmatmul.mubr.bf16.gmra.mxu1 %v1182_v2  ;;  %v1042_v26 = vsel %vm989_vm5, %v3251_v37, %v535_v41  ;;  %v983_v37 = vrot.slane %v3287_v1, 3  ;;  %v987_v1 = vrot.slane %v3373_v15, 3  ;;  %v3647_v15 = vld [vmem:[%s3882_s2] ss:$0 sm:$0xff] }
 0x118   : > { %v800_v19 = vpop.permute.xlu1 %799  ;;  %v984_v21 = vsel %vm951_vm6, %v981_v57, %v983_v37  ;;  %v986_v47 = vsel %vm951_vm6, %v983_v37, %v985_v40  ;;  %v988_v11 = vsel %vm951_vm6, %v985_v40, %v987_v1 }
 0x119   : > { %v947_v63 = vpop.permute.xlu0 %946  ;;  %v1186_v35 = vsel %vm989_vm5, %v723_v48, %v800_v19 }
 0x11a   : > { %v1258_v8 = vsel %vm989_vm5, %v817_v46, %v947_v63 }
 0x11b   : > { %1778 = vmatmul.mubr.bf16.gmra.mxu0 %v1042_v26  ;;  %1954 = vmatprep.mubr.bf16.mxu1 %v1258_v8 }
 0x11c   : > { %2392 = vmatprep.mubr.msk.bf16.mxu0 %vm989_vm5, %v954_v55 }
 0x11e   : > { %1955 = vmatmul.mubr.bf16.gmra.mxu1 %v1186_v35 }
 0x11f   : > { %2412 = vmatprep.mubr.msk.bf16.mxu1 %vm989_vm5, %v974_v56 }
 0x123   : > { %2393 = vmatmul.mubr.msk.bf16.vlgmr.msra.gmra.mxu0 %vm989_vm5, %v956_v22 }
 0x124   : > { %2396 = vmatprep.mubr.msk.bf16.mxu0 %vm989_vm5, %v958_v44 }
 0x126   : > { %2413 = vmatmul.mubr.msk.bf16.vlgmr.msra.gmra.mxu1 %vm989_vm5, %v976_v20 }
 0x127   : > { %2416 = vmatprep.mubr.msk.bf16.mxu1 %vm989_vm5, %v978_v43 }
 0x12b   : > { %2397 = vmatmul.mubr.msk.bf16.gmra.mxu0 %vm989_vm5, %v960_v4 }
 0x12c   : > { %2400 = vmatprep.mubr.msk.bf16.mxu0 %vm989_vm5, %v962_v17 }
 0x12e   : > { %2417 = vmatmul.mubr.msk.bf16.gmra.mxu1 %vm989_vm5, %v980_v27 }
 0x12f   : > { %2420 = vmatprep.mubr.msk.bf16.mxu1 %vm989_vm5, %v982_v3 }
 0x133   : > { %2401 = vmatmul.mubr.msk.bf16.gmra.mxu0 %vm989_vm5, %v964_v49 }
 0x134   : > { %2404 = vmatprep.mubr.msk.bf16.mxu0 %vm989_vm5, %v966_v53 }
 0x136   : > { %2421 = vmatmul.mubr.msk.bf16.gmra.mxu1 %vm989_vm5, %v984_v21 }
 0x137   : > { %2424 = vmatprep.mubr.msk.bf16.mxu1 %vm989_vm5, %v986_v47 }
 0x13b   : > { %2405 = vmatmul.mubr.msk.bf16.gmra.mxu0 %vm989_vm5, %v968_v39 }
 0x13c   : > { %2408 = vmatprep.mubr.msk.bf16.mxu0 %vm989_vm5, %v970_v45 }
 0x13e   : > { %2425 = vmatmul.mubr.msk.bf16.gmra.mxu1 %vm989_vm5, %v988_v11 }
 0x143   : > { %2409 = vmatmul.mubr.msk.bf16.gmra.mxu0 %vm989_vm5, %v972_v5 }
 0x153   : > { %v1643_v52 = vpop.f32.mrf.mxu0 }
 0x154   : > { %v1644_v16 = vadd.f32 %v3647_v15, %v1643_v52 }
 0x155   : > { %v1645_v36 = vpop.f32.mrf.mxu0 }
 0x156   : > { %v1820_v51 = vpop.f32.mrf.mxu1 }
 0x157   : > { %v1646_v10 = vpop.f32.mrf.mxu0  ;;  %v3650_v34 = vadd.f32 %v1820_v51, %v1644_v16 }
 0x158   : > { %v1822_v62 = vpop.f32.mrf.mxu1  ;;  %v1647_v24 = vadd.f32 %v3647_v15, %v1646_v10 }
 0x159   : > { %v1648_v18 = vpop.f32.mrf.mxu0 }
 0x15a   : > { %v1823_v13 = vpop.f32.mrf.mxu1 }
 0x15b   : > { %v1651_v58 = vpop.f32.mrf.mxu0  ;;  %v3653_v30 = vadd.f32 %v1823_v13, %v1647_v24 }
 0x15c   : > { %v1825_v0 = vpop.f32.mrf.mxu1  ;;  %v1652_v61 = vadd.f32 %v3647_v15, %v1651_v58 }
 0x15d   : > { %v1653_v2 = vpop.f32.mrf.mxu0 }
 0x15e   : > { %v1828_v41 = vpop.f32.mrf.mxu1 }
 0x15f   : > { %v1654_v59 = vpop.f32.mrf.mxu0  ;;  %v3656_v28 = vadd.f32 %v1828_v41, %v1652_v61 }
 0x160   : > { %v1830_v46 = vpop.f32.mrf.mxu1  ;;  %v1655_v26 = vadd.f32 %v3647_v15, %v1654_v59 }
 0x161   : > { %v1656_v19 = vpop.f32.mrf.mxu0 }
 0x162   : > { %v1831_v48 = vpop.f32.mrf.mxu1 }
 0x163   : > { %v1659_v60 = vpop.f32.mrf.mxu0  ;;  %v3659_v33 = vadd.f32 %v1831_v48, %v1655_v26 }
 0x164   : > { %v1833_v38 = vpop.f32.mrf.mxu1  ;;  %v1660_v63 = vadd.f32 %v3647_v15, %v1659_v60 }
 0x165   : > { %v1661_v55 = vpop.f32.mrf.mxu0 }
 0x166   : > { %v1836_v8 = vpop.f32.mrf.mxu1 }
 0x167   : > { %v1662_v35 = vpop.f32.mrf.mxu0  ;;  %v3662_v32 = vadd.f32 %v1836_v8, %v1660_v63 }
 0x168   : > { %v1838_v56 = vpop.f32.mrf.mxu1  ;;  %v1663_v7 = vadd.f32 %v3647_v15, %v1662_v35 }
 0x169   : > { %v1664_v9 = vpop.f32.mrf.mxu0 }
 0x16a   : > { %v1839_v22 = vpop.f32.mrf.mxu1 }
 0x16b   : > { %v1667_v12 = vpop.f32.mrf.mxu0  ;;  %v3665_v44 = vadd.f32 %v1839_v22, %v1663_v7 }
 0x16c   : > { %v1841_v20 = vpop.f32.mrf.mxu1  ;;  %v1668_v25 = vadd.f32 %v3647_v15, %v1667_v12 }
 0x16d   : > { %v1669_v43 = vpop.f32.mrf.mxu0 }
 0x16e   : > { %v1844_v6 = vpop.f32.mrf.mxu1 }
 0x16f   : > { %v1670_v14 = vpop.f32.mrf.mxu0  ;;  %v3668_v4 = vadd.f32 %v1844_v6, %v1668_v25 }
 0x170   : > { %v1846_v57 = vpop.f32.mrf.mxu1  ;;  %v1671_v17 = vadd.f32 %v3647_v15, %v1670_v14 }
 0x171   : > { %v1672_v27 = vpop.f32.mrf.mxu0 }
 0x172   : > { %v1847_v23 = vpop.f32.mrf.mxu1 }
 0x173   : > { %v1675_v3 = vpop.f32.mrf.mxu0  ;;  %v3671_v50 = vadd.f32 %v1847_v23, %v1671_v17 }
 0x174   : > { %v1849_v37 = vpop.f32.mrf.mxu1  ;;  %v1676_v49 = vadd.f32 %v3647_v15, %v1675_v3 }
 0x175   : > { %v1677_v40 = vpop.f32.mrf.mxu0 }
 0x176   : > { %v1852_v53 = vpop.f32.mrf.mxu1 }
 0x177   : > { %v1678_v21 = vpop.f32.mrf.mxu0  ;;  %v3674_v31 = vadd.f32 %v1852_v53, %v1676_v49 }
 0x178   : > { %v1854_v29 = vpop.f32.mrf.mxu1  ;;  %v1679_v47 = vadd.f32 %v3647_v15, %v1678_v21 }
 0x179   : > { %v1680_v42 = vpop.f32.mrf.mxu0 }
 0x17a   : > { %v1855_v54 = vpop.f32.mrf.mxu1 }
 0x17b   : > { %v1683_v1 = vpop.f32.mrf.mxu0  ;;  %v3677_v39 = vadd.f32 %v1855_v54, %v1679_v47 }
 0x17c   : > { %v1857_v45 = vpop.f32.mrf.mxu1  ;;  %v1684_v11 = vadd.f32 %v3647_v15, %v1683_v1 }
 0x17d   : > { %v1685_v5 = vpop.f32.mrf.mxu0 }
 0x17e   : > { %v1860_v52 = vpop.f32.mrf.mxu1 }
 0x17f   : > { %v1686_v16 = vpop.f32.mrf.mxu0  ;;  %v3680_v36 = vadd.f32 %v1860_v52, %v1684_v11 }
 0x180   : > { %v1862_v51 = vpop.f32.mrf.mxu1  ;;  %v1687_v10 = vadd.f32 %v3647_v15, %v1686_v16 }
 0x181   : > { %v1688_v62 = vpop.f32.mrf.mxu0 }
 0x182   : > { %v1863_v24 = vpop.f32.mrf.mxu1 }
 0x183   : > { %v1691_v18 = vpop.f32.mrf.mxu0  ;;  %v3683_v13 = vadd.f32 %v1863_v24, %v1687_v10 }
 0x184   : > { %v1865_v58 = vpop.f32.mrf.mxu1  ;;  %v1692_v0 = vadd.f32 %v3647_v15, %v1691_v18 }
 0x185   : > { %v1693_v61 = vpop.f32.mrf.mxu0 }
 0x186   : > { %v1868_v2 = vpop.f32.mrf.mxu1 }
 0x187   : > { %v1694_v41 = vpop.f32.mrf.mxu0  ;;  %v3686_v59 = vadd.f32 %v1868_v2, %v1692_v0 }
 0x188   : > { %v1870_v46 = vpop.f32.mrf.mxu1  ;;  %v1695_v26 = vadd.f32 %v3647_v15, %v1694_v41 }
 0x189   : > { %v1696_v19 = vpop.f32.mrf.mxu0 }
 0x18a   : > { %v1871_v48 = vpop.f32.mrf.mxu1 }
 0x18b   : > { %v1699_v60 = vpop.f32.mrf.mxu0  ;;  %v3689_v38 = vadd.f32 %v1871_v48, %v1695_v26 }
 0x18c   : > { %v1873_v63 = vpop.f32.mrf.mxu1  ;;  %v1700_v55 = vadd.f32 %v3647_v15, %v1699_v60 }
 0x18d   : > { %v1701_v8 = vpop.f32.mrf.mxu0 }
 0x18e   : > { %v1876_v35 = vpop.f32.mrf.mxu1 }
 0x18f   : > { %v1702_v56 = vpop.f32.mrf.mxu0  ;;  %v3692_v7 = vadd.f32 %v1876_v35, %v1700_v55 }
 0x190   : > { %v1878_v9 = vpop.f32.mrf.mxu1  ;;  %v1703_v22 = vadd.f32 %v3647_v15, %v1702_v56 }
 0x191   : > { %v1704_v12 = vpop.f32.mrf.mxu0 }
 0x192   : > { %v1879_v20 = vpop.f32.mrf.mxu1 }
 0x193   : > { %v1707_v25 = vpop.f32.mrf.mxu0  ;;  %v3695_v43 = vadd.f32 %v1879_v20, %v1703_v22 }
 0x194   : > { %v1881_v6 = vpop.f32.mrf.mxu1  ;;  %v1708_v14 = vadd.f32 %v3647_v15, %v1707_v25 }
 0x195   : > { %v1709_v57 = vpop.f32.mrf.mxu0 }
 0x196   : > { %v1884_v17 = vpop.f32.mrf.mxu1 }
 0x197   : > { %v1710_v27 = vpop.f32.mrf.mxu0  ;;  %v3698_v23 = vadd.f32 %v1884_v17, %v1708_v14 }
 0x198   : > { %v1886_v3 = vpop.f32.mrf.mxu1  ;;  %v1711_v37 = vadd.f32 %v3647_v15, %v1710_v27 }
 0x199   : > { %v1712_v49 = vpop.f32.mrf.mxu0 }
 0x19a   : > { %v1887_v40 = vpop.f32.mrf.mxu1 }
 0x19b   : > { %v1715_v53 = vpop.f32.mrf.mxu0  ;;  %v3701_v21 = vadd.f32 %v1887_v40, %v1711_v37 }
 0x19c   : > { %v1889_v29 = vpop.f32.mrf.mxu1  ;;  %v1716_v47 = vadd.f32 %v3647_v15, %v1715_v53 }
 0x19d   : > { %v1717_v42 = vpop.f32.mrf.mxu0 }
 0x19e   : > { %v1892_v54 = vpop.f32.mrf.mxu1 }
 0x19f   : > { %v1718_v1 = vpop.f32.mrf.mxu0  ;;  %v3704_v45 = vadd.f32 %v1892_v54, %v1716_v47 }
 0x1a0   : > { %v1894_v11 = vpop.f32.mrf.mxu1  ;;  %v1719_v5 = vadd.f32 %v3647_v15, %v1718_v1 }
 0x1a1   : > { %v1720_v52 = vpop.f32.mrf.mxu0 }
 0x1a2   : > { %v1895_v16 = vpop.f32.mrf.mxu1 }
 0x1a3   : > { %v1723_v51 = vpop.f32.mrf.mxu0  ;;  %v3707_v10 = vadd.f32 %v1895_v16, %v1719_v5 }
 0x1a4   : > { %v1897_v62 = vpop.f32.mrf.mxu1  ;;  %v1724_v24 = vadd.f32 %v3647_v15, %v1723_v51 }
 0x1a5   : > { %v1725_v18 = vpop.f32.mrf.mxu0 }
 0x1a6   : > { %v1900_v58 = vpop.f32.mrf.mxu1 }
 0x1a7   : > { %v1726_v0 = vpop.f32.mrf.mxu0  ;;  %v3710_v61 = vadd.f32 %v1900_v58, %v1724_v24 }
 0x1a8   : > { %v1902_v2 = vpop.f32.mrf.mxu1  ;;  %v1727_v41 = vadd.f32 %v3647_v15, %v1726_v0 }
 0x1a9   : > { %v1728_v46 = vpop.f32.mrf.mxu0 }
 0x1aa   : > { %v1903_v26 = vpop.f32.mrf.mxu1 }
 0x1ab   : > { %v1731_v19 = vpop.f32.mrf.mxu0  ;;  %v3713_v48 = vadd.f32 %v1903_v26, %v1727_v41 }
 0x1ac   : > { %v1905_v60 = vpop.f32.mrf.mxu1 }
 0x1ad   : > { %v1733_v63 = vpop.f32.mrf.mxu0 }
 0x1ae   : > { %v1908_v55 = vpop.f32.mrf.mxu1 }
 0x1af   : > { %v3715_v8 = vpop.f32.mrf.mxu0 }
 0x1b0   : > { %v1910_v35 = vpop.f32.mrf.mxu1 }
 0x1b1   : > { %v1736_v56 = vpop.f32.mrf.mxu0 }
 0x1b2   : > { %v3717_v9 = vpop.f32.mrf.mxu1 }
 0x1b3   : > { %v3719_v22 = vpop.f32.mrf.mxu0 }
 0x1b4   : > { %v1913_v12 = vpop.f32.mrf.mxu1 }
 0x1b5   : > { %v1741_v20 = vpop.f32.mrf.mxu0 }
 0x1b6   : > { %v3721_v25 = vpop.f32.mrf.mxu1 }
 0x1b7   : > { %v3723_v6 = vpop.f32.mrf.mxu0 }
 0x1b8   : > { %v1918_v14 = vpop.f32.mrf.mxu1 }
 0x1b9   : > { %v1744_v57 = vpop.f32.mrf.mxu0 }
 0x1ba   : > { %v3725_v17 = vpop.f32.mrf.mxu1 }
 0x1bb   : > { %v3727_v27 = vpop.f32.mrf.mxu0 }
 0x1bc   : > { %v1921_v3 = vpop.f32.mrf.mxu1 }
 0x1bd   : > { %v1749_v37 = vpop.f32.mrf.mxu0 }
 0x1be   : > { %v3729_v49 = vpop.f32.mrf.mxu1 }
 0x1bf   : > { %v3731_v40 = vpop.f32.mrf.mxu0 }
 0x1c0   : > { %v1926_v53 = vpop.f32.mrf.mxu1 }
 0x1c1   : > { %v1752_v29 = vpop.f32.mrf.mxu0 }
 0x1c2   : > { %v3733_v47 = vpop.f32.mrf.mxu1 }
 0x1c3   : > { %v3735_v42 = vpop.f32.mrf.mxu0 }
 0x1c4   : > { %v1929_v54 = vpop.f32.mrf.mxu1 }
 0x1c5   : > { %v1757_v1 = vpop.f32.mrf.mxu0 }
 0x1c6   : > { %v3737_v11 = vpop.f32.mrf.mxu1 }
 0x1c7   : > { %v3739_v5 = vpop.f32.mrf.mxu0 }
 0x1c8   : > { %v1934_v52 = vpop.f32.mrf.mxu1 }
 0x1c9   : > { %v1760_v16 = vpop.f32.mrf.mxu0 }
 0x1ca   : > { %v3741_v51 = vpop.f32.mrf.mxu1  ;;  %v1732_v16 = vadd.f32 %v3647_v15, %v1731_v19 }
 0x1cb   : > { %v3743_v62 = vpop.f32.mrf.mxu0 }
 0x1cc   : > { %v1937_v24 = vpop.f32.mrf.mxu1 }
 0x1cd   : > { %v1765_v18 = vpop.f32.mrf.mxu0 }
 0x1ce   : > { %v3745_v58 = vpop.f32.mrf.mxu1 }
 0x1cf   : > { %v3747_v0 = vpop.f32.mrf.mxu0 }
 0x1d0   : > { %v1942_v2 = vpop.f32.mrf.mxu1 }
 0x1d1   : > { %v1768_v41 = vpop.f32.mrf.mxu0 }
 0x1d2   : > { %v3749_v46 = vpop.f32.mrf.mxu1  ;;  %v1909_v41 = vadd.f32 %v1908_v55, %v1732_v16 }
 0x1d3   : > { %v3751_v26 = vpop.f32.mrf.mxu0 }
 0x1d4   : > { %v1945_v60 = vpop.f32.mrf.mxu1 }
 0x1d5   : > { %v1773_v63 = vpop.f32.mrf.mxu0 }
 0x1d6   : > { %v3753_v35 = vpop.f32.mrf.mxu1 }
 0x1d7   : > { %v3755_v56 = vpop.f32.mrf.mxu0 }
 0x1d8   : > { %v1950_v12 = vpop.f32.mrf.mxu1 }
 0x1d9   : > { %v1776_v20 = vpop.f32.mrf.mxu0  ;;  %v1735_v12 = vadd.f32 %v3647_v15, %v3715_v8  ;;  %v1748_v8 = vadd.f32 %v3647_v15, %v3727_v27 }
 0x1da   : > { %v3757_v14 = vpop.f32.mrf.mxu1 }
 0x1db   : > { %v3759_v57 = vpop.f32.mrf.mxu0 }
 0x1dc   : > { %v1953_v3 = vpop.f32.mrf.mxu1 }
 0x1dd   : > { %v1781_v37 = vpop.f32.mrf.mxu0 }
 0x1de   : > { %v3761_v53 = vpop.f32.mrf.mxu1 }
 0x1df   : > { %v3763_v29 = vpop.f32.mrf.mxu0 }
 0x1e0   : > { %v1958_v54 = vpop.f32.mrf.mxu1 }
 0x1e1   : > { %v1784_v1 = vpop.f32.mrf.mxu0 }
 0x1e2   : > { %v3766_v52 = vpop.f32.mrf.mxu1 }
 0x1e3   : > { %v2394_v24 = vpop.f32.mrf.mxu0 }
 0x1e4   : > { %v2006_v18 = vadd.f32 %v2394_v24, %v3656_v28  ;;  %v1961_v2 = vpop.f32.mrf.mxu1  ;;  %v1912_v28 = vadd.f32 %v3717_v9, %v1735_v12 }
 0x1e5   : > { %v1997_v60 = vpop.f32.mrf.mxu0  ;;  %v1925_v2 = vadd.f32 %v3729_v49, %v1748_v8 }
 0x1e6   : > { %2142 = vst [vmem:[%s3772_s6 + $0x10] sm:$0xff] %v2006_v18  ;;  %v1998_v63 = vadd.f32 %v1997_v60, %v3650_v34  ;;  %v2414_v19 = vpop.f32.mrf.mxu1 }
 0x1e7   : > { %v2395_v20 = vpop.f32.mrf.mxu0  ;;  %v2086_v3 = vadd.f32 %v2414_v19, %v1909_v41 }
 0x1e8   : > { %2140 = vst [vmem:[%s3772_s6] sm:$0xff] %v1998_v63  ;;  %v2009_v37 = vadd.f32 %v2395_v20, %v3659_v33  ;;  %v2077_v54 = vpop.f32.mrf.mxu1 }
 0x1e9   : > { %2162 = vst [vmem:[%s3772_s6 + $0xb0] sm:$0xff] %v2086_v3  ;;  %v2000_v55 = vpop.f32.mrf.mxu0  ;;  %v2078_v1 = vadd.f32 %v2077_v54, %v3710_v61  ;;  %v1740_v61 = vadd.f32 %v3647_v15, %v3719_v22 }
 0x1ea   : > { %2143 = vst [vmem:[%s3772_s6 + $0x18] sm:$0xff] %v2009_v37  ;;  %v2001_v34 = vadd.f32 %v2000_v55, %v3653_v30  ;;  %v2415_v16 = vpop.f32.mrf.mxu1  ;;  %v1756_v55 = vadd.f32 %v3647_v15, %v3735_v42 }
 0x1eb   : > { %2160 = vst [vmem:[%s3772_s6 + $0xa0] sm:$0xff] %v2078_v1  ;;  %v2398_v24 = vpop.f32.mrf.mxu0  ;;  %v2089_v33 = vadd.f32 %v2415_v16, %v1912_v28  ;;  %v1917_v63 = vadd.f32 %v3721_v25, %v1740_v61 }
 0x1ec   : > { %2141 = vst [vmem:[%s3772_s6 + $0x8] sm:$0xff] %v2001_v34  ;;  %v2022_v9 = vadd.f32 %v2398_v24, %v3668_v4  ;;  %v2080_v18 = vpop.f32.mrf.mxu1  ;;  %v1751_v4 = vadd.f32 %v3647_v15, %v3731_v40  ;;  %v1933_v16 = vadd.f32 %v3737_v11, %v1756_v55 }
 0x1ed   : > { %2163 = vst [vmem:[%s3772_s6 + $0xb8] sm:$0xff] %v2089_v33  ;;  %v2013_v30 = vpop.f32.mrf.mxu0  ;;  %v2081_v41 = vadd.f32 %v2080_v18, %v3713_v48  ;;  %v1743_v48 = vadd.f32 %v3647_v15, %v3723_v6  ;;  %v1759_v33 = vadd.f32 %v3647_v15, %v3739_v5 }
 0x1ee   : > { %2146 = vst [vmem:[%s3772_s6 + $0x30] sm:$0xff] %v2022_v9  ;;  %v2014_v27 = vadd.f32 %v2013_v30, %v3662_v32  ;;  %v2418_v60 = vpop.f32.mrf.mxu1  ;;  %v1928_v32 = vadd.f32 %v3733_v47, %v1751_v4 }
 0x1ef   : > { %2161 = vst [vmem:[%s3772_s6 + $0xa8] sm:$0xff] %v2081_v41  ;;  %v2399_v22 = vpop.f32.mrf.mxu0  ;;  %v2102_v19 = vadd.f32 %v2418_v60, %v1925_v2  ;;  %v1920_v37 = vadd.f32 %v3725_v17, %v1743_v48  ;;  %v1936_v61 = vadd.f32 %v3741_v51, %v1759_v33  ;;  %v1772_v41 = vadd.f32 %v3647_v15, %v3751_v26 }
 0x1f0   : > { %2144 = vst [vmem:[%s3772_s6 + $0x20] sm:$0xff] %v2014_v27  ;;  %v2025_v49 = vadd.f32 %v2399_v22, %v3671_v50  ;;  %v2093_v12 = vpop.f32.mrf.mxu1  ;;  %v1764_v50 = vadd.f32 %v3647_v15, %v3743_v62 }
 0x1f1   : > { %2166 = vst [vmem:[%s3772_s6 + $0xd0] sm:$0xff] %v2102_v19  ;;  %v2016_v25 = vpop.f32.mrf.mxu0  ;;  %v2094_v20 = vadd.f32 %v2093_v12, %v1917_v63  ;;  %v1949_v63 = vadd.f32 %v3753_v35, %v1772_v41  ;;  %v1775_v19 = vadd.f32 %v3647_v15, %v3755_v56 }
 0x1f2   : > { %2147 = vst [vmem:[%s3772_s6 + $0x38] sm:$0xff] %v2025_v49  ;;  %v2017_v40 = vadd.f32 %v2016_v25, %v3665_v44  ;;  %v2419_v3 = vpop.f32.mrf.mxu1  ;;  %v1941_v44 = vadd.f32 %v3745_v58, %v1764_v50 }
 0x1f3   : > { %2164 = vst [vmem:[%s3772_s6 + $0xc0] sm:$0xff] %v2094_v20  ;;  %v2402_v54 = vpop.f32.mrf.mxu0  ;;  %v2105_v6 = vadd.f32 %v2419_v3, %v1928_v32  ;;  %v1952_v48 = vadd.f32 %v3757_v14, %v1775_v19 }
 0x1f4   : > { %2145 = vst [vmem:[%s3772_s6 + $0x28] sm:$0xff] %v2017_v40  ;;  %v2038_v47 = vadd.f32 %v2402_v54, %v3680_v36  ;;  %v2096_v28 = vpop.f32.mrf.mxu1  ;;  %v1767_v36 = vadd.f32 %v3647_v15, %v3747_v0 }
 0x1f5   : > { %2167 = vst [vmem:[%s3772_s6 + $0xd8] sm:$0xff] %v2105_v6  ;;  %v2029_v17 = vpop.f32.mrf.mxu0  ;;  %v2097_v1 = vadd.f32 %v2096_v28, %v1920_v37 }
 0x1f6   : > { %2150 = vst [vmem:[%s3772_s6 + $0x50] sm:$0xff] %v2038_v47  ;;  %v2030_v62 = vadd.f32 %v2029_v17, %v3674_v31  ;;  %v2422_v34 = vpop.f32.mrf.mxu1  ;;  %v1944_v31 = vadd.f32 %v3749_v46, %v1767_v36 }
 0x1f7   : > { %2165 = vst [vmem:[%s3772_s6 + $0xc8] sm:$0xff] %v2097_v1  ;;  %v2403_v8 = vpop.f32.mrf.mxu0  ;;  %v2118_v42 = vadd.f32 %v2422_v34, %v1941_v44 }
 0x1f8   : > { %2148 = vst [vmem:[%s3772_s6 + $0x40] sm:$0xff] %v2030_v62  ;;  %v2041_v58 = vadd.f32 %v2403_v8, %v3683_v13  ;;  %v2109_v24 = vpop.f32.mrf.mxu1  ;;  %v1780_v13 = vadd.f32 %v3647_v15, %v3759_v57 }
 0x1f9   : > { %2170 = vst [vmem:[%s3772_s6 + $0xf0] sm:$0xff] %v2118_v42  ;;  %v2032_v11 = vpop.f32.mrf.mxu0  ;;  %v2110_v9 = vadd.f32 %v2109_v24, %v1933_v16 }
 0x1fa   : > { %2151 = vst [vmem:[%s3772_s6 + $0x58] sm:$0xff] %v2041_v58  ;;  %v2033_v0 = vadd.f32 %v2032_v11, %v3677_v39  ;;  %v2423_v18 = vpop.f32.mrf.mxu1  ;;  %v1957_v39 = vadd.f32 %v3761_v53, %v1780_v13 }
 0x1fb   : > { %2168 = vst [vmem:[%s3772_s6 + $0xe0] sm:$0xff] %v2110_v9  ;;  %v2406_v2 = vpop.f32.mrf.mxu0  ;;  %v2121_v5 = vadd.f32 %v2423_v18, %v1944_v31 }
 0x1fc   : > { %2149 = vst [vmem:[%s3772_s6 + $0x48] sm:$0xff] %v2033_v0  ;;  %v2054_v46 = vadd.f32 %v2406_v2, %v3692_v7  ;;  %v2112_v30 = vpop.f32.mrf.mxu1  ;;  %v1783_v7 = vadd.f32 %v3647_v15, %v3763_v29 }
 0x1fd   : > { %2171 = vst [vmem:[%s3772_s6 + $0xf8] sm:$0xff] %v2121_v5  ;;  %v2045_v51 = vpop.f32.mrf.mxu0  ;;  %v2113_v27 = vadd.f32 %v2112_v30, %v1936_v61 }
 0x1fe   : > { %2154 = vst [vmem:[%s3772_s6 + $0x70] sm:$0xff] %v2054_v46  ;;  %v2046_v57 = vadd.f32 %v2045_v51, %v3686_v59  ;;  %v2426_v60 = vpop.f32.mrf.mxu1  ;;  %v1960_v59 = vadd.f32 %v3766_v52, %v1783_v7 }
 0x1ff   : > { %2169 = vst [vmem:[%s3772_s6 + $0xe8] sm:$0xff] %v2113_v27  ;;  %v2407_v4 = vpop.f32.mrf.mxu0  ;;  %v2134_v26 = vadd.f32 %v2426_v60, %v1957_v39 }
 0x200   : > { %2152 = vst [vmem:[%s3772_s6 + $0x60] sm:$0xff] %v2046_v57  ;;  %v2057_v53 = vadd.f32 %v2407_v4, %v3695_v43  ;;  %v2125_v22 = vpop.f32.mrf.mxu1 }
 0x201   : > { %2174 = vst [vmem:[%s3772_s6 + $0x110] sm:$0xff] %v2134_v26  ;;  %v2048_v35 = vpop.f32.mrf.mxu0  ;;  %v2126_v49 = vadd.f32 %v2125_v22, %v1949_v63 }
 0x202   : > { %2155 = vst [vmem:[%s3772_s6 + $0x78] sm:$0xff] %v2057_v53  ;;  %v2049_v29 = vadd.f32 %v2048_v35, %v3689_v38  ;;  %v2427_v12 = vpop.f32.mrf.mxu1 }
 0x203   : > { %2172 = vst [vmem:[%s3772_s6 + $0x100] sm:$0xff] %v2126_v49  ;;  %v2410_v43 = vpop.f32.mrf.mxu0  ;;  %v2137_v32 = vadd.f32 %v2427_v12, %v1960_v59 }
 0x204   : > { %2153 = vst [vmem:[%s3772_s6 + $0x68] sm:$0xff] %v2049_v29  ;;  %v2070_v15 = vadd.f32 %v2410_v43, %v3704_v45  ;;  %v2128_v56 = vpop.f32.mrf.mxu1 }
 0x205   : > { %2175 = vst [vmem:[%s3772_s6 + $0x118] sm:$0xff] %v2137_v32  ;;  %v2061_v52 = vpop.f32.mrf.mxu0  ;;  %v2129_v25 = vadd.f32 %v2128_v56, %v1952_v48 }
 0x206   : > { %2158 = vst [vmem:[%s3772_s6 + $0x90] sm:$0xff] %v2070_v15  ;;  %v2062_v20 = vadd.f32 %v2061_v52, %v3698_v23 }
 0x207   : > { %2173 = vst [vmem:[%s3772_s6 + $0x108] sm:$0xff] %v2129_v25  ;;  %v2411_v38 = vpop.f32.mrf.mxu0 }
 0x208   : > { %2156 = vst [vmem:[%s3772_s6 + $0x80] sm:$0xff] %v2062_v20  ;;  %v2073_v14 = vadd.f32 %v2411_v38, %v3707_v10 }
 0x209   : > { %v2064_v40 = vpop.f32.mrf.mxu0 }
 0x20a   : > { %2159 = vst [vmem:[%s3772_s6 + $0x98] sm:$0xff] %v2073_v14  ;;  %v2065_v3 = vadd.f32 %v2064_v40, %v3701_v21 }
 0x20c   : > { %2157 = vst [vmem:[%s3772_s6 + $0x88] sm:$0xff] %v2065_v3 }
 0x20d PF: > { %s13_s14 = sadd.s32 1, %s2564_s14   ;;  %s3952_s12 = smov %s2560_s13 }
 0x20e   : > { %p10_p5 = scmp.ge.s32.totalorder %s13_s14, 4   ;;  %s3953_s13 = smov %s3955_s15 }
 0x210   :  { %12 = sbr.rel (!%p10_p5) target bundleno = 2 (0x2), region = 62 }

</bundles_post_ra>
